<compile_context>
chip_gen: v6e
topology: v6e:2x2x1
jax: 0.10.0
libtpu: 0.0.40
codegen_flags: <defaults>
</compile_context>

<pallas_src>
import math

import numpy as np
import jax
import jax.numpy as jnp
from jax.experimental import pallas as pl
from jax.experimental.pallas import tpu as pltpu

BN_EPS = 1e-5
OP_NAMES = ["none", "skip_connect", "nor_conv_1x1", "nor_conv_3x3", "avg_pool_3x3"]


def _pad8(n):
    return ((n + 7) // 8) * 8


def _vmem_spec():
    return pl.BlockSpec(memory_space=pltpu.MemorySpace.VMEM)


# ----------------------------- fused network kernel -----------------------------

def _make_network_kernel(program):
    """Build the single fused kernel, specialized on the static network program."""
    n_res = len(program["res"])
    stages = program["stages"]

    def kernel(*refs):
        x_ref = refs[0]
        mask_refs = refs[1:1 + n_res]
        param_refs = refs[1 + n_res:-2]
        out_ref, logits_ref = refs[-2], refs[-1]

        # -- hoisted per-resolution mask constants (rows 0..8: border masks for the 9
        #    taps, row 9: 1/#valid for AvgPool3x3 count_include_pad=False), broadcast
        #    once per (resolution, channel-count) and reused by every edge.
        mask_vals = [mref[...] for mref in mask_refs]
        row_cache = {}

        def tap_rows(r, c):
            key = (r, c)
            if key not in row_cache:
                m = mask_vals[r]
                row_cache[key] = [
                    jnp.broadcast_to(m[t:t + 1, :], (c, m.shape[1])) for t in range(9)
                ]
            return row_cache[key]

        def inv_count(r):
            return mask_vals[r][9:10, :]

        # -- flat parameter stream, consumed in the exact order build_network emitted it.
        cursor = [0]

        def nxt():
            v = param_refs[cursor[0]][...]
            cursor[0] += 1
            return v

        def shifted(x, off, m):
            # pltpu.roll follows the jnp.roll convention:
            #   pltpu.roll(x, s, 1)[:, i] == x[:, (i - s) % m]
            # so a shift of (-off) % m fetches the (+off) spatial neighbour.
            return pltpu.roll(x, (-off) % m, 1)

        def tap_stack(x, r):
            """In-register im2col: 9 shifted+masked taps stacked on the sublane axis ->
            [9*C, B*HW] bf16, so a whole 3x3 conv is ONE MXU matmul with K = 9*C."""
            _, w_sp, m_sp = program["res"][r]
            rows = tap_rows(r, x.shape[0])
            taps = []
            t = 0
            for dy in (-1, 0, 1):
                for dx in (-1, 0, 1):
                    off = dy * w_sp + dx
                    xt = x if off == 0 else shifted(x, off, m_sp) * rows[t]
                    taps.append(xt)
                    t += 1
            # Concatenate in f32 (8-row aligned operands), single cast to bf16 for MXU.
            return jnp.concatenate(taps, axis=0).astype(jnp.bfloat16)

        def conv3x3(x, r, w, shift):
            return jnp.dot(w, tap_stack(x, r),
                           preferred_element_type=jnp.float32) + shift

        def avg_pool3x3(x, r):
            _, w_sp, m_sp = program["res"][r]
            rows = tap_rows(r, x.shape[0])
            acc = None
            t = 0
            for dy in (-1, 0, 1):
                for dx in (-1, 0, 1):
                    off = dy * w_sp + dx
                    xt = x if off == 0 else shifted(x, off, m_sp) * rows[t]
                    acc = xt if acc is None else acc + xt
                    t += 1
            return acc * inv_count(r)     # count_include_pad=False divisor

        feat = x_ref[...]                 # [Cpad, B*HW] f32, channels on sublanes
        for stage in stages:
            kind = stage["kind"]
            if kind == "stem":
                # stem: Conv3x3(pad=1, bias=False) + folded BN (no ReLU).
                w, sh = nxt(), nxt()
                feat = conv3x3(feat, stage["res"], w, sh)

            elif kind == "search":
                # One NAS-Bench-201 SearchCell (all edges fused, "none" skipped).
                r = stage["res"]
                nodes = [feat]
                relu_cache = {}

                def relu_of(idx, nodes=nodes, relu_cache=relu_cache):
                    if idx not in relu_cache:
                        relu_cache[idx] = jnp.maximum(nodes[idx], 0.0)
                    return relu_cache[idx]

                for row in stage["plan"]:       # node i = sum_j op_{i<-j}(node j)
                    acc = None
                    for (j, op) in row:
                        if op == "none":
                            continue
                        if op == "skip_connect":
                            y = nodes[j]
                        elif op == "avg_pool_3x3":
                            y = avg_pool3x3(nodes[j], r)
                        elif op == "nor_conv_1x1":      # ReLU -> 1x1 conv -> BN (folded)
                            w, sh = nxt(), nxt()
                            y = jnp.dot(w, relu_of(j).astype(jnp.bfloat16),
                                        preferred_element_type=jnp.float32) + sh
                        elif op == "nor_conv_3x3":      # ReLU -> 3x3 conv -> BN (folded)
                            w, sh = nxt(), nxt()
                            y = conv3x3(relu_of(j), r, w, sh)
                        else:
                            raise ValueError("unknown op: {}".format(op))
                        acc = y if acc is None else acc + y
                    nodes.append(acc if acc is not None else jnp.zeros_like(feat))
                feat = nodes[-1]

            elif kind == "reduce":
                # ResNetBasicblock(stride=2): conv_a, conv_b, AvgPool2x2 + 1x1 shortcut.
                r_in, r_out = stage["res_in"], stage["res_out"]
                wa, sa = nxt(), nxt()
                wb, sb = nxt(), nxt()
                wd, sel, pool = nxt(), nxt(), nxt()
                # conv_a: ReLU -> 3x3 stride-2 conv -> BN.  One full-res MXU matmul,
                # then stride-2 point selection as a small bf16 matmul.
                # TODO(synk): at realistic sizes replace the dense selection / pooling
                #             matmuls with strided-ref gathers.
                full = jnp.dot(wa, tap_stack(jnp.maximum(feat, 0.0), r_in),
                               preferred_element_type=jnp.float32)
                a = jnp.dot(full.astype(jnp.bfloat16), sel,
                            preferred_element_type=jnp.float32) + sa
                # conv_b: ReLU -> 3x3 stride-1 conv -> BN at the reduced resolution.
                b = jnp.dot(wb, tap_stack(jnp.maximum(a, 0.0), r_out),
                            preferred_element_type=jnp.float32) + sb
                # shortcut: AvgPool2d(2, 2) as one averaging matmul, then 1x1 conv.
                pooled = jnp.dot(feat.astype(jnp.bfloat16), pool,
                                 preferred_element_type=jnp.float32)
                sc = jnp.dot(wd, pooled.astype(jnp.bfloat16),
                             preferred_element_type=jnp.float32)
                feat = sc + b

            elif kind == "head":
                # lastact (BN + ReLU) + AdaptiveAvgPool2d(1) (per-image GAP matmul)
                # + Linear classifier; outputs kept channels-first, transposed outside.
                scale, shift, gap, wcls, bcls = nxt(), nxt(), nxt(), nxt(), nxt()
                y = jnp.maximum(feat * scale + shift, 0.0)
                pooled = jnp.dot(y.astype(jnp.bfloat16), gap,
                                 preferred_element_type=jnp.float32)     # [Cpad, B]
                out_ref[...] = pooled
                logits_ref[...] = jnp.dot(wcls, pooled.astype(jnp.bfloat16),
                                          preferred_element_type=jnp.float32) + bcls
            else:
                raise ValueError("unknown stage kind: {}".format(kind))

    return kernel


# ----------------------------- host-side constants -----------------------------

def _make_masks(H, W, B):
    """[10, B*H*W] f32: rows 0..8 = border masks for the 3x3 taps (row-major dy, dx),
    row 9 = 1/#valid for AvgPool2d(3,1,1,count_include_pad=False); tiled per image so
    lane rolls never leak across row or image boundaries."""
    hh, ww = np.meshgrid(np.arange(H), np.arange(W), indexing="ij")
    rows = []
    for dy in (-1, 0, 1):
        for dx in (-1, 0, 1):
            m = ((hh + dy >= 0) & (hh + dy < H) & (ww + dx >= 0) & (ww + dx < W))
            rows.append(m.reshape(-1).astype(np.float32))
    cnt = np.sum(np.stack(rows), axis=0)
    rows.append((1.0 / cnt).astype(np.float32))
    per_img = np.stack(rows)                              # [10, H*W]
    return jnp.asarray(np.tile(per_img, (1, B)))          # [10, B*H*W]


def _make_downsample_mats(H, W, B):
    """Block-diagonal (per image) stride-2 selection and 2x2 average-pool matrices,
    both [B*H*W, B*(H//2)*(W//2)] in bf16."""
    Ho, Wo = H // 2, W // 2
    hw, hwo = H * W, Ho * Wo
    sel = np.zeros((B * hw, B * hwo), np.float32)
    pool = np.zeros((B * hw, B * hwo), np.float32)
    for b in range(B):
        for ho in range(Ho):
            for wo in range(Wo):
                o = b * hwo + ho * Wo + wo
                sel[b * hw + (2 * ho) * W + (2 * wo), o] = 1.0
                for dh in (0, 1):
                    for dw in (0, 1):
                        pool[b * hw + (2 * ho + dh) * W + (2 * wo + dw), o] = 0.25
    return jnp.asarray(sel, jnp.bfloat16), jnp.asarray(pool, jnp.bfloat16)


def _make_gap_mat(HW, B):
    """Per-image global-average-pool matrix [B*HW, B] (1/HW on each image's block)."""
    g = np.zeros((B * HW, B), np.float32)
    for b in range(B):
        g[b * HW:(b + 1) * HW, b] = 1.0 / HW
    return jnp.asarray(g, jnp.bfloat16)


# ----------------------------- parameter setup -----------------------------

def _bn_fold(key, c):
    k1, k2, k3, k4 = jax.random.split(key, 4)
    gamma = 1.0 + 0.1 * jax.random.normal(k1, (c,), jnp.float32)
    beta = 0.1 * jax.random.normal(k2, (c,), jnp.float32)
    mean = 0.1 * jax.random.normal(k3, (c,), jnp.float32)
    var = 1.0 + 0.1 * jax.random.uniform(k4, (c,), jnp.float32)
    scale = gamma / jnp.sqrt(var + BN_EPS)
    shift = beta - mean * scale
    return scale, shift


def make_conv_bn(key, cin, cout, k, cin_pad, cout_pad, with_bn=True):
    """Conv2d(bias=False) [+ inference-mode BN folded in], channel-padded + bf16.

    3x3 weights come back as [cout_pad, 9*cin_pad] (tap-major along K, matching the
    in-kernel tap stacking) so the whole conv is a single K = 9*Cin MXU matmul; 1x1
    weights as [cout_pad, cin_pad].  The per-channel BN shift rides along as f32."""
    kw, kb = jax.random.split(key)
    w = jax.random.normal(kw, (cout, cin, k, k), jnp.float32) * (1.0 / math.sqrt(cin * k * k))
    if with_bn:
        scale, shift = _bn_fold(kb, cout)
    else:
        scale = jnp.ones((cout,), jnp.float32)
        shift = jnp.zeros((cout,), jnp.float32)
    w = w * scale[:, None, None, None]                    # fold BN scale into the weight
    shift_col = jnp.zeros((cout_pad, 1), jnp.float32).at[:cout, 0].set(shift)
    if k == 1:
        wp = jnp.zeros((cout_pad, cin_pad), jnp.float32).at[:cout, :cin].set(w[:, :, 0, 0])
    else:
        wt = jnp.transpose(w, (0, 2, 3, 1)).reshape(cout, k * k, cin)   # tap-major K
        wp = jnp.zeros((cout_pad, k * k, cin_pad), jnp.float32).at[:cout, :, :cin].set(wt)
        wp = wp.reshape(cout_pad, k * k * cin_pad)
    return dict(w=wp.astype(jnp.bfloat16), shift=shift_col)


def build_edge2index(max_nodes):
    e2i = {}
    for i in range(1, max_nodes):
        for j in range(i):
            e2i["{:}<-{:}".format(i, j)] = len(e2i)
    return e2i


def build_plan(arch, max_nodes):
    """Static per-node list of (source node, op name) for the sampled ENAS arch."""
    e2i = build_edge2index(max_nodes)
    plan = []
    for i in range(1, max_nodes):
        row = []
        for j in range(i):
            row.append((j, OP_NAMES[arch[e2i["{:}<-{:}".format(i, j)]]]))
        plan.append(row)
    return plan


def build_network(key, C, N, max_nodes, num_classes, arch, B, H, W):
    plan = build_plan(arch, max_nodes)
    layer_channels = [C] * N + [C * 2] + [C * 2] * N + [C * 4] + [C * 4] * N
    layer_reductions = [False] * N + [True] + [False] * N + [True] + [False] * N

    # Resolution pyramid (one entry per spatial size): (H, W, B*H*W).
    res = [(H, W, B * H * W)]
    h, w = H, W
    for red in layer_reductions:
        if red:
            h, w = h // 2, w // 2
            res.append((h, w, B * h * w))
    masks = [_make_masks(hh, ww, B) for (hh, ww, _) in res]

    keys = iter(jax.random.split(key, 128))
    flat, stages = [], []

    # stem: Conv3x3(3 -> C) + BN (no ReLU).
    p = make_conv_bn(next(keys), 3, C, 3, _pad8(3), _pad8(C))
    flat += [p["w"], p["shift"]]
    stages.append(dict(kind="stem", res=0))

    C_prev, cur_res = C, 0
    for C_curr, red in zip(layer_channels, layer_reductions):
        if red:   # ResNetBasicblock(C_prev, C_curr, stride=2)
            pa = make_conv_bn(next(keys), C_prev, C_curr, 3, _pad8(C_prev), _pad8(C_curr))
            pb = make_conv_bn(next(keys), C_curr, C_curr, 3, _pad8(C_curr), _pad8(C_curr))
            pd = make_conv_bn(next(keys), C_prev, C_curr, 1, _pad8(C_prev), _pad8(C_curr),
                              with_bn=False)
            hi, wi, _ = res[cur_res]
            sel, pool = _make_downsample_mats(hi, wi, B)
            flat += [pa["w"], pa["shift"], pb["w"], pb["shift"], pd["w"], sel, pool]
            stages.append(dict(kind="reduce", res_in=cur_res, res_out=cur_res + 1))
            cur_res += 1
        else:     # SearchCell(C_prev, C_curr, stride=1, max_nodes, ...)
            assert C_prev == C_curr
            for row in plan:
                for (_, op) in row:
                    if op == "nor_conv_3x3":
                        q = make_conv_bn(next(keys), C_prev, C_curr, 3,
                                         _pad8(C_prev), _pad8(C_curr))
                        flat += [q["w"], q["shift"]]
                    elif op == "nor_conv_1x1":
                        q = make_conv_bn(next(keys), C_prev, C_curr, 1,
                                         _pad8(C_prev), _pad8(C_curr))
                        flat += [q["w"], q["shift"]]
            stages.append(dict(kind="search", res=cur_res, plan=plan))
        C_prev = C_curr

    # head: lastact BN + ReLU, global average pool, Linear classifier.
    Cp = _pad8(C_prev)
    scale, shift = _bn_fold(next(keys), C_prev)
    scale_p = jnp.zeros((Cp, 1), jnp.float32).at[:C_prev, 0].set(scale)
    shift_p = jnp.zeros((Cp, 1), jnp.float32).at[:C_prev, 0].set(shift)
    kcw, kcb = jax.random.split(next(keys))
    wcls = jax.random.normal(kcw, (num_classes, C_prev), jnp.float32) * (1.0 / math.sqrt(C_prev))
    wcls_p = jnp.zeros((num_classes, Cp), jnp.float32).at[:, :C_prev].set(wcls)
    bcls = 0.01 * jax.random.normal(kcb, (num_classes, 1), jnp.float32)
    hl, wl, _ = res[-1]
    gap = _make_gap_mat(hl * wl, B)
    flat += [scale_p, shift_p, gap, wcls_p.astype(jnp.bfloat16), bcls]
    stages.append(dict(kind="head"))

    program = dict(res=res, stages=stages)
    return dict(masks=masks, flat=flat, program=program, plan=plan,
                B=B, H=H, W=W, C_prev=C_prev, C_prev_pad=Cp, num_classes=num_classes)


# ----------------------------- forward pass -----------------------------

def tiny_network_enas_forward(net, x_nchw):
    B, cin, H, W = x_nchw.shape
    assert (B, H, W) == (net["B"], net["H"], net["W"])
    program = net["program"]
    cin_pad = _pad8(cin)
    M0 = B * H * W

    # NCHW -> [Cpad, B*H*W]: channels on sublanes, batch x flattened spatial packed
    # lane-dense so matmul N / VPU ops stay >= 128 lanes wide; pad channels stay zero.
    x = jnp.transpose(x_nchw.astype(jnp.float32), (1, 0, 2, 3)).reshape(cin, M0)
    x = jnp.zeros((cin_pad, M0), jnp.float32).at[:cin].set(x)

    n_in = 1 + len(net["masks"]) + len(net["flat"])
    out_t, logits_t = pl.pallas_call(
        _make_network_kernel(program),
        out_shape=(jax.ShapeDtypeStruct((net["C_prev_pad"], B), jnp.float32),
                   jax.ShapeDtypeStruct((net["num_classes"], B), jnp.float32)),
        in_specs=[_vmem_spec() for _ in range(n_in)],
        out_specs=(_vmem_spec(), _vmem_spec()),
    )(x, *net["masks"], *net["flat"])

    out = jnp.transpose(out_t)[:, :net["C_prev"]]     # [B, C_prev] pooled features
    logits = jnp.transpose(logits_t)                  # [B, num_classes]
    return out, logits


# ----------------------------- main -----------------------------

if __name__ == "__main__":
    C, N, max_nodes, num_classes = 4, 1, 4, 10
    B, H, W = 2, 16, 16
    # sampled ENAS architecture: one op index per edge
    # edge order (edge2index): 1<-0, 2<-0, 2<-1, 3<-0, 3<-1, 3<-2
    arch = (3, 2, 1, 0, 4, 3)

    key = jax.random.PRNGKey(0)
    kp, kx = jax.random.split(key)
    net = build_network(kp, C, N, max_nodes, num_classes, arch, B, H, W)
    x = jax.random.normal(kx, (B, 3, H, W), jnp.float32)   # NCHW like the PyTorch model

    out, logits = tiny_network_enas_forward(net, x)
    jax.block_until_ready((out, logits))
    assert out.shape == (B, C * 4), out.shape
    assert logits.shape == (B, num_classes), logits.shape
    print("KERNEL_OK")
</pallas_src>

<mosaic_0001>
module attributes {stable_mosaic.version = 11 : i64} {
  func.func @kernel(%arg0: memref<8x512xf32, #tpu.memory_space<vmem>>, %arg1: memref<10x512xf32, #tpu.memory_space<vmem>>, %arg2: memref<10x128xf32, #tpu.memory_space<vmem>>, %arg3: memref<10x32xf32, #tpu.memory_space<vmem>>, %arg4: memref<8x72xbf16, #tpu.memory_space<vmem>>, %arg5: memref<8x1xf32, #tpu.memory_space<vmem>>, %arg6: memref<8x72xbf16, #tpu.memory_space<vmem>>, %arg7: memref<8x1xf32, #tpu.memory_space<vmem>>, %arg8: memref<8x8xbf16, #tpu.memory_space<vmem>>, %arg9: memref<8x1xf32, #tpu.memory_space<vmem>>, %arg10: memref<8x72xbf16, #tpu.memory_space<vmem>>, %arg11: memref<8x1xf32, #tpu.memory_space<vmem>>, %arg12: memref<8x72xbf16, #tpu.memory_space<vmem>>, %arg13: memref<8x1xf32, #tpu.memory_space<vmem>>, %arg14: memref<8x72xbf16, #tpu.memory_space<vmem>>, %arg15: memref<8x1xf32, #tpu.memory_space<vmem>>, %arg16: memref<8x8xbf16, #tpu.memory_space<vmem>>, %arg17: memref<512x128xbf16, #tpu.memory_space<vmem>>, %arg18: memref<512x128xbf16, #tpu.memory_space<vmem>>, %arg19: memref<8x72xbf16, #tpu.memory_space<vmem>>, %arg20: memref<8x1xf32, #tpu.memory_space<vmem>>, %arg21: memref<8x8xbf16, #tpu.memory_space<vmem>>, %arg22: memref<8x1xf32, #tpu.memory_space<vmem>>, %arg23: memref<8x72xbf16, #tpu.memory_space<vmem>>, %arg24: memref<8x1xf32, #tpu.memory_space<vmem>>, %arg25: memref<16x72xbf16, #tpu.memory_space<vmem>>, %arg26: memref<16x1xf32, #tpu.memory_space<vmem>>, %arg27: memref<16x144xbf16, #tpu.memory_space<vmem>>, %arg28: memref<16x1xf32, #tpu.memory_space<vmem>>, %arg29: memref<16x8xbf16, #tpu.memory_space<vmem>>, %arg30: memref<128x32xbf16, #tpu.memory_space<vmem>>, %arg31: memref<128x32xbf16, #tpu.memory_space<vmem>>, %arg32: memref<16x144xbf16, #tpu.memory_space<vmem>>, %arg33: memref<16x1xf32, #tpu.memory_space<vmem>>, %arg34: memref<16x16xbf16, #tpu.memory_space<vmem>>, %arg35: memref<16x1xf32, #tpu.memory_space<vmem>>, %arg36: memref<16x144xbf16, #tpu.memory_space<vmem>>, %arg37: memref<16x1xf32, #tpu.memory_space<vmem>>, %arg38: memref<16x1xf32, #tpu.memory_space<vmem>>, %arg39: memref<16x1xf32, #tpu.memory_space<vmem>>, %arg40: memref<32x2xbf16, #tpu.memory_space<vmem>>, %arg41: memref<10x16xbf16, #tpu.memory_space<vmem>>, %arg42: memref<10x1xf32, #tpu.memory_space<vmem>>, %arg43: memref<16x2xf32, #tpu.memory_space<vmem>>, %arg44: memref<10x2xf32, #tpu.memory_space<vmem>>) attributes {dimension_semantics = [], scalar_prefetch = 0 : i64, scratch_operands = 0 : i64, tpu.core_type = #tpu.core_type<tc>} {
    %c0 = arith.constant 0 : index
    %c0_0 = arith.constant 0 : index
    %0 = vector.load %arg1[%c0, %c0_0] : memref<10x512xf32, #tpu.memory_space<vmem>>, vector<10x512xf32>
    %c0_1 = arith.constant 0 : index
    %c0_2 = arith.constant 0 : index
    %1 = vector.load %arg2[%c0_1, %c0_2] : memref<10x128xf32, #tpu.memory_space<vmem>>, vector<10x128xf32>
    %c0_3 = arith.constant 0 : index
    %c0_4 = arith.constant 0 : index
    %2 = vector.load %arg3[%c0_3, %c0_4] : memref<10x32xf32, #tpu.memory_space<vmem>>, vector<10x32xf32>
    %c0_5 = arith.constant 0 : index
    %c0_6 = arith.constant 0 : index
    %3 = vector.load %arg0[%c0_5, %c0_6] : memref<8x512xf32, #tpu.memory_space<vmem>>, vector<8x512xf32>
    %c0_7 = arith.constant 0 : index
    %c0_8 = arith.constant 0 : index
    %4 = vector.load %arg4[%c0_7, %c0_8] : memref<8x72xbf16, #tpu.memory_space<vmem>>, vector<8x72xbf16>
    %c0_9 = arith.constant 0 : index
    %c0_10 = arith.constant 0 : index
    %5 = vector.load %arg5[%c0_9, %c0_10] : memref<8x1xf32, #tpu.memory_space<vmem>>, vector<8x1xf32>
    %6 = vector.extract_strided_slice %0 {offsets = [0, 0], sizes = [1, 512], strides = [1, 1]} : vector<10x512xf32> to vector<1x512xf32>
    %7 = vector.shape_cast %6 : vector<1x512xf32> to vector<1x512xf32>
    %8 = vector.broadcast %7 : vector<1x512xf32> to vector<8x512xf32>
    %9 = vector.extract_strided_slice %0 {offsets = [1, 0], sizes = [1, 512], strides = [1, 1]} : vector<10x512xf32> to vector<1x512xf32>
    %10 = vector.shape_cast %9 : vector<1x512xf32> to vector<1x512xf32>
    %11 = vector.broadcast %10 : vector<1x512xf32> to vector<8x512xf32>
    %12 = vector.extract_strided_slice %0 {offsets = [2, 0], sizes = [1, 512], strides = [1, 1]} : vector<10x512xf32> to vector<1x512xf32>
    %13 = vector.shape_cast %12 : vector<1x512xf32> to vector<1x512xf32>
    %14 = vector.broadcast %13 : vector<1x512xf32> to vector<8x512xf32>
    %15 = vector.extract_strided_slice %0 {offsets = [3, 0], sizes = [1, 512], strides = [1, 1]} : vector<10x512xf32> to vector<1x512xf32>
    %16 = vector.shape_cast %15 : vector<1x512xf32> to vector<1x512xf32>
    %17 = vector.broadcast %16 : vector<1x512xf32> to vector<8x512xf32>
    %18 = vector.extract_strided_slice %0 {offsets = [5, 0], sizes = [1, 512], strides = [1, 1]} : vector<10x512xf32> to vector<1x512xf32>
    %19 = vector.shape_cast %18 : vector<1x512xf32> to vector<1x512xf32>
    %20 = vector.broadcast %19 : vector<1x512xf32> to vector<8x512xf32>
    %21 = vector.extract_strided_slice %0 {offsets = [6, 0], sizes = [1, 512], strides = [1, 1]} : vector<10x512xf32> to vector<1x512xf32>
    %22 = vector.shape_cast %21 : vector<1x512xf32> to vector<1x512xf32>
    %23 = vector.broadcast %22 : vector<1x512xf32> to vector<8x512xf32>
    %24 = vector.extract_strided_slice %0 {offsets = [7, 0], sizes = [1, 512], strides = [1, 1]} : vector<10x512xf32> to vector<1x512xf32>
    %25 = vector.shape_cast %24 : vector<1x512xf32> to vector<1x512xf32>
    %26 = vector.broadcast %25 : vector<1x512xf32> to vector<8x512xf32>
    %27 = vector.extract_strided_slice %0 {offsets = [8, 0], sizes = [1, 512], strides = [1, 1]} : vector<10x512xf32> to vector<1x512xf32>
    %28 = vector.shape_cast %27 : vector<1x512xf32> to vector<1x512xf32>
    %29 = vector.broadcast %28 : vector<1x512xf32> to vector<8x512xf32>
    %c17_i32 = arith.constant 17 : i32
    %30 = tpu.dynamic_rotate %3 by %c17_i32 dim 1 : vector<8x512xf32>, i32 -> vector<8x512xf32>
    %31 = arith.mulf %30, %8 : vector<8x512xf32>
    %c16_i32 = arith.constant 16 : i32
    %32 = tpu.dynamic_rotate %3 by %c16_i32 dim 1 : vector<8x512xf32>, i32 -> vector<8x512xf32>
    %33 = arith.mulf %32, %11 : vector<8x512xf32>
    %c15_i32 = arith.constant 15 : i32
    %34 = tpu.dynamic_rotate %3 by %c15_i32 dim 1 : vector<8x512xf32>, i32 -> vector<8x512xf32>
    %35 = arith.mulf %34, %14 : vector<8x512xf32>
    %c1_i32 = arith.constant 1 : i32
    %36 = tpu.dynamic_rotate %3 by %c1_i32 dim 1 : vector<8x512xf32>, i32 -> vector<8x512xf32>
    %37 = arith.mulf %36, %17 : vector<8x512xf32>
    %c511_i32 = arith.constant 511 : i32
    %38 = tpu.dynamic_rotate %3 by %c511_i32 dim 1 : vector<8x512xf32>, i32 -> vector<8x512xf32>
    %39 = arith.mulf %38, %20 : vector<8x512xf32>
    %c497_i32 = arith.constant 497 : i32
    %40 = tpu.dynamic_rotate %3 by %c497_i32 dim 1 : vector<8x512xf32>, i32 -> vector<8x512xf32>
    %41 = arith.mulf %40, %23 : vector<8x512xf32>
    %c496_i32 = arith.constant 496 : i32
    %42 = tpu.dynamic_rotate %3 by %c496_i32 dim 1 : vector<8x512xf32>, i32 -> vector<8x512xf32>
    %43 = arith.mulf %42, %26 : vector<8x512xf32>
    %c495_i32 = arith.constant 495 : i32
    %44 = tpu.dynamic_rotate %3 by %c495_i32 dim 1 : vector<8x512xf32>, i32 -> vector<8x512xf32>
    %45 = arith.mulf %44, %29 : vector<8x512xf32>
    %46 = tpu.concatenate %31, %33, %35, %37, %3, %39, %41, %43, %45 in 0 : vector<8x512xf32>, vector<8x512xf32>, vector<8x512xf32>, vector<8x512xf32>, vector<8x512xf32>, vector<8x512xf32>, vector<8x512xf32>, vector<8x512xf32>, vector<8x512xf32> -> vector<72x512xf32>
    %47 = arith.truncf %46 : vector<72x512xf32> to vector<72x512xbf16>
    %cst = arith.constant dense<0.000000e+00> : vector<8x512xf32>
    %48 = tpu.matmul %4, %47, %cst {dimension_numbers = #tpu.dot_dimension_numbers<[1], [0], [0], [1], [0, 0, 1, 1], [], []>} : vector<8x72xbf16>, vector<72x512xbf16>, vector<8x512xf32> -> vector<8x512xf32>
    %49 = vector.broadcast %5 : vector<8x1xf32> to vector<8x512xf32>
    %50 = arith.addf %48, %49 : vector<8x512xf32>
    %c0_11 = arith.constant 0 : index
    %c0_12 = arith.constant 0 : index
    %51 = vector.load %arg6[%c0_11, %c0_12] : memref<8x72xbf16, #tpu.memory_space<vmem>>, vector<8x72xbf16>
    %c0_13 = arith.constant 0 : index
    %c0_14 = arith.constant 0 : index
    %52 = vector.load %arg7[%c0_13, %c0_14] : memref<8x1xf32, #tpu.memory_space<vmem>>, vector<8x1xf32>
    %cst_15 = arith.constant 0.000000e+00 : f32
    %53 = vector.broadcast %cst_15 : f32 to vector<8x512xf32>
    %54 = arith.maximumf %50, %53 : vector<8x512xf32>
    %c17_i32_16 = arith.constant 17 : i32
    %55 = tpu.dynamic_rotate %54 by %c17_i32_16 dim 1 : vector<8x512xf32>, i32 -> vector<8x512xf32>
    %56 = arith.mulf %55, %8 : vector<8x512xf32>
    %c16_i32_17 = arith.constant 16 : i32
    %57 = tpu.dynamic_rotate %54 by %c16_i32_17 dim 1 : vector<8x512xf32>, i32 -> vector<8x512xf32>
    %58 = arith.mulf %57, %11 : vector<8x512xf32>
    %c15_i32_18 = arith.constant 15 : i32
    %59 = tpu.dynamic_rotate %54 by %c15_i32_18 dim 1 : vector<8x512xf32>, i32 -> vector<8x512xf32>
    %60 = arith.mulf %59, %14 : vector<8x512xf32>
    %c1_i32_19 = arith.constant 1 : i32
    %61 = tpu.dynamic_rotate %54 by %c1_i32_19 dim 1 : vector<8x512xf32>, i32 -> vector<8x512xf32>
    %62 = arith.mulf %61, %17 : vector<8x512xf32>
    %c511_i32_20 = arith.constant 511 : i32
    %63 = tpu.dynamic_rotate %54 by %c511_i32_20 dim 1 : vector<8x512xf32>, i32 -> vector<8x512xf32>
    %64 = arith.mulf %63, %20 : vector<8x512xf32>
    %c497_i32_21 = arith.constant 497 : i32
    %65 = tpu.dynamic_rotate %54 by %c497_i32_21 dim 1 : vector<8x512xf32>, i32 -> vector<8x512xf32>
    %66 = arith.mulf %65, %23 : vector<8x512xf32>
    %c496_i32_22 = arith.constant 496 : i32
    %67 = tpu.dynamic_rotate %54 by %c496_i32_22 dim 1 : vector<8x512xf32>, i32 -> vector<8x512xf32>
    %68 = arith.mulf %67, %26 : vector<8x512xf32>
    %c495_i32_23 = arith.constant 495 : i32
    %69 = tpu.dynamic_rotate %54 by %c495_i32_23 dim 1 : vector<8x512xf32>, i32 -> vector<8x512xf32>
    %70 = arith.mulf %69, %29 : vector<8x512xf32>
    %71 = tpu.concatenate %56, %58, %60, %62, %54, %64, %66, %68, %70 in 0 : vector<8x512xf32>, vector<8x512xf32>, vector<8x512xf32>, vector<8x512xf32>, vector<8x512xf32>, vector<8x512xf32>, vector<8x512xf32>, vector<8x512xf32>, vector<8x512xf32> -> vector<72x512xf32>
    %72 = arith.truncf %71 : vector<72x512xf32> to vector<72x512xbf16>
    %cst_24 = arith.constant dense<0.000000e+00> : vector<8x512xf32>
    %73 = tpu.matmul %51, %72, %cst_24 {dimension_numbers = #tpu.dot_dimension_numbers<[1], [0], [0], [1], [0, 0, 1, 1], [], []>} : vector<8x72xbf16>, vector<72x512xbf16>, vector<8x512xf32> -> vector<8x512xf32>
    %74 = vector.broadcast %52 : vector<8x1xf32> to vector<8x512xf32>
    %75 = arith.addf %73, %74 : vector<8x512xf32>
    %c0_25 = arith.constant 0 : index
    %c0_26 = arith.constant 0 : index
    %76 = vector.load %arg8[%c0_25, %c0_26] : memref<8x8xbf16, #tpu.memory_space<vmem>>, vector<8x8xbf16>
    %c0_27 = arith.constant 0 : index
    %c0_28 = arith.constant 0 : index
    %77 = vector.load %arg9[%c0_27, %c0_28] : memref<8x1xf32, #tpu.memory_space<vmem>>, vector<8x1xf32>
    %78 = arith.truncf %54 : vector<8x512xf32> to vector<8x512xbf16>
    %cst_29 = arith.constant dense<0.000000e+00> : vector<8x512xf32>
    %79 = tpu.matmul %76, %78, %cst_29 {dimension_numbers = #tpu.dot_dimension_numbers<[1], [0], [0], [1], [0, 0, 1, 1], [], []>} : vector<8x8xbf16>, vector<8x512xbf16>, vector<8x512xf32> -> vector<8x512xf32>
    %80 = vector.broadcast %77 : vector<8x1xf32> to vector<8x512xf32>
    %81 = arith.addf %79, %80 : vector<8x512xf32>
    %82 = arith.addf %81, %75 : vector<8x512xf32>
    %c17_i32_30 = arith.constant 17 : i32
    %83 = tpu.dynamic_rotate %75 by %c17_i32_30 dim 1 : vector<8x512xf32>, i32 -> vector<8x512xf32>
    %84 = arith.mulf %83, %8 : vector<8x512xf32>
    %c16_i32_31 = arith.constant 16 : i32
    %85 = tpu.dynamic_rotate %75 by %c16_i32_31 dim 1 : vector<8x512xf32>, i32 -> vector<8x512xf32>
    %86 = arith.mulf %85, %11 : vector<8x512xf32>
    %87 = arith.addf %84, %86 : vector<8x512xf32>
    %c15_i32_32 = arith.constant 15 : i32
    %88 = tpu.dynamic_rotate %75 by %c15_i32_32 dim 1 : vector<8x512xf32>, i32 -> vector<8x512xf32>
    %89 = arith.mulf %88, %14 : vector<8x512xf32>
    %90 = arith.addf %87, %89 : vector<8x512xf32>
    %c1_i32_33 = arith.constant 1 : i32
    %91 = tpu.dynamic_rotate %75 by %c1_i32_33 dim 1 : vector<8x512xf32>, i32 -> vector<8x512xf32>
    %92 = arith.mulf %91, %17 : vector<8x512xf32>
    %93 = arith.addf %90, %92 : vector<8x512xf32>
    %94 = arith.addf %93, %75 : vector<8x512xf32>
    %c511_i32_34 = arith.constant 511 : i32
    %95 = tpu.dynamic_rotate %75 by %c511_i32_34 dim 1 : vector<8x512xf32>, i32 -> vector<8x512xf32>
    %96 = arith.mulf %95, %20 : vector<8x512xf32>
    %97 = arith.addf %94, %96 : vector<8x512xf32>
    %c497_i32_35 = arith.constant 497 : i32
    %98 = tpu.dynamic_rotate %75 by %c497_i32_35 dim 1 : vector<8x512xf32>, i32 -> vector<8x512xf32>
    %99 = arith.mulf %98, %23 : vector<8x512xf32>
    %100 = arith.addf %97, %99 : vector<8x512xf32>
    %c496_i32_36 = arith.constant 496 : i32
    %101 = tpu.dynamic_rotate %75 by %c496_i32_36 dim 1 : vector<8x512xf32>, i32 -> vector<8x512xf32>
    %102 = arith.mulf %101, %26 : vector<8x512xf32>
    %103 = arith.addf %100, %102 : vector<8x512xf32>
    %c495_i32_37 = arith.constant 495 : i32
    %104 = tpu.dynamic_rotate %75 by %c495_i32_37 dim 1 : vector<8x512xf32>, i32 -> vector<8x512xf32>
    %105 = arith.mulf %104, %29 : vector<8x512xf32>
    %106 = arith.addf %103, %105 : vector<8x512xf32>
    %107 = vector.extract_strided_slice %0 {offsets = [9, 0], sizes = [1, 512], strides = [1, 1]} : vector<10x512xf32> to vector<1x512xf32>
    %108 = vector.broadcast %107 : vector<1x512xf32> to vector<8x512xf32>
    %109 = arith.mulf %106, %108 : vector<8x512xf32>
    %c0_38 = arith.constant 0 : index
    %c0_39 = arith.constant 0 : index
    %110 = vector.load %arg10[%c0_38, %c0_39] : memref<8x72xbf16, #tpu.memory_space<vmem>>, vector<8x72xbf16>
    %c0_40 = arith.constant 0 : index
    %c0_41 = arith.constant 0 : index
    %111 = vector.load %arg11[%c0_40, %c0_41] : memref<8x1xf32, #tpu.memory_space<vmem>>, vector<8x1xf32>
    %cst_42 = arith.constant 0.000000e+00 : f32
    %112 = vector.broadcast %cst_42 : f32 to vector<8x512xf32>
    %113 = arith.maximumf %82, %112 : vector<8x512xf32>
    %c17_i32_43 = arith.constant 17 : i32
    %114 = tpu.dynamic_rotate %113 by %c17_i32_43 dim 1 : vector<8x512xf32>, i32 -> vector<8x512xf32>
    %115 = arith.mulf %114, %8 : vector<8x512xf32>
    %c16_i32_44 = arith.constant 16 : i32
    %116 = tpu.dynamic_rotate %113 by %c16_i32_44 dim 1 : vector<8x512xf32>, i32 -> vector<8x512xf32>
    %117 = arith.mulf %116, %11 : vector<8x512xf32>
    %c15_i32_45 = arith.constant 15 : i32
    %118 = tpu.dynamic_rotate %113 by %c15_i32_45 dim 1 : vector<8x512xf32>, i32 -> vector<8x512xf32>
    %119 = arith.mulf %118, %14 : vector<8x512xf32>
    %c1_i32_46 = arith.constant 1 : i32
    %120 = tpu.dynamic_rotate %113 by %c1_i32_46 dim 1 : vector<8x512xf32>, i32 -> vector<8x512xf32>
    %121 = arith.mulf %120, %17 : vector<8x512xf32>
    %c511_i32_47 = arith.constant 511 : i32
    %122 = tpu.dynamic_rotate %113 by %c511_i32_47 dim 1 : vector<8x512xf32>, i32 -> vector<8x512xf32>
    %123 = arith.mulf %122, %20 : vector<8x512xf32>
    %c497_i32_48 = arith.constant 497 : i32
    %124 = tpu.dynamic_rotate %113 by %c497_i32_48 dim 1 : vector<8x512xf32>, i32 -> vector<8x512xf32>
    %125 = arith.mulf %124, %23 : vector<8x512xf32>
    %c496_i32_49 = arith.constant 496 : i32
    %126 = tpu.dynamic_rotate %113 by %c496_i32_49 dim 1 : vector<8x512xf32>, i32 -> vector<8x512xf32>
    %127 = arith.mulf %126, %26 : vector<8x512xf32>
    %c495_i32_50 = arith.constant 495 : i32
    %128 = tpu.dynamic_rotate %113 by %c495_i32_50 dim 1 : vector<8x512xf32>, i32 -> vector<8x512xf32>
    %129 = arith.mulf %128, %29 : vector<8x512xf32>
    %130 = tpu.concatenate %115, %117, %119, %121, %113, %123, %125, %127, %129 in 0 : vector<8x512xf32>, vector<8x512xf32>, vector<8x512xf32>, vector<8x512xf32>, vector<8x512xf32>, vector<8x512xf32>, vector<8x512xf32>, vector<8x512xf32>, vector<8x512xf32> -> vector<72x512xf32>
    %131 = arith.truncf %130 : vector<72x512xf32> to vector<72x512xbf16>
    %cst_51 = arith.constant dense<0.000000e+00> : vector<8x512xf32>
    %132 = tpu.matmul %110, %131, %cst_51 {dimension_numbers = #tpu.dot_dimension_numbers<[1], [0], [0], [1], [0, 0, 1, 1], [], []>} : vector<8x72xbf16>, vector<72x512xbf16>, vector<8x512xf32> -> vector<8x512xf32>
    %133 = vector.broadcast %111 : vector<8x1xf32> to vector<8x512xf32>
    %134 = arith.addf %132, %133 : vector<8x512xf32>
    %135 = arith.addf %109, %134 : vector<8x512xf32>
    %c0_52 = arith.constant 0 : index
    %c0_53 = arith.constant 0 : index
    %136 = vector.load %arg12[%c0_52, %c0_53] : memref<8x72xbf16, #tpu.memory_space<vmem>>, vector<8x72xbf16>
    %c0_54 = arith.constant 0 : index
    %c0_55 = arith.constant 0 : index
    %137 = vector.load %arg13[%c0_54, %c0_55] : memref<8x1xf32, #tpu.memory_space<vmem>>, vector<8x1xf32>
    %c0_56 = arith.constant 0 : index
    %c0_57 = arith.constant 0 : index
    %138 = vector.load %arg14[%c0_56, %c0_57] : memref<8x72xbf16, #tpu.memory_space<vmem>>, vector<8x72xbf16>
    %c0_58 = arith.constant 0 : index
    %c0_59 = arith.constant 0 : index
    %139 = vector.load %arg15[%c0_58, %c0_59] : memref<8x1xf32, #tpu.memory_space<vmem>>, vector<8x1xf32>
    %c0_60 = arith.constant 0 : index
    %c0_61 = arith.constant 0 : index
    %140 = vector.load %arg16[%c0_60, %c0_61] : memref<8x8xbf16, #tpu.memory_space<vmem>>, vector<8x8xbf16>
    %c0_62 = arith.constant 0 : index
    %c0_63 = arith.constant 0 : index
    %141 = vector.load %arg17[%c0_62, %c0_63] : memref<512x128xbf16, #tpu.memory_space<vmem>>, vector<512x128xbf16>
    %c0_64 = arith.constant 0 : index
    %c0_65 = arith.constant 0 : index
    %142 = vector.load %arg18[%c0_64, %c0_65] : memref<512x128xbf16, #tpu.memory_space<vmem>>, vector<512x128xbf16>
    %cst_66 = arith.constant 0.000000e+00 : f32
    %143 = vector.broadcast %cst_66 : f32 to vector<8x512xf32>
    %144 = arith.maximumf %135, %143 : vector<8x512xf32>
    %c17_i32_67 = arith.constant 17 : i32
    %145 = tpu.dynamic_rotate %144 by %c17_i32_67 dim 1 : vector<8x512xf32>, i32 -> vector<8x512xf32>
    %146 = arith.mulf %145, %8 : vector<8x512xf32>
    %c16_i32_68 = arith.constant 16 : i32
    %147 = tpu.dynamic_rotate %144 by %c16_i32_68 dim 1 : vector<8x512xf32>, i32 -> vector<8x512xf32>
    %148 = arith.mulf %147, %11 : vector<8x512xf32>
    %c15_i32_69 = arith.constant 15 : i32
    %149 = tpu.dynamic_rotate %144 by %c15_i32_69 dim 1 : vector<8x512xf32>, i32 -> vector<8x512xf32>
    %150 = arith.mulf %149, %14 : vector<8x512xf32>
    %c1_i32_70 = arith.constant 1 : i32
    %151 = tpu.dynamic_rotate %144 by %c1_i32_70 dim 1 : vector<8x512xf32>, i32 -> vector<8x512xf32>
    %152 = arith.mulf %151, %17 : vector<8x512xf32>
    %c511_i32_71 = arith.constant 511 : i32
    %153 = tpu.dynamic_rotate %144 by %c511_i32_71 dim 1 : vector<8x512xf32>, i32 -> vector<8x512xf32>
    %154 = arith.mulf %153, %20 : vector<8x512xf32>
    %c497_i32_72 = arith.constant 497 : i32
    %155 = tpu.dynamic_rotate %144 by %c497_i32_72 dim 1 : vector<8x512xf32>, i32 -> vector<8x512xf32>
    %156 = arith.mulf %155, %23 : vector<8x512xf32>
    %c496_i32_73 = arith.constant 496 : i32
    %157 = tpu.dynamic_rotate %144 by %c496_i32_73 dim 1 : vector<8x512xf32>, i32 -> vector<8x512xf32>
    %158 = arith.mulf %157, %26 : vector<8x512xf32>
    %c495_i32_74 = arith.constant 495 : i32
    %159 = tpu.dynamic_rotate %144 by %c495_i32_74 dim 1 : vector<8x512xf32>, i32 -> vector<8x512xf32>
    %160 = arith.mulf %159, %29 : vector<8x512xf32>
    %161 = tpu.concatenate %146, %148, %150, %152, %144, %154, %156, %158, %160 in 0 : vector<8x512xf32>, vector<8x512xf32>, vector<8x512xf32>, vector<8x512xf32>, vector<8x512xf32>, vector<8x512xf32>, vector<8x512xf32>, vector<8x512xf32>, vector<8x512xf32> -> vector<72x512xf32>
    %162 = arith.truncf %161 : vector<72x512xf32> to vector<72x512xbf16>
    %cst_75 = arith.constant dense<0.000000e+00> : vector<8x512xf32>
    %163 = tpu.matmul %136, %162, %cst_75 {dimension_numbers = #tpu.dot_dimension_numbers<[1], [0], [0], [1], [0, 0, 1, 1], [], []>} : vector<8x72xbf16>, vector<72x512xbf16>, vector<8x512xf32> -> vector<8x512xf32>
    %164 = arith.truncf %163 : vector<8x512xf32> to vector<8x512xbf16>
    %cst_76 = arith.constant dense<0.000000e+00> : vector<8x128xf32>
    %165 = tpu.matmul %164, %141, %cst_76 {dimension_numbers = #tpu.dot_dimension_numbers<[1], [0], [0], [1], [0, 0, 1, 1], [], []>} : vector<8x512xbf16>, vector<512x128xbf16>, vector<8x128xf32> -> vector<8x128xf32>
    %166 = vector.broadcast %137 : vector<8x1xf32> to vector<8x128xf32>
    %167 = arith.addf %165, %166 : vector<8x128xf32>
    %cst_77 = arith.constant 0.000000e+00 : f32
    %168 = vector.broadcast %cst_77 : f32 to vector<8x128xf32>
    %169 = arith.maximumf %167, %168 : vector<8x128xf32>
    %170 = vector.extract_strided_slice %1 {offsets = [0, 0], sizes = [1, 128], strides = [1, 1]} : vector<10x128xf32> to vector<1x128xf32>
    %171 = vector.shape_cast %170 : vector<1x128xf32> to vector<1x128xf32>
    %172 = vector.broadcast %171 : vector<1x128xf32> to vector<8x128xf32>
    %173 = vector.extract_strided_slice %1 {offsets = [1, 0], sizes = [1, 128], strides = [1, 1]} : vector<10x128xf32> to vector<1x128xf32>
    %174 = vector.shape_cast %173 : vector<1x128xf32> to vector<1x128xf32>
    %175 = vector.broadcast %174 : vector<1x128xf32> to vector<8x128xf32>
    %176 = vector.extract_strided_slice %1 {offsets = [2, 0], sizes = [1, 128], strides = [1, 1]} : vector<10x128xf32> to vector<1x128xf32>
    %177 = vector.shape_cast %176 : vector<1x128xf32> to vector<1x128xf32>
    %178 = vector.broadcast %177 : vector<1x128xf32> to vector<8x128xf32>
    %179 = vector.extract_strided_slice %1 {offsets = [3, 0], sizes = [1, 128], strides = [1, 1]} : vector<10x128xf32> to vector<1x128xf32>
    %180 = vector.shape_cast %179 : vector<1x128xf32> to vector<1x128xf32>
    %181 = vector.broadcast %180 : vector<1x128xf32> to vector<8x128xf32>
    %182 = vector.extract_strided_slice %1 {offsets = [5, 0], sizes = [1, 128], strides = [1, 1]} : vector<10x128xf32> to vector<1x128xf32>
    %183 = vector.shape_cast %182 : vector<1x128xf32> to vector<1x128xf32>
    %184 = vector.broadcast %183 : vector<1x128xf32> to vector<8x128xf32>
    %185 = vector.extract_strided_slice %1 {offsets = [6, 0], sizes = [1, 128], strides = [1, 1]} : vector<10x128xf32> to vector<1x128xf32>
    %186 = vector.shape_cast %185 : vector<1x128xf32> to vector<1x128xf32>
    %187 = vector.broadcast %186 : vector<1x128xf32> to vector<8x128xf32>
    %188 = vector.extract_strided_slice %1 {offsets = [7, 0], sizes = [1, 128], strides = [1, 1]} : vector<10x128xf32> to vector<1x128xf32>
    %189 = vector.shape_cast %188 : vector<1x128xf32> to vector<1x128xf32>
    %190 = vector.broadcast %189 : vector<1x128xf32> to vector<8x128xf32>
    %191 = vector.extract_strided_slice %1 {offsets = [8, 0], sizes = [1, 128], strides = [1, 1]} : vector<10x128xf32> to vector<1x128xf32>
    %192 = vector.shape_cast %191 : vector<1x128xf32> to vector<1x128xf32>
    %193 = vector.broadcast %192 : vector<1x128xf32> to vector<8x128xf32>
    %c9_i32 = arith.constant 9 : i32
    %194 = tpu.dynamic_rotate %169 by %c9_i32 dim 1 : vector<8x128xf32>, i32 -> vector<8x128xf32>
    %195 = arith.mulf %194, %172 : vector<8x128xf32>
    %c8_i32 = arith.constant 8 : i32
    %196 = tpu.dynamic_rotate %169 by %c8_i32 dim 1 : vector<8x128xf32>, i32 -> vector<8x128xf32>
    %197 = arith.mulf %196, %175 : vector<8x128xf32>
    %c7_i32 = arith.constant 7 : i32
    %198 = tpu.dynamic_rotate %169 by %c7_i32 dim 1 : vector<8x128xf32>, i32 -> vector<8x128xf32>
    %199 = arith.mulf %198, %178 : vector<8x128xf32>
    %c1_i32_78 = arith.constant 1 : i32
    %200 = tpu.dynamic_rotate %169 by %c1_i32_78 dim 1 : vector<8x128xf32>, i32 -> vector<8x128xf32>
    %201 = arith.mulf %200, %181 : vector<8x128xf32>
    %c127_i32 = arith.constant 127 : i32
    %202 = tpu.dynamic_rotate %169 by %c127_i32 dim 1 : vector<8x128xf32>, i32 -> vector<8x128xf32>
    %203 = arith.mulf %202, %184 : vector<8x128xf32>
    %c121_i32 = arith.constant 121 : i32
    %204 = tpu.dynamic_rotate %169 by %c121_i32 dim 1 : vector<8x128xf32>, i32 -> vector<8x128xf32>
    %205 = arith.mulf %204, %187 : vector<8x128xf32>
    %c120_i32 = arith.constant 120 : i32
    %206 = tpu.dynamic_rotate %169 by %c120_i32 dim 1 : vector<8x128xf32>, i32 -> vector<8x128xf32>
    %207 = arith.mulf %206, %190 : vector<8x128xf32>
    %c119_i32 = arith.constant 119 : i32
    %208 = tpu.dynamic_rotate %169 by %c119_i32 dim 1 : vector<8x128xf32>, i32 -> vector<8x128xf32>
    %209 = arith.mulf %208, %193 : vector<8x128xf32>
    %210 = tpu.concatenate %195, %197, %199, %201, %169, %203, %205, %207, %209 in 0 : vector<8x128xf32>, vector<8x128xf32>, vector<8x128xf32>, vector<8x128xf32>, vector<8x128xf32>, vector<8x128xf32>, vector<8x128xf32>, vector<8x128xf32>, vector<8x128xf32> -> vector<72x128xf32>
    %211 = arith.truncf %210 : vector<72x128xf32> to vector<72x128xbf16>
    %cst_79 = arith.constant dense<0.000000e+00> : vector<8x128xf32>
    %212 = tpu.matmul %138, %211, %cst_79 {dimension_numbers = #tpu.dot_dimension_numbers<[1], [0], [0], [1], [0, 0, 1, 1], [], []>} : vector<8x72xbf16>, vector<72x128xbf16>, vector<8x128xf32> -> vector<8x128xf32>
    %213 = vector.broadcast %139 : vector<8x1xf32> to vector<8x128xf32>
    %214 = arith.addf %212, %213 : vector<8x128xf32>
    %215 = arith.truncf %135 : vector<8x512xf32> to vector<8x512xbf16>
    %cst_80 = arith.constant dense<0.000000e+00> : vector<8x128xf32>
    %216 = tpu.matmul %215, %142, %cst_80 {dimension_numbers = #tpu.dot_dimension_numbers<[1], [0], [0], [1], [0, 0, 1, 1], [], []>} : vector<8x512xbf16>, vector<512x128xbf16>, vector<8x128xf32> -> vector<8x128xf32>
    %217 = arith.truncf %216 : vector<8x128xf32> to vector<8x128xbf16>
    %cst_81 = arith.constant dense<0.000000e+00> : vector<8x128xf32>
    %218 = tpu.matmul %140, %217, %cst_81 {dimension_numbers = #tpu.dot_dimension_numbers<[1], [0], [0], [1], [0, 0, 1, 1], [], []>} : vector<8x8xbf16>, vector<8x128xbf16>, vector<8x128xf32> -> vector<8x128xf32>
    %219 = arith.addf %218, %214 : vector<8x128xf32>
    %c0_82 = arith.constant 0 : index
    %c0_83 = arith.constant 0 : index
    %220 = vector.load %arg19[%c0_82, %c0_83] : memref<8x72xbf16, #tpu.memory_space<vmem>>, vector<8x72xbf16>
    %c0_84 = arith.constant 0 : index
    %c0_85 = arith.constant 0 : index
    %221 = vector.load %arg20[%c0_84, %c0_85] : memref<8x1xf32, #tpu.memory_space<vmem>>, vector<8x1xf32>
    %cst_86 = arith.constant 0.000000e+00 : f32
    %222 = vector.broadcast %cst_86 : f32 to vector<8x128xf32>
    %223 = arith.maximumf %219, %222 : vector<8x128xf32>
    %c9_i32_87 = arith.constant 9 : i32
    %224 = tpu.dynamic_rotate %223 by %c9_i32_87 dim 1 : vector<8x128xf32>, i32 -> vector<8x128xf32>
    %225 = arith.mulf %224, %172 : vector<8x128xf32>
    %c8_i32_88 = arith.constant 8 : i32
    %226 = tpu.dynamic_rotate %223 by %c8_i32_88 dim 1 : vector<8x128xf32>, i32 -> vector<8x128xf32>
    %227 = arith.mulf %226, %175 : vector<8x128xf32>
    %c7_i32_89 = arith.constant 7 : i32
    %228 = tpu.dynamic_rotate %223 by %c7_i32_89 dim 1 : vector<8x128xf32>, i32 -> vector<8x128xf32>
    %229 = arith.mulf %228, %178 : vector<8x128xf32>
    %c1_i32_90 = arith.constant 1 : i32
    %230 = tpu.dynamic_rotate %223 by %c1_i32_90 dim 1 : vector<8x128xf32>, i32 -> vector<8x128xf32>
    %231 = arith.mulf %230, %181 : vector<8x128xf32>
    %c127_i32_91 = arith.constant 127 : i32
    %232 = tpu.dynamic_rotate %223 by %c127_i32_91 dim 1 : vector<8x128xf32>, i32 -> vector<8x128xf32>
    %233 = arith.mulf %232, %184 : vector<8x128xf32>
    %c121_i32_92 = arith.constant 121 : i32
    %234 = tpu.dynamic_rotate %223 by %c121_i32_92 dim 1 : vector<8x128xf32>, i32 -> vector<8x128xf32>
    %235 = arith.mulf %234, %187 : vector<8x128xf32>
    %c120_i32_93 = arith.constant 120 : i32
    %236 = tpu.dynamic_rotate %223 by %c120_i32_93 dim 1 : vector<8x128xf32>, i32 -> vector<8x128xf32>
    %237 = arith.mulf %236, %190 : vector<8x128xf32>
    %c119_i32_94 = arith.constant 119 : i32
    %238 = tpu.dynamic_rotate %223 by %c119_i32_94 dim 1 : vector<8x128xf32>, i32 -> vector<8x128xf32>
    %239 = arith.mulf %238, %193 : vector<8x128xf32>
    %240 = tpu.concatenate %225, %227, %229, %231, %223, %233, %235, %237, %239 in 0 : vector<8x128xf32>, vector<8x128xf32>, vector<8x128xf32>, vector<8x128xf32>, vector<8x128xf32>, vector<8x128xf32>, vector<8x128xf32>, vector<8x128xf32>, vector<8x128xf32> -> vector<72x128xf32>
    %241 = arith.truncf %240 : vector<72x128xf32> to vector<72x128xbf16>
    %cst_95 = arith.constant dense<0.000000e+00> : vector<8x128xf32>
    %242 = tpu.matmul %220, %241, %cst_95 {dimension_numbers = #tpu.dot_dimension_numbers<[1], [0], [0], [1], [0, 0, 1, 1], [], []>} : vector<8x72xbf16>, vector<72x128xbf16>, vector<8x128xf32> -> vector<8x128xf32>
    %243 = vector.broadcast %221 : vector<8x1xf32> to vector<8x128xf32>
    %244 = arith.addf %242, %243 : vector<8x128xf32>
    %c0_96 = arith.constant 0 : index
    %c0_97 = arith.constant 0 : index
    %245 = vector.load %arg21[%c0_96, %c0_97] : memref<8x8xbf16, #tpu.memory_space<vmem>>, vector<8x8xbf16>
    %c0_98 = arith.constant 0 : index
    %c0_99 = arith.constant 0 : index
    %246 = vector.load %arg22[%c0_98, %c0_99] : memref<8x1xf32, #tpu.memory_space<vmem>>, vector<8x1xf32>
    %247 = arith.truncf %223 : vector<8x128xf32> to vector<8x128xbf16>
    %cst_100 = arith.constant dense<0.000000e+00> : vector<8x128xf32>
    %248 = tpu.matmul %245, %247, %cst_100 {dimension_numbers = #tpu.dot_dimension_numbers<[1], [0], [0], [1], [0, 0, 1, 1], [], []>} : vector<8x8xbf16>, vector<8x128xbf16>, vector<8x128xf32> -> vector<8x128xf32>
    %249 = vector.broadcast %246 : vector<8x1xf32> to vector<8x128xf32>
    %250 = arith.addf %248, %249 : vector<8x128xf32>
    %251 = arith.addf %250, %244 : vector<8x128xf32>
    %c9_i32_101 = arith.constant 9 : i32
    %252 = tpu.dynamic_rotate %244 by %c9_i32_101 dim 1 : vector<8x128xf32>, i32 -> vector<8x128xf32>
    %253 = arith.mulf %252, %172 : vector<8x128xf32>
    %c8_i32_102 = arith.constant 8 : i32
    %254 = tpu.dynamic_rotate %244 by %c8_i32_102 dim 1 : vector<8x128xf32>, i32 -> vector<8x128xf32>
    %255 = arith.mulf %254, %175 : vector<8x128xf32>
    %256 = arith.addf %253, %255 : vector<8x128xf32>
    %c7_i32_103 = arith.constant 7 : i32
    %257 = tpu.dynamic_rotate %244 by %c7_i32_103 dim 1 : vector<8x128xf32>, i32 -> vector<8x128xf32>
    %258 = arith.mulf %257, %178 : vector<8x128xf32>
    %259 = arith.addf %256, %258 : vector<8x128xf32>
    %c1_i32_104 = arith.constant 1 : i32
    %260 = tpu.dynamic_rotate %244 by %c1_i32_104 dim 1 : vector<8x128xf32>, i32 -> vector<8x128xf32>
    %261 = arith.mulf %260, %181 : vector<8x128xf32>
    %262 = arith.addf %259, %261 : vector<8x128xf32>
    %263 = arith.addf %262, %244 : vector<8x128xf32>
    %c127_i32_105 = arith.constant 127 : i32
    %264 = tpu.dynamic_rotate %244 by %c127_i32_105 dim 1 : vector<8x128xf32>, i32 -> vector<8x128xf32>
    %265 = arith.mulf %264, %184 : vector<8x128xf32>
    %266 = arith.addf %263, %265 : vector<8x128xf32>
    %c121_i32_106 = arith.constant 121 : i32
    %267 = tpu.dynamic_rotate %244 by %c121_i32_106 dim 1 : vector<8x128xf32>, i32 -> vector<8x128xf32>
    %268 = arith.mulf %267, %187 : vector<8x128xf32>
    %269 = arith.addf %266, %268 : vector<8x128xf32>
    %c120_i32_107 = arith.constant 120 : i32
    %270 = tpu.dynamic_rotate %244 by %c120_i32_107 dim 1 : vector<8x128xf32>, i32 -> vector<8x128xf32>
    %271 = arith.mulf %270, %190 : vector<8x128xf32>
    %272 = arith.addf %269, %271 : vector<8x128xf32>
    %c119_i32_108 = arith.constant 119 : i32
    %273 = tpu.dynamic_rotate %244 by %c119_i32_108 dim 1 : vector<8x128xf32>, i32 -> vector<8x128xf32>
    %274 = arith.mulf %273, %193 : vector<8x128xf32>
    %275 = arith.addf %272, %274 : vector<8x128xf32>
    %276 = vector.extract_strided_slice %1 {offsets = [9, 0], sizes = [1, 128], strides = [1, 1]} : vector<10x128xf32> to vector<1x128xf32>
    %277 = vector.broadcast %276 : vector<1x128xf32> to vector<8x128xf32>
    %278 = arith.mulf %275, %277 : vector<8x128xf32>
    %c0_109 = arith.constant 0 : index
    %c0_110 = arith.constant 0 : index
    %279 = vector.load %arg23[%c0_109, %c0_110] : memref<8x72xbf16, #tpu.memory_space<vmem>>, vector<8x72xbf16>
    %c0_111 = arith.constant 0 : index
    %c0_112 = arith.constant 0 : index
    %280 = vector.load %arg24[%c0_111, %c0_112] : memref<8x1xf32, #tpu.memory_space<vmem>>, vector<8x1xf32>
    %cst_113 = arith.constant 0.000000e+00 : f32
    %281 = vector.broadcast %cst_113 : f32 to vector<8x128xf32>
    %282 = arith.maximumf %251, %281 : vector<8x128xf32>
    %c9_i32_114 = arith.constant 9 : i32
    %283 = tpu.dynamic_rotate %282 by %c9_i32_114 dim 1 : vector<8x128xf32>, i32 -> vector<8x128xf32>
    %284 = arith.mulf %283, %172 : vector<8x128xf32>
    %c8_i32_115 = arith.constant 8 : i32
    %285 = tpu.dynamic_rotate %282 by %c8_i32_115 dim 1 : vector<8x128xf32>, i32 -> vector<8x128xf32>
    %286 = arith.mulf %285, %175 : vector<8x128xf32>
    %c7_i32_116 = arith.constant 7 : i32
    %287 = tpu.dynamic_rotate %282 by %c7_i32_116 dim 1 : vector<8x128xf32>, i32 -> vector<8x128xf32>
    %288 = arith.mulf %287, %178 : vector<8x128xf32>
    %c1_i32_117 = arith.constant 1 : i32
    %289 = tpu.dynamic_rotate %282 by %c1_i32_117 dim 1 : vector<8x128xf32>, i32 -> vector<8x128xf32>
    %290 = arith.mulf %289, %181 : vector<8x128xf32>
    %c127_i32_118 = arith.constant 127 : i32
    %291 = tpu.dynamic_rotate %282 by %c127_i32_118 dim 1 : vector<8x128xf32>, i32 -> vector<8x128xf32>
    %292 = arith.mulf %291, %184 : vector<8x128xf32>
    %c121_i32_119 = arith.constant 121 : i32
    %293 = tpu.dynamic_rotate %282 by %c121_i32_119 dim 1 : vector<8x128xf32>, i32 -> vector<8x128xf32>
    %294 = arith.mulf %293, %187 : vector<8x128xf32>
    %c120_i32_120 = arith.constant 120 : i32
    %295 = tpu.dynamic_rotate %282 by %c120_i32_120 dim 1 : vector<8x128xf32>, i32 -> vector<8x128xf32>
    %296 = arith.mulf %295, %190 : vector<8x128xf32>
    %c119_i32_121 = arith.constant 119 : i32
    %297 = tpu.dynamic_rotate %282 by %c119_i32_121 dim 1 : vector<8x128xf32>, i32 -> vector<8x128xf32>
    %298 = arith.mulf %297, %193 : vector<8x128xf32>
    %299 = tpu.concatenate %284, %286, %288, %290, %282, %292, %294, %296, %298 in 0 : vector<8x128xf32>, vector<8x128xf32>, vector<8x128xf32>, vector<8x128xf32>, vector<8x128xf32>, vector<8x128xf32>, vector<8x128xf32>, vector<8x128xf32>, vector<8x128xf32> -> vector<72x128xf32>
    %300 = arith.truncf %299 : vector<72x128xf32> to vector<72x128xbf16>
    %cst_122 = arith.constant dense<0.000000e+00> : vector<8x128xf32>
    %301 = tpu.matmul %279, %300, %cst_122 {dimension_numbers = #tpu.dot_dimension_numbers<[1], [0], [0], [1], [0, 0, 1, 1], [], []>} : vector<8x72xbf16>, vector<72x128xbf16>, vector<8x128xf32> -> vector<8x128xf32>
    %302 = vector.broadcast %280 : vector<8x1xf32> to vector<8x128xf32>
    %303 = arith.addf %301, %302 : vector<8x128xf32>
    %304 = arith.addf %278, %303 : vector<8x128xf32>
    %c0_123 = arith.constant 0 : index
    %c0_124 = arith.constant 0 : index
    %305 = vector.load %arg25[%c0_123, %c0_124] : memref<16x72xbf16, #tpu.memory_space<vmem>>, vector<16x72xbf16>
    %c0_125 = arith.constant 0 : index
    %c0_126 = arith.constant 0 : index
    %306 = vector.load %arg26[%c0_125, %c0_126] : memref<16x1xf32, #tpu.memory_space<vmem>>, vector<16x1xf32>
    %c0_127 = arith.constant 0 : index
    %c0_128 = arith.constant 0 : index
    %307 = vector.load %arg27[%c0_127, %c0_128] : memref<16x144xbf16, #tpu.memory_space<vmem>>, vector<16x144xbf16>
    %c0_129 = arith.constant 0 : index
    %c0_130 = arith.constant 0 : index
    %308 = vector.load %arg28[%c0_129, %c0_130] : memref<16x1xf32, #tpu.memory_space<vmem>>, vector<16x1xf32>
    %c0_131 = arith.constant 0 : index
    %c0_132 = arith.constant 0 : index
    %309 = vector.load %arg29[%c0_131, %c0_132] : memref<16x8xbf16, #tpu.memory_space<vmem>>, vector<16x8xbf16>
    %c0_133 = arith.constant 0 : index
    %c0_134 = arith.constant 0 : index
    %310 = vector.load %arg30[%c0_133, %c0_134] : memref<128x32xbf16, #tpu.memory_space<vmem>>, vector<128x32xbf16>
    %c0_135 = arith.constant 0 : index
    %c0_136 = arith.constant 0 : index
    %311 = vector.load %arg31[%c0_135, %c0_136] : memref<128x32xbf16, #tpu.memory_space<vmem>>, vector<128x32xbf16>
    %cst_137 = arith.constant 0.000000e+00 : f32
    %312 = vector.broadcast %cst_137 : f32 to vector<8x128xf32>
    %313 = arith.maximumf %304, %312 : vector<8x128xf32>
    %c9_i32_138 = arith.constant 9 : i32
    %314 = tpu.dynamic_rotate %313 by %c9_i32_138 dim 1 : vector<8x128xf32>, i32 -> vector<8x128xf32>
    %315 = arith.mulf %314, %172 : vector<8x128xf32>
    %c8_i32_139 = arith.constant 8 : i32
    %316 = tpu.dynamic_rotate %313 by %c8_i32_139 dim 1 : vector<8x128xf32>, i32 -> vector<8x128xf32>
    %317 = arith.mulf %316, %175 : vector<8x128xf32>
    %c7_i32_140 = arith.constant 7 : i32
    %318 = tpu.dynamic_rotate %313 by %c7_i32_140 dim 1 : vector<8x128xf32>, i32 -> vector<8x128xf32>
    %319 = arith.mulf %318, %178 : vector<8x128xf32>
    %c1_i32_141 = arith.constant 1 : i32
    %320 = tpu.dynamic_rotate %313 by %c1_i32_141 dim 1 : vector<8x128xf32>, i32 -> vector<8x128xf32>
    %321 = arith.mulf %320, %181 : vector<8x128xf32>
    %c127_i32_142 = arith.constant 127 : i32
    %322 = tpu.dynamic_rotate %313 by %c127_i32_142 dim 1 : vector<8x128xf32>, i32 -> vector<8x128xf32>
    %323 = arith.mulf %322, %184 : vector<8x128xf32>
    %c121_i32_143 = arith.constant 121 : i32
    %324 = tpu.dynamic_rotate %313 by %c121_i32_143 dim 1 : vector<8x128xf32>, i32 -> vector<8x128xf32>
    %325 = arith.mulf %324, %187 : vector<8x128xf32>
    %c120_i32_144 = arith.constant 120 : i32
    %326 = tpu.dynamic_rotate %313 by %c120_i32_144 dim 1 : vector<8x128xf32>, i32 -> vector<8x128xf32>
    %327 = arith.mulf %326, %190 : vector<8x128xf32>
    %c119_i32_145 = arith.constant 119 : i32
    %328 = tpu.dynamic_rotate %313 by %c119_i32_145 dim 1 : vector<8x128xf32>, i32 -> vector<8x128xf32>
    %329 = arith.mulf %328, %193 : vector<8x128xf32>
    %330 = tpu.concatenate %315, %317, %319, %321, %313, %323, %325, %327, %329 in 0 : vector<8x128xf32>, vector<8x128xf32>, vector<8x128xf32>, vector<8x128xf32>, vector<8x128xf32>, vector<8x128xf32>, vector<8x128xf32>, vector<8x128xf32>, vector<8x128xf32> -> vector<72x128xf32>
    %331 = arith.truncf %330 : vector<72x128xf32> to vector<72x128xbf16>
    %cst_146 = arith.constant dense<0.000000e+00> : vector<16x128xf32>
    %332 = tpu.matmul %305, %331, %cst_146 {dimension_numbers = #tpu.dot_dimension_numbers<[1], [0], [0], [1], [0, 0, 1, 1], [], []>} : vector<16x72xbf16>, vector<72x128xbf16>, vector<16x128xf32> -> vector<16x128xf32>
    %333 = arith.truncf %332 : vector<16x128xf32> to vector<16x128xbf16>
    %cst_147 = arith.constant dense<0.000000e+00> : vector<16x32xf32>
    %334 = tpu.matmul %333, %310, %cst_147 {dimension_numbers = #tpu.dot_dimension_numbers<[1], [0], [0], [1], [0, 0, 1, 1], [], []>} : vector<16x128xbf16>, vector<128x32xbf16>, vector<16x32xf32> -> vector<16x32xf32>
    %335 = vector.broadcast %306 : vector<16x1xf32> to vector<16x32xf32>
    %336 = arith.addf %334, %335 : vector<16x32xf32>
    %cst_148 = arith.constant 0.000000e+00 : f32
    %337 = vector.broadcast %cst_148 : f32 to vector<16x32xf32>
    %338 = arith.maximumf %336, %337 : vector<16x32xf32>
    %339 = vector.extract_strided_slice %2 {offsets = [0, 0], sizes = [1, 32], strides = [1, 1]} : vector<10x32xf32> to vector<1x32xf32>
    %340 = vector.shape_cast %339 : vector<1x32xf32> to vector<1x32xf32>
    %341 = vector.broadcast %340 : vector<1x32xf32> to vector<16x32xf32>
    %342 = vector.extract_strided_slice %2 {offsets = [1, 0], sizes = [1, 32], strides = [1, 1]} : vector<10x32xf32> to vector<1x32xf32>
    %343 = vector.shape_cast %342 : vector<1x32xf32> to vector<1x32xf32>
    %344 = vector.broadcast %343 : vector<1x32xf32> to vector<16x32xf32>
    %345 = vector.extract_strided_slice %2 {offsets = [2, 0], sizes = [1, 32], strides = [1, 1]} : vector<10x32xf32> to vector<1x32xf32>
    %346 = vector.shape_cast %345 : vector<1x32xf32> to vector<1x32xf32>
    %347 = vector.broadcast %346 : vector<1x32xf32> to vector<16x32xf32>
    %348 = vector.extract_strided_slice %2 {offsets = [3, 0], sizes = [1, 32], strides = [1, 1]} : vector<10x32xf32> to vector<1x32xf32>
    %349 = vector.shape_cast %348 : vector<1x32xf32> to vector<1x32xf32>
    %350 = vector.broadcast %349 : vector<1x32xf32> to vector<16x32xf32>
    %351 = vector.extract_strided_slice %2 {offsets = [5, 0], sizes = [1, 32], strides = [1, 1]} : vector<10x32xf32> to vector<1x32xf32>
    %352 = vector.shape_cast %351 : vector<1x32xf32> to vector<1x32xf32>
    %353 = vector.broadcast %352 : vector<1x32xf32> to vector<16x32xf32>
    %354 = vector.extract_strided_slice %2 {offsets = [6, 0], sizes = [1, 32], strides = [1, 1]} : vector<10x32xf32> to vector<1x32xf32>
    %355 = vector.shape_cast %354 : vector<1x32xf32> to vector<1x32xf32>
    %356 = vector.broadcast %355 : vector<1x32xf32> to vector<16x32xf32>
    %357 = vector.extract_strided_slice %2 {offsets = [7, 0], sizes = [1, 32], strides = [1, 1]} : vector<10x32xf32> to vector<1x32xf32>
    %358 = vector.shape_cast %357 : vector<1x32xf32> to vector<1x32xf32>
    %359 = vector.broadcast %358 : vector<1x32xf32> to vector<16x32xf32>
    %360 = vector.extract_strided_slice %2 {offsets = [8, 0], sizes = [1, 32], strides = [1, 1]} : vector<10x32xf32> to vector<1x32xf32>
    %361 = vector.shape_cast %360 : vector<1x32xf32> to vector<1x32xf32>
    %362 = vector.broadcast %361 : vector<1x32xf32> to vector<16x32xf32>
    %c5_i32 = arith.constant 5 : i32
    %363 = tpu.dynamic_rotate %338 by %c5_i32 dim 1 : vector<16x32xf32>, i32 -> vector<16x32xf32>
    %364 = arith.mulf %363, %341 : vector<16x32xf32>
    %c4_i32 = arith.constant 4 : i32
    %365 = tpu.dynamic_rotate %338 by %c4_i32 dim 1 : vector<16x32xf32>, i32 -> vector<16x32xf32>
    %366 = arith.mulf %365, %344 : vector<16x32xf32>
    %c3_i32 = arith.constant 3 : i32
    %367 = tpu.dynamic_rotate %338 by %c3_i32 dim 1 : vector<16x32xf32>, i32 -> vector<16x32xf32>
    %368 = arith.mulf %367, %347 : vector<16x32xf32>
    %c1_i32_149 = arith.constant 1 : i32
    %369 = tpu.dynamic_rotate %338 by %c1_i32_149 dim 1 : vector<16x32xf32>, i32 -> vector<16x32xf32>
    %370 = arith.mulf %369, %350 : vector<16x32xf32>
    %c31_i32 = arith.constant 31 : i32
    %371 = tpu.dynamic_rotate %338 by %c31_i32 dim 1 : vector<16x32xf32>, i32 -> vector<16x32xf32>
    %372 = arith.mulf %371, %353 : vector<16x32xf32>
    %c29_i32 = arith.constant 29 : i32
    %373 = tpu.dynamic_rotate %338 by %c29_i32 dim 1 : vector<16x32xf32>, i32 -> vector<16x32xf32>
    %374 = arith.mulf %373, %356 : vector<16x32xf32>
    %c28_i32 = arith.constant 28 : i32
    %375 = tpu.dynamic_rotate %338 by %c28_i32 dim 1 : vector<16x32xf32>, i32 -> vector<16x32xf32>
    %376 = arith.mulf %375, %359 : vector<16x32xf32>
    %c27_i32 = arith.constant 27 : i32
    %377 = tpu.dynamic_rotate %338 by %c27_i32 dim 1 : vector<16x32xf32>, i32 -> vector<16x32xf32>
    %378 = arith.mulf %377, %362 : vector<16x32xf32>
    %379 = tpu.concatenate %364, %366, %368, %370, %338, %372, %374, %376, %378 in 0 : vector<16x32xf32>, vector<16x32xf32>, vector<16x32xf32>, vector<16x32xf32>, vector<16x32xf32>, vector<16x32xf32>, vector<16x32xf32>, vector<16x32xf32>, vector<16x32xf32> -> vector<144x32xf32>
    %380 = arith.truncf %379 : vector<144x32xf32> to vector<144x32xbf16>
    %cst_150 = arith.constant dense<0.000000e+00> : vector<16x32xf32>
    %381 = tpu.matmul %307, %380, %cst_150 {dimension_numbers = #tpu.dot_dimension_numbers<[1], [0], [0], [1], [0, 0, 1, 1], [], []>} : vector<16x144xbf16>, vector<144x32xbf16>, vector<16x32xf32> -> vector<16x32xf32>
    %382 = vector.broadcast %308 : vector<16x1xf32> to vector<16x32xf32>
    %383 = arith.addf %381, %382 : vector<16x32xf32>
    %384 = arith.truncf %304 : vector<8x128xf32> to vector<8x128xbf16>
    %cst_151 = arith.constant dense<0.000000e+00> : vector<8x32xf32>
    %385 = tpu.matmul %384, %311, %cst_151 {dimension_numbers = #tpu.dot_dimension_numbers<[1], [0], [0], [1], [0, 0, 1, 1], [], []>} : vector<8x128xbf16>, vector<128x32xbf16>, vector<8x32xf32> -> vector<8x32xf32>
    %386 = arith.truncf %385 : vector<8x32xf32> to vector<8x32xbf16>
    %cst_152 = arith.constant dense<0.000000e+00> : vector<16x32xf32>
    %387 = tpu.matmul %309, %386, %cst_152 {dimension_numbers = #tpu.dot_dimension_numbers<[1], [0], [0], [1], [0, 0, 1, 1], [], []>} : vector<16x8xbf16>, vector<8x32xbf16>, vector<16x32xf32> -> vector<16x32xf32>
    %388 = arith.addf %387, %383 : vector<16x32xf32>
    %c0_153 = arith.constant 0 : index
    %c0_154 = arith.constant 0 : index
    %389 = vector.load %arg32[%c0_153, %c0_154] : memref<16x144xbf16, #tpu.memory_space<vmem>>, vector<16x144xbf16>
    %c0_155 = arith.constant 0 : index
    %c0_156 = arith.constant 0 : index
    %390 = vector.load %arg33[%c0_155, %c0_156] : memref<16x1xf32, #tpu.memory_space<vmem>>, vector<16x1xf32>
    %cst_157 = arith.constant 0.000000e+00 : f32
    %391 = vector.broadcast %cst_157 : f32 to vector<16x32xf32>
    %392 = arith.maximumf %388, %391 : vector<16x32xf32>
    %c5_i32_158 = arith.constant 5 : i32
    %393 = tpu.dynamic_rotate %392 by %c5_i32_158 dim 1 : vector<16x32xf32>, i32 -> vector<16x32xf32>
    %394 = arith.mulf %393, %341 : vector<16x32xf32>
    %c4_i32_159 = arith.constant 4 : i32
    %395 = tpu.dynamic_rotate %392 by %c4_i32_159 dim 1 : vector<16x32xf32>, i32 -> vector<16x32xf32>
    %396 = arith.mulf %395, %344 : vector<16x32xf32>
    %c3_i32_160 = arith.constant 3 : i32
    %397 = tpu.dynamic_rotate %392 by %c3_i32_160 dim 1 : vector<16x32xf32>, i32 -> vector<16x32xf32>
    %398 = arith.mulf %397, %347 : vector<16x32xf32>
    %c1_i32_161 = arith.constant 1 : i32
    %399 = tpu.dynamic_rotate %392 by %c1_i32_161 dim 1 : vector<16x32xf32>, i32 -> vector<16x32xf32>
    %400 = arith.mulf %399, %350 : vector<16x32xf32>
    %c31_i32_162 = arith.constant 31 : i32
    %401 = tpu.dynamic_rotate %392 by %c31_i32_162 dim 1 : vector<16x32xf32>, i32 -> vector<16x32xf32>
    %402 = arith.mulf %401, %353 : vector<16x32xf32>
    %c29_i32_163 = arith.constant 29 : i32
    %403 = tpu.dynamic_rotate %392 by %c29_i32_163 dim 1 : vector<16x32xf32>, i32 -> vector<16x32xf32>
    %404 = arith.mulf %403, %356 : vector<16x32xf32>
    %c28_i32_164 = arith.constant 28 : i32
    %405 = tpu.dynamic_rotate %392 by %c28_i32_164 dim 1 : vector<16x32xf32>, i32 -> vector<16x32xf32>
    %406 = arith.mulf %405, %359 : vector<16x32xf32>
    %c27_i32_165 = arith.constant 27 : i32
    %407 = tpu.dynamic_rotate %392 by %c27_i32_165 dim 1 : vector<16x32xf32>, i32 -> vector<16x32xf32>
    %408 = arith.mulf %407, %362 : vector<16x32xf32>
    %409 = tpu.concatenate %394, %396, %398, %400, %392, %402, %404, %406, %408 in 0 : vector<16x32xf32>, vector<16x32xf32>, vector<16x32xf32>, vector<16x32xf32>, vector<16x32xf32>, vector<16x32xf32>, vector<16x32xf32>, vector<16x32xf32>, vector<16x32xf32> -> vector<144x32xf32>
    %410 = arith.truncf %409 : vector<144x32xf32> to vector<144x32xbf16>
    %cst_166 = arith.constant dense<0.000000e+00> : vector<16x32xf32>
    %411 = tpu.matmul %389, %410, %cst_166 {dimension_numbers = #tpu.dot_dimension_numbers<[1], [0], [0], [1], [0, 0, 1, 1], [], []>} : vector<16x144xbf16>, vector<144x32xbf16>, vector<16x32xf32> -> vector<16x32xf32>
    %412 = vector.broadcast %390 : vector<16x1xf32> to vector<16x32xf32>
    %413 = arith.addf %411, %412 : vector<16x32xf32>
    %c0_167 = arith.constant 0 : index
    %c0_168 = arith.constant 0 : index
    %414 = vector.load %arg34[%c0_167, %c0_168] : memref<16x16xbf16, #tpu.memory_space<vmem>>, vector<16x16xbf16>
    %c0_169 = arith.constant 0 : index
    %c0_170 = arith.constant 0 : index
    %415 = vector.load %arg35[%c0_169, %c0_170] : memref<16x1xf32, #tpu.memory_space<vmem>>, vector<16x1xf32>
    %416 = arith.truncf %392 : vector<16x32xf32> to vector<16x32xbf16>
    %cst_171 = arith.constant dense<0.000000e+00> : vector<16x32xf32>
    %417 = tpu.matmul %414, %416, %cst_171 {dimension_numbers = #tpu.dot_dimension_numbers<[1], [0], [0], [1], [0, 0, 1, 1], [], []>} : vector<16x16xbf16>, vector<16x32xbf16>, vector<16x32xf32> -> vector<16x32xf32>
    %418 = vector.broadcast %415 : vector<16x1xf32> to vector<16x32xf32>
    %419 = arith.addf %417, %418 : vector<16x32xf32>
    %420 = arith.addf %419, %413 : vector<16x32xf32>
    %c5_i32_172 = arith.constant 5 : i32
    %421 = tpu.dynamic_rotate %413 by %c5_i32_172 dim 1 : vector<16x32xf32>, i32 -> vector<16x32xf32>
    %422 = arith.mulf %421, %341 : vector<16x32xf32>
    %c4_i32_173 = arith.constant 4 : i32
    %423 = tpu.dynamic_rotate %413 by %c4_i32_173 dim 1 : vector<16x32xf32>, i32 -> vector<16x32xf32>
    %424 = arith.mulf %423, %344 : vector<16x32xf32>
    %425 = arith.addf %422, %424 : vector<16x32xf32>
    %c3_i32_174 = arith.constant 3 : i32
    %426 = tpu.dynamic_rotate %413 by %c3_i32_174 dim 1 : vector<16x32xf32>, i32 -> vector<16x32xf32>
    %427 = arith.mulf %426, %347 : vector<16x32xf32>
    %428 = arith.addf %425, %427 : vector<16x32xf32>
    %c1_i32_175 = arith.constant 1 : i32
    %429 = tpu.dynamic_rotate %413 by %c1_i32_175 dim 1 : vector<16x32xf32>, i32 -> vector<16x32xf32>
    %430 = arith.mulf %429, %350 : vector<16x32xf32>
    %431 = arith.addf %428, %430 : vector<16x32xf32>
    %432 = arith.addf %431, %413 : vector<16x32xf32>
    %c31_i32_176 = arith.constant 31 : i32
    %433 = tpu.dynamic_rotate %413 by %c31_i32_176 dim 1 : vector<16x32xf32>, i32 -> vector<16x32xf32>
    %434 = arith.mulf %433, %353 : vector<16x32xf32>
    %435 = arith.addf %432, %434 : vector<16x32xf32>
    %c29_i32_177 = arith.constant 29 : i32
    %436 = tpu.dynamic_rotate %413 by %c29_i32_177 dim 1 : vector<16x32xf32>, i32 -> vector<16x32xf32>
    %437 = arith.mulf %436, %356 : vector<16x32xf32>
    %438 = arith.addf %435, %437 : vector<16x32xf32>
    %c28_i32_178 = arith.constant 28 : i32
    %439 = tpu.dynamic_rotate %413 by %c28_i32_178 dim 1 : vector<16x32xf32>, i32 -> vector<16x32xf32>
    %440 = arith.mulf %439, %359 : vector<16x32xf32>
    %441 = arith.addf %438, %440 : vector<16x32xf32>
    %c27_i32_179 = arith.constant 27 : i32
    %442 = tpu.dynamic_rotate %413 by %c27_i32_179 dim 1 : vector<16x32xf32>, i32 -> vector<16x32xf32>
    %443 = arith.mulf %442, %362 : vector<16x32xf32>
    %444 = arith.addf %441, %443 : vector<16x32xf32>
    %445 = vector.extract_strided_slice %2 {offsets = [9, 0], sizes = [1, 32], strides = [1, 1]} : vector<10x32xf32> to vector<1x32xf32>
    %446 = vector.broadcast %445 : vector<1x32xf32> to vector<16x32xf32>
    %447 = arith.mulf %444, %446 : vector<16x32xf32>
    %c0_180 = arith.constant 0 : index
    %c0_181 = arith.constant 0 : index
    %448 = vector.load %arg36[%c0_180, %c0_181] : memref<16x144xbf16, #tpu.memory_space<vmem>>, vector<16x144xbf16>
    %c0_182 = arith.constant 0 : index
    %c0_183 = arith.constant 0 : index
    %449 = vector.load %arg37[%c0_182, %c0_183] : memref<16x1xf32, #tpu.memory_space<vmem>>, vector<16x1xf32>
    %cst_184 = arith.constant 0.000000e+00 : f32
    %450 = vector.broadcast %cst_184 : f32 to vector<16x32xf32>
    %451 = arith.maximumf %420, %450 : vector<16x32xf32>
    %c5_i32_185 = arith.constant 5 : i32
    %452 = tpu.dynamic_rotate %451 by %c5_i32_185 dim 1 : vector<16x32xf32>, i32 -> vector<16x32xf32>
    %453 = arith.mulf %452, %341 : vector<16x32xf32>
    %c4_i32_186 = arith.constant 4 : i32
    %454 = tpu.dynamic_rotate %451 by %c4_i32_186 dim 1 : vector<16x32xf32>, i32 -> vector<16x32xf32>
    %455 = arith.mulf %454, %344 : vector<16x32xf32>
    %c3_i32_187 = arith.constant 3 : i32
    %456 = tpu.dynamic_rotate %451 by %c3_i32_187 dim 1 : vector<16x32xf32>, i32 -> vector<16x32xf32>
    %457 = arith.mulf %456, %347 : vector<16x32xf32>
    %c1_i32_188 = arith.constant 1 : i32
    %458 = tpu.dynamic_rotate %451 by %c1_i32_188 dim 1 : vector<16x32xf32>, i32 -> vector<16x32xf32>
    %459 = arith.mulf %458, %350 : vector<16x32xf32>
    %c31_i32_189 = arith.constant 31 : i32
    %460 = tpu.dynamic_rotate %451 by %c31_i32_189 dim 1 : vector<16x32xf32>, i32 -> vector<16x32xf32>
    %461 = arith.mulf %460, %353 : vector<16x32xf32>
    %c29_i32_190 = arith.constant 29 : i32
    %462 = tpu.dynamic_rotate %451 by %c29_i32_190 dim 1 : vector<16x32xf32>, i32 -> vector<16x32xf32>
    %463 = arith.mulf %462, %356 : vector<16x32xf32>
    %c28_i32_191 = arith.constant 28 : i32
    %464 = tpu.dynamic_rotate %451 by %c28_i32_191 dim 1 : vector<16x32xf32>, i32 -> vector<16x32xf32>
    %465 = arith.mulf %464, %359 : vector<16x32xf32>
    %c27_i32_192 = arith.constant 27 : i32
    %466 = tpu.dynamic_rotate %451 by %c27_i32_192 dim 1 : vector<16x32xf32>, i32 -> vector<16x32xf32>
    %467 = arith.mulf %466, %362 : vector<16x32xf32>
    %468 = tpu.concatenate %453, %455, %457, %459, %451, %461, %463, %465, %467 in 0 : vector<16x32xf32>, vector<16x32xf32>, vector<16x32xf32>, vector<16x32xf32>, vector<16x32xf32>, vector<16x32xf32>, vector<16x32xf32>, vector<16x32xf32>, vector<16x32xf32> -> vector<144x32xf32>
    %469 = arith.truncf %468 : vector<144x32xf32> to vector<144x32xbf16>
    %cst_193 = arith.constant dense<0.000000e+00> : vector<16x32xf32>
    %470 = tpu.matmul %448, %469, %cst_193 {dimension_numbers = #tpu.dot_dimension_numbers<[1], [0], [0], [1], [0, 0, 1, 1], [], []>} : vector<16x144xbf16>, vector<144x32xbf16>, vector<16x32xf32> -> vector<16x32xf32>
    %471 = vector.broadcast %449 : vector<16x1xf32> to vector<16x32xf32>
    %472 = arith.addf %470, %471 : vector<16x32xf32>
    %473 = arith.addf %447, %472 : vector<16x32xf32>
    %c0_194 = arith.constant 0 : index
    %c0_195 = arith.constant 0 : index
    %474 = vector.load %arg38[%c0_194, %c0_195] : memref<16x1xf32, #tpu.memory_space<vmem>>, vector<16x1xf32>
    %c0_196 = arith.constant 0 : index
    %c0_197 = arith.constant 0 : index
    %475 = vector.load %arg39[%c0_196, %c0_197] : memref<16x1xf32, #tpu.memory_space<vmem>>, vector<16x1xf32>
    %c0_198 = arith.constant 0 : index
    %c0_199 = arith.constant 0 : index
    %476 = vector.load %arg40[%c0_198, %c0_199] : memref<32x2xbf16, #tpu.memory_space<vmem>>, vector<32x2xbf16>
    %c0_200 = arith.constant 0 : index
    %c0_201 = arith.constant 0 : index
    %477 = vector.load %arg41[%c0_200, %c0_201] : memref<10x16xbf16, #tpu.memory_space<vmem>>, vector<10x16xbf16>
    %c0_202 = arith.constant 0 : index
    %c0_203 = arith.constant 0 : index
    %478 = vector.load %arg42[%c0_202, %c0_203] : memref<10x1xf32, #tpu.memory_space<vmem>>, vector<10x1xf32>
    %479 = vector.broadcast %474 : vector<16x1xf32> to vector<16x32xf32>
    %480 = arith.mulf %473, %479 : vector<16x32xf32>
    %481 = vector.broadcast %475 : vector<16x1xf32> to vector<16x32xf32>
    %482 = arith.addf %480, %481 : vector<16x32xf32>
    %cst_204 = arith.constant 0.000000e+00 : f32
    %483 = vector.broadcast %cst_204 : f32 to vector<16x32xf32>
    %484 = arith.maximumf %482, %483 : vector<16x32xf32>
    %485 = arith.truncf %484 : vector<16x32xf32> to vector<16x32xbf16>
    %cst_205 = arith.constant dense<0.000000e+00> : vector<16x2xf32>
    %486 = tpu.matmul %485, %476, %cst_205 {dimension_numbers = #tpu.dot_dimension_numbers<[1], [0], [0], [1], [0, 0, 1, 1], [], []>} : vector<16x32xbf16>, vector<32x2xbf16>, vector<16x2xf32> -> vector<16x2xf32>
    %c0_206 = arith.constant 0 : index
    %c0_207 = arith.constant 0 : index
    %487 = vector.load %arg43[%c0_206, %c0_207] : memref<16x2xf32, #tpu.memory_space<vmem>>, vector<16x2xf32>
    tpu.vector_store %arg43[%c0_206, %c0_207], %486 {strides = array<i32>} : memref<16x2xf32, #tpu.memory_space<vmem>>, vector<16x2xf32>,
    %488 = arith.truncf %486 : vector<16x2xf32> to vector<16x2xbf16>
    %cst_208 = arith.constant dense<0.000000e+00> : vector<10x2xf32>
    %489 = tpu.matmul %477, %488, %cst_208 {dimension_numbers = #tpu.dot_dimension_numbers<[1], [0], [0], [1], [0, 0, 1, 1], [], []>} : vector<10x16xbf16>, vector<16x2xbf16>, vector<10x2xf32> -> vector<10x2xf32>
    %490 = vector.broadcast %478 : vector<10x1xf32> to vector<10x2xf32>
    %491 = arith.addf %489, %490 : vector<10x2xf32>
    %c0_209 = arith.constant 0 : index
    %c0_210 = arith.constant 0 : index
    %492 = vector.load %arg44[%c0_209, %c0_210] : memref<10x2xf32, #tpu.memory_space<vmem>>, vector<10x2xf32>
    tpu.vector_store %arg44[%c0_209, %c0_210], %491 {strides = array<i32>} : memref<10x2xf32, #tpu.memory_space<vmem>>, vector<10x2xf32>,
    return
  }
}

</mosaic_0001>

<bundles_post_ra>
// kernel: tpu_custom_call.1
= control target key start
LH: loop header
LB: loop body
LE: loop exit
PB: predicated region body
PF: predicated region fallthrough
CT: control target
= control target key end

     0   :  { %s5364_s6 = smov 1   ;;  %s5365_s10 = smov 2   ;;  %s7677_s0 = inlined_call_operand.smem [shape: u32[45], index: -1, kind: input, shape index: {}] }
   0x1   :  { %s5462_s5 = sld [smem:[%s7677_s0]]   ;;  %s5366_s14 = smov 3  }
   0x2   :  { %s5467_s9 = sld [smem:[%s7677_s0 + %s5364_s6]]   ;;  %s5367_s18 = smov 4  }
   0x3   :  { %s5472_s13 = sld [smem:[%s7677_s0 + %s5365_s10]]   ;;  %s5368_s22 = smov 5  }
   0x4   :  { %s5477_s17 = sld [smem:[%s7677_s0 + %s5366_s14]]   ;;  %s5369_s26 = smov 6  }
   0x5   :  { %s5482_s21 = sld [smem:[%s7677_s0 + %s5367_s18]]   ;;  %s5370_s30 = smov 7  }
   0x6   :  { %s5487_s25 = sld [smem:[%s7677_s0 + %s5368_s22]]   ;;  %s5371_s4 = smov 8  }
   0x7   :  { %s5492_s29 = sld [smem:[%s7677_s0 + %s5369_s26]]   ;;  %s5372_s10 = smov 9  }
   0x8   :  { %7754 = sst [smem:[#allocation29_spill]] %s5467_s9  ;;  %s5373_s15 = smov 10  }
   0x9   :  { %7755 = sst [smem:[#allocation30_spill]] %s5472_s13  ;;  %s5374_s20 = smov 11  }
   0xa   :  { %7756 = sst [smem:[#allocation31_spill]] %s5477_s17  ;;  %s5375_s26 = smov 12  }
   0xb   :  { %s5497_s3 = sld [smem:[%s7677_s0 + %s5370_s30]]   ;;  %s5376_s1 = smov 13  }
   0xc   :  { %7757 = sst [smem:[#allocation32_spill]] %s5487_s25  ;;  %s5377_s7 = smov 14  }
   0xd   :  { %s5502_s8 = sld [smem:[%s7677_s0 + %s5371_s4]]   ;;  %s5379_s22 = smov 16  }
   0xe   :  { %s5507_s14 = sld [smem:[%s7677_s0 + %s5372_s10]]   ;;  %s5380_s28 = smov 17  }
   0xf   :  { %s5512_s19 = sld [smem:[%s7677_s0 + %s5373_s15]]   ;;  %s5378_s15 = smov 15  }
  0x10   :  { %s5517_s24 = sld [smem:[%s7677_s0 + %s5374_s20]]  }
  0x11   :  { %7758 = sst [smem:[#allocation33_spill]] %s5497_s3 }
  0x12   :  { %s5522_s30 = sld [smem:[%s7677_s0 + %s5375_s26]]  }
  0x13   :  { %s5527_s6 = sld [smem:[%s7677_s0 + %s5376_s1]]  }
  0x14   :  { %7759 = sst [smem:[#allocation34_spill]] %s5507_s14 }
  0x15   :  { %s5532_s12 = sld [smem:[%s7677_s0 + %s5377_s7]]   ;;  %s5381_s7 = smov 18  }
  0x16   :  { %7760 = sst [smem:[#allocation35_spill]] %s5517_s24 }
  0x17   :  { %s5537_s20 = sld [smem:[%s7677_s0 + %s5378_s15]]   ;;  %s5382_s15 = smov 19  }
  0x18   :  { %s5542_s27 = sld [smem:[%s7677_s0 + %s5379_s22]]   ;;  %s5383_s22 = smov 20  }
  0x19   :  { %7761 = sst [smem:[#allocation36_spill]] %s5527_s6 }
  0x1a   :  { %s5547_s4 = sld [smem:[%s7677_s0 + %s5380_s28]]   ;;  %s5384_s28 = smov 21  }
  0x1b   :  { %s5552_s17 = sld [smem:[%s7677_s0 + %s5381_s7]]   ;;  %s5385_s7 = smov 22  }
  0x1c   :  { %s5557_s13 = sld [smem:[%s7677_s0 + %s5382_s15]]   ;;  %s5386_s15 = smov 23  }
  0x1d   :  { %7762 = sst [smem:[#allocation37_spill]] %s5537_s20 }
  0x1e   :  { %s5562_s20 = sld [smem:[%s7677_s0 + %s5383_s22]]   ;;  %s5387_s22 = smov 24  }
  0x1f   :  { %s5572_s6 = sld [smem:[%s7677_s0 + %s5385_s7]]   ;;  %s5389_s7 = smov 26  }
  0x20   :  { %7763 = sst [smem:[#allocation38_spill]] %s5547_s4 }
  0x21   :  { %s5567_s4 = sld [smem:[%s7677_s0 + %s5384_s28]]   ;;  %s5388_s28 = smov 25  }
  0x22   :  { %s5577_s24 = sld [smem:[%s7677_s0 + %s5386_s15]]   ;;  %s5390_s15 = smov 27  }
  0x23   :  { %s5587_s14 = sld [smem:[%s7677_s0 + %s5388_s28]]   ;;  %s5392_s28 = smov 29  }
  0x24   :  { %7764 = sst [smem:[#allocation39_spill]] %s5562_s20 }
  0x25   :  { %7765 = sst [smem:[#allocation40_spill]] %s5572_s6 }
  0x26   :  { %s5582_s20 = sld [smem:[%s7677_s0 + %s5387_s22]]   ;;  %s5391_s22 = smov 28  }
  0x27   :  { %s5592_s6 = sld [smem:[%s7677_s0 + %s5389_s7]]   ;;  %s5393_s7 = smov 30  }
  0x28   :  { %s5597_s3 = sld [smem:[%s7677_s0 + %s5390_s15]]   ;;  %s5394_s15 = smov 31  }
  0x29   :  { %s5607_s9 = sld [smem:[%s7677_s0 + %s5392_s28]]   ;;  %s5396_s28 = smov 33  }
  0x2c   :  { %7766 = sst [smem:[#allocation41_spill]] %s5582_s20 }
  0x2d   :  { %7767 = sst [smem:[#allocation42_spill]] %s5592_s6 }
  0x2e   :  { %7768 = sst [smem:[#allocation43_spill]] %s5597_s3 }
  0x2f   :  { %s5602_s20 = sld [smem:[%s7677_s0 + %s5391_s22]]   ;;  %s5395_s22 = smov 32  }
  0x30   :  { %7770 = sst [smem:[#allocation45_spill]] %s5607_s9 }
  0x31   :  { %s5612_s6 = sld [smem:[%s7677_s0 + %s5393_s7]]   ;;  %s5397_s7 = smov 34  }
  0x32   :  { %s5617_s3 = sld [smem:[%s7677_s0 + %s5394_s15]]   ;;  %s5398_s15 = smov 35  }
  0x33   :  { %s5627_s9 = sld [smem:[%s7677_s0 + %s5396_s28]]   ;;  %s5400_s28 = smov 37  }
  0x35   :  { %7769 = sst [smem:[#allocation44_spill]] %s5602_s20 }
  0x36   :  { %s5622_s20 = sld [smem:[%s7677_s0 + %s5395_s22]]   ;;  %s5399_s22 = smov 36  }
  0x37   :  { %7771 = sst [smem:[#allocation46_spill]] %s5612_s6 }
  0x38   :  { %7772 = sst [smem:[#allocation47_spill]] %s5617_s3 }
  0x39   :  { %7774 = sst [smem:[#allocation49_spill]] %s5627_s9 }
  0x3a   :  { %s5632_s6 = sld [smem:[%s7677_s0 + %s5397_s7]]   ;;  %s5401_s7 = smov 38  }
  0x3b   :  { %s5637_s3 = sld [smem:[%s7677_s0 + %s5398_s15]]   ;;  %s5402_s15 = smov 39  }
  0x3c   :  { %7773 = sst [smem:[#allocation48_spill]] %s5622_s20 }
  0x3d   :  { %s5642_s20 = sld [smem:[%s7677_s0 + %s5399_s22]]   ;;  %s5403_s22 = smov 40  }
  0x3e   :  { %s5647_s9 = sld [smem:[%s7677_s0 + %s5400_s28]]   ;;  %s5404_s28 = smov 41  }
  0x3f   :  { %s5652_s25 = sld [smem:[%s7677_s0 + %s5401_s7]]   ;;  %s5405_s7 = smov 42  }
  0x41   :  { %7775 = sst [smem:[#allocation50_spill]] %s5637_s3 }
  0x42   :  { %s5657_s3 = sld [smem:[%s7677_s0 + %s5402_s15]]   ;;  %s5406_s15 = smov 43  }
  0x43   :  { %7776 = sst [smem:[#allocation51_spill]] %s5642_s20 }
  0x44   :  { %7777 = sst [smem:[#allocation52_spill]] %s5647_s9 }
  0x45   :  { %7778 = sst [smem:[#allocation53_spill]] %s5652_s25 }
  0x46   :  { %s5662_s20 = sld [smem:[%s7677_s0 + %s5403_s22]]   ;;  %s5407_s22 = smov 44  }
  0x47   :  { %s5667_s9 = sld [smem:[%s7677_s0 + %s5404_s28]]  }
  0x48   :  { %7779 = sst [smem:[#allocation54_spill]] %s5657_s3 }
  0x49   :  { %s5672_s25 = sld [smem:[%s7677_s0 + %s5405_s7]]  }
  0x4a   :  { %s5677_s3 = sld [smem:[%s7677_s0 + %s5406_s15]]  }
  0x4c   :  { %7780 = sst [smem:[#allocation55_spill]] %s5662_s20 }
  0x4d   :  { %s5682_s20 = sld [smem:[%s7677_s0 + %s5407_s22]]  }
  0x4e   :  { %95 = vsyncpa [#allocation3], 0 }
  0x4f   :  { %96 = vsyncpa [#allocation5], 0 }
  0x50   :  { %97 = vsyncpa [#allocation8], 0 }
  0x51   :  { %98 = vsyncpa [#allocation11], 0 }
  0x52   :  { %99 = vsyncpa [#allocation14], 0 }
  0x53   :  { %100 = vsyncpa [#allocation17], 0 }
  0x54   :  { %101 = vsyncpa [#allocation20], 0  ;;  %s5408_s28 = smov [#allocation4]   ;;  %s5409_s2 = smov [#allocation7]  }
  0x55   :  { %s128_s1 = sshll.u32 %s5408_s28, 4  ;;  %s152_s7 = sshll.u32 %s5409_s2, 4  ;;  %s129_s1 = int_to_ptr.vmem [resolvable:$true] %s128_s1  ;;  %s153_s7 = int_to_ptr.vmem [resolvable:$true] %s152_s7 }
  0x56   :  { %s5098_s10 = scalar_lea.vmem %s129_s1, 64  ;;  %p5103_p1 = scmp.lt.s32.totalorder %s129_s1, %s129_s1 }
  0x57   :  { %p5099_p0 = scmp.ne.s32.totalorder %s129_s1, %s5098_s10  ;;  %p5104_p2 = scmp.lt.s32.totalorder %s5098_s10, %s5098_s10 }
  0x59   :  { %p5105_p3 = por %p5104_p2, %p5103_p1 }
  0x5b   :  { %p5106_p4 = pnand %p5105_p3, %p5099_p0 }
  0x5d   :  { %5109 = shalt.err (!%p5106_p4)
}
  0x5e   :  { %131 = dma.hbm_to_vmem [thread:$0]  %s5492_s29, 64, %s129_s1, [#allocation5]  }
  0x5f   :  { %s5118_s0 = scalar_lea.vmem %s153_s7, 64  ;;  %p5123_p6 = scmp.lt.s32.totalorder %s153_s7, %s153_s7 }
  0x60   :  { %p5119_p5 = scmp.ne.s32.totalorder %s153_s7, %s5118_s0  ;;  %p5124_p7 = scmp.lt.s32.totalorder %s5118_s0, %s5118_s0 }
  0x62   :  { %p5125_p8 = por %p5124_p7, %p5123_p6 }
  0x64   :  { %p5126_p9 = pnand %p5125_p8, %p5119_p5 }
  0x66   :  { %5129 = shalt.err (!%p5126_p9)
}
  0x67   :  { %155 = dma.hbm_to_vmem [thread:$0]  %s5512_s19, 64, %s153_s7, [#allocation8]  }
  0x68   :  { %s5410_s11 = smov [#allocation10]   ;;  %s5411_s16 = smov [#allocation13]  }
  0x69   :  { %s176_s15 = sshll.u32 %s5410_s11, 4  ;;  %s199_s18 = sshll.u32 %s5411_s16, 4  ;;  %s177_s15 = int_to_ptr.vmem [resolvable:$true] %s176_s15  ;;  %s200_s18 = int_to_ptr.vmem [resolvable:$true] %s199_s18 }
  0x6a   :  { %s5138_s22 = scalar_lea.vmem %s177_s15, 64  ;;  %p5143_p11 = scmp.lt.s32.totalorder %s177_s15, %s177_s15 }
  0x6b   :  { %p5139_p10 = scmp.ne.s32.totalorder %s177_s15, %s5138_s22  ;;  %p5144_p12 = scmp.lt.s32.totalorder %s5138_s22, %s5138_s22 }
  0x6d   :  { %p5145_p13 = por %p5144_p12, %p5143_p11 }
  0x6f   :  { %p5146_p0 = pnand %p5145_p13, %p5139_p10 }
  0x71   :  { %5149 = shalt.err (!%p5146_p0)
}
  0x72   :  { %179 = dma.hbm_to_vmem [thread:$0]  %s5532_s12, 64, %s177_s15, [#allocation11]  }
  0x73   :  { %s5158_s29 = scalar_lea.vmem %s200_s18, 4096  ;;  %p5163_p2 = scmp.lt.s32.totalorder %s200_s18, %s200_s18 }
  0x74   :  { %p5159_p1 = scmp.ne.s32.totalorder %s200_s18, %s5158_s29  ;;  %p5164_p3 = scmp.lt.s32.totalorder %s5158_s29, %s5158_s29 }
  0x76   :  { %p5165_p4 = por %p5164_p3, %p5163_p2 }
  0x78   :  { %p5166_p5 = pnand %p5165_p4, %p5159_p1 }
  0x7a   :  { %5169 = shalt.err (!%p5166_p5)
}
  0x7b   :  { %s5412_s19 = smov 64   ;;  %s5413_s23 = smov 4  }
  0x7c   :  { %205 = dma.hbm_to_vmem [thread:$0]  %s5552_s17, 4096, %s200_s18, [#allocation14], %s5412_s19, %s5412_s19, %s5413_s23  }
  0x7d   :  { %s5414_s26 = smov [#allocation16]   ;;  %s5415_s1 = smov [#allocation19]  }
  0x7e   :  { %s224_s28 = sshll.u32 %s5414_s26, 4  ;;  %s247_s2 = sshll.u32 %s5415_s1, 4  ;;  %s225_s28 = int_to_ptr.vmem [resolvable:$true] %s224_s28  ;;  %s248_s2 = int_to_ptr.vmem [resolvable:$true] %s247_s2 }
  0x7f   :  { %s5178_s12 = scalar_lea.vmem %s225_s28, 64  ;;  %p5183_p7 = scmp.lt.s32.totalorder %s225_s28, %s225_s28 }
  0x80   :  { %p5179_p6 = scmp.ne.s32.totalorder %s225_s28, %s5178_s12  ;;  %p5184_p8 = scmp.lt.s32.totalorder %s5178_s12, %s5178_s12 }
  0x82   :  { %p5185_p9 = por %p5184_p8, %p5183_p7 }
  0x84   :  { %p5186_p10 = pnand %p5185_p9, %p5179_p6 }
  0x86   :  { %5189 = shalt.err (!%p5186_p10)
}
  0x87   :  { %227 = dma.hbm_to_vmem [thread:$0]  %s5567_s4, 64, %s225_s28, [#allocation17]  }
  0x88   :  { %s5198_s7 = scalar_lea.vmem %s248_s2, 128  ;;  %p5203_p12 = scmp.lt.s32.totalorder %s248_s2, %s248_s2 }
  0x89   :  { %p5199_p11 = scmp.ne.s32.totalorder %s248_s2, %s5198_s7  ;;  %p5204_p13 = scmp.lt.s32.totalorder %s5198_s7, %s5198_s7 }
  0x8b   :  { %p5205_p0 = por %p5204_p13, %p5203_p12 }
  0x8d   :  { %p5206_p1 = pnand %p5205_p0, %p5199_p11 }
  0x8f   :  { %5209 = shalt.err (!%p5206_p1)
}
  0x90   :  { %253 = dma.hbm_to_vmem [thread:$0]  %s5587_s14, 128, %s248_s2, [#allocation20], %s5412_s19, %s5412_s19, %s5413_s23  }
  0x91   :  { %s5416_s17 = smov [#allocation2]   ;;  %s5417_s0 = smov [#allocation6]  }
  0x92   :  { %s116_s10 = sshll.u32 %s5416_s17, 4  ;;  %s140_s11 = sshll.u32 %s5417_s0, 4  ;;  %s117_s10 = int_to_ptr.vmem [resolvable:$true] %s116_s10  ;;  %s141_s11 = int_to_ptr.vmem [resolvable:$true] %s140_s11 }
  0x93   :  { %s5218_s15 = scalar_lea.vmem %s117_s10, 64  ;;  %p5223_p3 = scmp.lt.s32.totalorder %s117_s10, %s117_s10 }
  0x94   :  { %p5219_p2 = scmp.ne.s32.totalorder %s117_s10, %s5218_s15  ;;  %p5224_p4 = scmp.lt.s32.totalorder %s5218_s15, %s5218_s15 }
  0x96   :  { %p5225_p5 = por %p5224_p4, %p5223_p3 }
  0x98   :  { %p5226_p6 = pnand %p5225_p5, %p5219_p2 }
  0x9a   :  { %5229 = shalt.err (!%p5226_p6)
}
  0x9b   :  { %119 = dma.hbm_to_vmem [thread:$0]  %s5482_s21, 64, %s117_s10, [#allocation3]  }
  0x9c   :  { %s5238_s4 = scalar_lea.vmem %s141_s11, 64  ;;  %p5243_p8 = scmp.lt.s32.totalorder %s141_s11, %s141_s11 }
  0x9d   :  { %p5239_p7 = scmp.ne.s32.totalorder %s141_s11, %s5238_s4  ;;  %p5244_p9 = scmp.lt.s32.totalorder %s5238_s4, %s5238_s4 }
  0x9f   :  { %p5245_p10 = por %p5244_p9, %p5243_p8 }
  0xa1   :  { %p5246_p11 = pnand %p5245_p10, %p5239_p7 }
  0xa3   :  { %5249 = shalt.err (!%p5246_p11)
}
  0xa4   :  { %143 = dma.hbm_to_vmem [thread:$0]  %s5502_s8, 64, %s141_s11, [#allocation5]  }
  0xa5   :  { %s5418_s14 = smov [#allocation9]   ;;  %s5419_s18 = smov [#allocation12]  }
  0xa6   :  { %s164_s16 = sshll.u32 %s5418_s14, 4  ;;  %s188_s22 = sshll.u32 %s5419_s18, 4  ;;  %s165_s16 = int_to_ptr.vmem [resolvable:$true] %s164_s16  ;;  %s189_s22 = int_to_ptr.vmem [resolvable:$true] %s188_s22 }
  0xa7   :  { %s5258_s29 = scalar_lea.vmem %s165_s16, 64  ;;  %p5263_p13 = scmp.lt.s32.totalorder %s165_s16, %s165_s16 }
  0xa8   :  { %p5259_p12 = scmp.ne.s32.totalorder %s165_s16, %s5258_s29  ;;  %p5264_p0 = scmp.lt.s32.totalorder %s5258_s29, %s5258_s29 }
  0xaa   :  { %p5265_p1 = por %p5264_p0, %p5263_p13 }
  0xac   :  { %p5266_p2 = pnand %p5265_p1, %p5259_p12 }
  0xae   :  { %5269 = shalt.err (!%p5266_p2)
}
  0xaf   :  { %167 = dma.hbm_to_vmem [thread:$0]  %s5522_s30, 64, %s165_s16, [#allocation8]  }
  0xb0   :  { %s5278_s21 = scalar_lea.vmem %s189_s22, 64  ;;  %p5283_p4 = scmp.lt.s32.totalorder %s189_s22, %s189_s22 }
  0xb1   :  { %p5279_p3 = scmp.ne.s32.totalorder %s189_s22, %s5278_s21  ;;  %p5284_p5 = scmp.lt.s32.totalorder %s5278_s21, %s5278_s21 }
  0xb3   :  { %p5285_p6 = por %p5284_p5, %p5283_p4 }
  0xb5   :  { %p5286_p7 = pnand %p5285_p6, %p5279_p3 }
  0xb7   :  { %5289 = shalt.err (!%p5286_p7)
}
  0xb8   :  { %191 = dma.hbm_to_vmem [thread:$0]  %s5542_s27, 64, %s189_s22, [#allocation11]  }
  0xb9   :  { %s5420_s8 = smov [#allocation15]   ;;  %s5421_s28 = smov [#allocation18]  }
  0xba   :  { %s212_s26 = sshll.u32 %s5420_s8, 4  ;;  %s236_s1 = sshll.u32 %s5421_s28, 4  ;;  %s213_s26 = int_to_ptr.vmem [resolvable:$true] %s212_s26  ;;  %s237_s1 = int_to_ptr.vmem [resolvable:$true] %s236_s1 }
  0xbb   :  { %s5298_s2 = scalar_lea.vmem %s213_s26, 64  ;;  %p5303_p9 = scmp.lt.s32.totalorder %s213_s26, %s213_s26 }
  0xbc   :  { %p5299_p8 = scmp.ne.s32.totalorder %s213_s26, %s5298_s2  ;;  %p5304_p10 = scmp.lt.s32.totalorder %s5298_s2, %s5298_s2 }
  0xbe   :  { %p5305_p11 = por %p5304_p10, %p5303_p9 }
  0xc0   :  { %p5306_p12 = pnand %p5305_p11, %p5299_p8 }
  0xc2   :  { %5309 = shalt.err (!%p5306_p12)
}
  0xc3   :  { %215 = dma.hbm_to_vmem [thread:$0]  %s5557_s13, 64, %s213_s26, [#allocation14]  }
  0xc4   :  { %s5318_s30 = scalar_lea.vmem %s237_s1, 64  ;;  %p5323_p0 = scmp.lt.s32.totalorder %s237_s1, %s237_s1 }
  0xc5   :  { %p5319_p13 = scmp.ne.s32.totalorder %s237_s1, %s5318_s30  ;;  %p5324_p1 = scmp.lt.s32.totalorder %s5318_s30, %s5318_s30 }
  0xc7   :  { %p5325_p2 = por %p5324_p1, %p5323_p0 }
  0xc9   :  { %p5326_p3 = pnand %p5325_p2, %p5319_p13 }
  0xcb   :  { %5329 = shalt.err (!%p5326_p3)
}
  0xcc   :  { %239 = dma.hbm_to_vmem [thread:$0]  %s5577_s24, 64, %s237_s1, [#allocation17]  }
  0xcd   :  { %s5422_s27 = smov [#allocation21]  }
  0xce   :  { %s275_s12 = sshll.u32 %s5422_s27, 4  ;;  %s276_s12 = int_to_ptr.vmem [resolvable:$true] %s275_s12 }
  0xcf   :  { %s5338_s7 = scalar_lea.vmem %s276_s12, 128  ;;  %p5343_p5 = scmp.lt.s32.totalorder %s276_s12, %s276_s12 }
  0xd0   :  { %p5339_p4 = scmp.ne.s32.totalorder %s276_s12, %s5338_s7  ;;  %p5344_p6 = scmp.lt.s32.totalorder %s5338_s7, %s5338_s7 }
  0xd2   :  { %p5345_p7 = por %p5344_p6, %p5343_p5 }
  0xd4   :  { %p5346_p8 = pnand %p5345_p7, %p5339_p4 }
  0xd6   :  { %5349 = shalt.err (!%p5346_p8)
}
  0xd7   :  { %281 = dma.hbm_to_vmem [thread:$0]  %s5632_s6, 128, %s276_s12, [#allocation20], %s5412_s19, %s5412_s19, %s5413_s23  }
  0xd8   :  { %5350 = dma.done.wait [#allocation3], 64  }
  0xd9   :  { %5351 = vsyncadd [#allocation3], 4294967232 }
  0xda   :  { %5352 = dma.done.wait [#allocation5], 128  }
  0xdb   :  { %5353 = vsyncadd [#allocation5], 4294967168 }
  0xdc   :  { %5354 = dma.done.wait [#allocation8], 128  }
  0xdd   :  { %5355 = vsyncadd [#allocation8], 4294967168 }
  0xde   :  { %5356 = dma.done.wait [#allocation11], 128  }
  0xdf   :  { %5357 = vsyncadd [#allocation11], 4294967168 }
  0xe0   :  { %5358 = dma.done.wait [#allocation14], 4160  }
  0xe1   :  { %5359 = vsyncadd [#allocation14], 4294963136 }
  0xe2   :  { %5360 = dma.done.wait [#allocation17], 128  }
  0xe3   :  { %5361 = vsyncadd [#allocation17], 4294967168 }
  0xe4   :  { %5362 = dma.done.wait [#allocation20], 256  }
  0xe5   :  { %5363 = vsyncadd [#allocation20], 4294967040  ;;  %v5707_v0 = vld [vmem:[%s5462_s5 + $0x18] sm:$0xff]  ;;  %v5710_v1 = vld [vmem:[%s5462_s5] sm:$0xff]  ;;  %s5423_s13 = smov 111   ;;  %s5424_s24 = smov 113   ;;  %v356_v6 = vlaneseq }
  0xe6   :  { %611 = vrot.lane.b32.xlu1 %v5707_v0, %s5423_s13  ;;  %605 = vrot.lane.b32.xlu0 %v5710_v1, %s5423_s13  ;;  %v5717_v2 = vld [vmem:[%s5462_s5 + $0x8] sm:$0xff]  ;;  %v5720_v3 = vld [vmem:[%s5462_s5 + $0x10] sm:$0xff]  ;;  %s5425_s6 = smov 112   ;;  %s5426_s5 = smov 127   ;;  %v7695_v4 = vmov 0   ;;  %vm651_vm1 = vcmask 1043456  }
  0xe7   :  { %s5427_s19 = smov 15   ;;  %s5428_s17 = smov 1   ;;  %737 = vmatprep.mubr.bf16.mxu1 %v7695_v4  ;;  %696 = vmatprep.mubr.bf16.mxu0 %v7695_v4  ;;  %v5787_v7 = vshrl.u32 %v356_v6, 7  ;;  %v5789_v8 = vand.u32 127, %v356_v6  ;;  %vm647_vm9 = vcmask 588800   ;;  %vm1013_vm10 = vcmask 64512  }
  0xe8   :  { %s7781_s10 = sld [smem:[#allocation32_spill]]  ;;  %s5429_s0 = smov 17   ;;  %4869 = vset.pattern.permute.xlu0 %v7695_v4  ;;  %4870 = vset.pattern.permute.xlu1 %v7695_v4  ;;  %vm5437_vm11 = vmmov 0   ;;  %vm3171_vm12 = vcmask 1047808   ;;  %vm3360_vm13 = vcmask 130048   ;;  %vm4207_vm14 = vcmask 261120  }
  0xe9   :  { %s7782_s11 = sld [smem:[#allocation29_spill]]  ;;  %s5431_s15 = smov 16   ;;  %v5792_v9 = vsub.s32 0, %v5787_v7  ;;  %vm613_vm0 = vcmp.lt.s32.totalorder %v5789_v8, 111  ;;  %v5819_v27 = vsub.s32 6, %v5787_v7  ;;  %v5828_v32 = vsub.s32 7, %v5787_v7 }
  0xea   :  { %607 = vrot.lane.b32.xlu1 %v5717_v2, %s5423_s13  ;;  %609 = vrot.lane.b32.xlu0 %v5720_v3, %s5423_s13  ;;  %vm579_vm2 = vcmp.lt.s32.totalorder %v5789_v8, 113  ;;  %vm596_vm3 = vcmp.lt.s32.totalorder %v5789_v8, 112  ;;  %v5870_v57 = vsub.s32 5, %v5787_v7  ;;  %vm562_vm4 = vcmp.lt.s32.totalorder %v5789_v8, 127  ;;  %s7807_s4 = sld [smem:[#allocation33_spill]]  ;;  %s5433_s29 = smov 121  }
  0xeb   :  { %7783 = vst [vmem:[#allocation56_spill] sm:$0xff] %v5792_v9  ;;  %7786 = vst [vmem:[#allocation59_spill] sm:$0xff] %v5819_v27  ;;  %vm528_vm5 = vcmp.lt.s32.totalorder %v5789_v8, 15  ;;  %vm545_vm6 = vcmp.lt.s32.totalorder %v5789_v8, 1  ;;  %vm494_vm7 = vcmp.lt.s32.totalorder %v5789_v8, 17  ;;  %vm511_vm8 = vcmp.lt.s32.totalorder %v5789_v8, 16 }
  0xec   :  { %7787 = vst [vmem:[#allocation60_spill] sm:$0xff] %v5828_v32  ;;  %7790 = vst [vmem:[#allocation63_spill] sm:$0xff] %v5870_v57  ;;  %s7808_s14 = sld [smem:[#allocation34_spill]]  ;;  %s5434_s8 = smov 119   ;;  %vm4252_vm15 = vcmask 15360  }
  0xed   :  { %s7814_s16 = sld [smem:[#allocation35_spill]]  ;;  %s5435_s26 = smov 120  }
  0xee   :  { %577 = vrot.lane.b32.xlu1 %v5707_v0, %s5424_s24  ;;  %571 = vrot.lane.b32.xlu0 %v5710_v1, %s5424_s24  ;;  %v355_v5 = vld [vmem:[%s7781_s10] sm:$0xff]  ;;  %s7839_s18 = sld [smem:[#allocation36_spill]]  ;;  %s5436_s28 = smov 7  }
  0xef   :  { %v345_v10 = vld [vmem:[%s7782_s11 + $0x38] sm:$0x3]  ;;  %v343_v12 = vld [vmem:[%s7782_s11 + $0x28] sm:$0x3]  ;;  %v342_v13 = vld [vmem:[%s7782_s11 + $0x20] sm:$0x3] }
  0xf0   :  { %v5797_v11 = vrot.slane %v345_v10, %v5792_v9  ;;  %v344_v14 = vld [vmem:[%s7782_s11 + $0x30] sm:$0x3]  ;;  %v5806_v19 = vrot.slane %v343_v12, %v5792_v9  ;;  %v5809_v20 = vrot.slane %v342_v13, %v5792_v9  ;;  %v5831_v33 = vld [vmem:[%s7782_s11 + $0x18] sm:$0xff]  ;;  %v5864_v52 = vld [vmem:[%s7782_s11] sm:$0xff]  ;;  %s7841_s22 = sld [smem:[#allocation38_spill]]  ;;  %s5438_s2 = smov 8  }
  0xf1   :  { %v5812_v21 = vrot.slane %v344_v14, %v5792_v9  ;;  %v5837_v39 = vrot.slane %v5831_v33, %v5819_v27  ;;  %v5844_v42 = vrot.slane %v5831_v33, %v5828_v32  ;;  %v5849_v44 = vld [vmem:[%s7782_s11 + $0x10] sm:$0xff]  ;;  %v5867_v53 = vld [vmem:[%s7782_s11 + $0x8] sm:$0xff]  ;;  %v5878_v60 = vrot.slane %v5864_v52, %v5828_v32  ;;  %s7847_s21 = sld [smem:[#allocation37_spill]]  ;;  %s5439_s30 = smov 9  }
  0xf2   :  { %594 = vrot.lane.b32.xlu1 %v5707_v0, %s5425_s6  ;;  %588 = vrot.lane.b32.xlu0 %v5710_v1, %s5425_s6  ;;  %7784 = vst [vmem:[#allocation57_spill] sm:$0xff] %v5797_v11  ;;  %7785 = vst [vmem:[#allocation58_spill] sm:$0xff] %v5809_v20  ;;  %v5857_v50 = vrot.slane %v5849_v44, %v5828_v32  ;;  %v5861_v51 = vrot.slane %v5849_v44, %v5819_v27  ;;  %s7848_s1 = sld [smem:[#allocation30_spill]]  ;;  %s5440_s10 = smov 32  }
  0xf3   :  { %7788 = vst [vmem:[#allocation61_spill] sm:$0xff] %v5837_v39  ;;  %7789 = vst [vmem:[#allocation62_spill] sm:$0xff] %v5844_v42  ;;  %v5882_v61 = vrot.slane %v5867_v53, %v5828_v32  ;;  %v5892_v6 = vrot.slane %v5867_v53, %v5819_v27  ;;  %v5897_v14 = vrot.slane %v5831_v33, %v5870_v57  ;;  %s7858_s27 = sld [smem:[#allocation40_spill]] }
  0xf4   :  { %s7859_s12 = sld [smem:[#allocation39_spill]] }
  0xf5   :  { %7791 = vst [vmem:[#allocation64_spill] sm:$0xff] %v5897_v14  ;;  %s7860_s7 = sld [smem:[#allocation41_spill]] }
  0xf6   :  { %592 = vrot.lane.b32.xlu1 %v5720_v3, %s5425_s6  ;;  %575 = vrot.lane.b32.xlu0 %v5720_v3, %s5424_s24 }
  0xfa   :  { %590 = vrot.lane.b32.xlu1 %v5717_v2, %s5425_s6  ;;  %573 = vrot.lane.b32.xlu0 %v5717_v2, %s5424_s24 }
  0xfe   :  { %560 = vrot.lane.b32.xlu1 %v5707_v0, %s5426_s5  ;;  %554 = vrot.lane.b32.xlu0 %v5710_v1, %s5426_s5 }
 0x102   :  { %556 = vrot.lane.b32.xlu1 %v5717_v2, %s5426_s5  ;;  %558 = vrot.lane.b32.xlu0 %v5720_v3, %s5426_s5 }
 0x106   :  { %526 = vrot.lane.b32.xlu1 %v5707_v0, %s5427_s19  ;;  %524 = vrot.lane.b32.xlu0 %v5720_v3, %s5427_s19 }
 0x10a   :  { %543 = vrot.lane.b32.xlu1 %v5707_v0, %s5428_s17  ;;  %541 = vrot.lane.b32.xlu0 %v5720_v3, %s5428_s17 }
 0x10e   :  { %539 = vrot.lane.b32.xlu1 %v5717_v2, %s5428_s17  ;;  %522 = vrot.lane.b32.xlu0 %v5717_v2, %s5427_s19 }
 0x112   :  { %537 = vrot.lane.b32.xlu1 %v5710_v1, %s5428_s17  ;;  %520 = vrot.lane.b32.xlu0 %v5710_v1, %s5427_s19 }
 0x116   :  { %490 = vrot.lane.b32.xlu1 %v5707_v0, %s5429_s0  ;;  %488 = vrot.lane.b32.xlu0 %v5720_v3, %s5429_s0 }
 0x11a   :  { %509 = vrot.lane.b32.xlu1 %v5707_v0, %s5431_s15  ;;  %507 = vrot.lane.b32.xlu0 %v5720_v3, %s5431_s15 }
 0x11e   :  { %505 = vrot.lane.b32.xlu1 %v5717_v2, %s5431_s15  ;;  %486 = vrot.lane.b32.xlu0 %v5717_v2, %s5429_s0 }
 0x122   :  { %503 = vrot.lane.b32.xlu1 %v5710_v1, %s5431_s15  ;;  %484 = vrot.lane.b32.xlu0 %v5710_v1, %s5429_s0 }
 0x126   :  { %644 = vperm.xlu0 %4869, %v355_v5   ;;  %v5888_v5 = vrot.slane %v5864_v52, %v5819_v27 }
 0x158   :  { %v612_v15 = vpop.permute.xlu1 %611  ;;  %v606_v16 = vpop.permute.xlu0 %605 }
 0x159   :  { %v617_v17 = vsel %vm613_vm0, %v612_v15, %v606_v16 }
 0x15a   :  { %v621_v18 = vmul.f32 %v617_v17, %v5797_v11 }
 0x15c   :  { %v608_v22 = vpop.permute.xlu1 %607  ;;  %v610_v23 = vpop.permute.xlu0 %609  ;;  %v641_v24 = vpack.c.bf16 %v621_v18, %v621_v18 }
 0x15d   :  { %v616_v25 = vsel %vm613_vm0, %v606_v16, %v608_v22  ;;  %v614_v26 = vsel %vm613_vm0, %v610_v23, %v612_v15  ;;  %v615_v28 = vsel %vm613_vm0, %v608_v22, %v610_v23 }
 0x15e   :  { %4379 = vmatprep.subr.msk.bf16.mxu1 %vm651_vm1, %v641_v24  ;;  %v619_v29 = vmul.f32 %v615_v28, %v5806_v19  ;;  %v618_v30 = vmul.f32 %v616_v25, %v5809_v20  ;;  %v620_v31 = vmul.f32 %v614_v26, %v5812_v21 }
 0x160   :  { %v578_v34 = vpop.permute.xlu1 %577  ;;  %v572_v35 = vpop.permute.xlu0 %571  ;;  %v639_v36 = vpack.c.bf16 %v619_v29, %v619_v29  ;;  %v638_v37 = vpack.c.bf16 %v618_v30, %v618_v30  ;;  %v640_v38 = vpack.c.bf16 %v620_v31, %v620_v31 }
 0x161   :  { %v583_v43 = vsel %vm579_vm2, %v578_v34, %v572_v35 }
 0x162   :  { %4377 = vmatprep.subr.msk.bf16.mxu0 %vm651_vm1, %v639_v36  ;;  %v653_v40 = vsel %vm651_vm1, %v638_v37, 0  ;;  %v659_v41 = vsel %vm651_vm1, %v640_v38, 0  ;;  %v587_v48 = vmul.f32 %v583_v43, %v5837_v39  ;;  %v5920_v36 = vrot.slane %v5867_v53, %v5870_v57 }
 0x163   :  { %671 = vmatpush1.bf16.msra.mxu0 %v653_v40  ;;  %712 = vmatpush1.bf16.msra.mxu1 %v659_v41  ;;  %v5924_v37 = vrot.slane %v5849_v44, %v5870_v57 }
 0x164   :  { %v595_v45 = vpop.permute.xlu1 %594  ;;  %v589_v46 = vpop.permute.xlu0 %588 }
 0x165   :  { %v600_v47 = vsel %vm596_vm3, %v595_v45, %v589_v46  ;;  %7792 = vst [vmem:[#allocation65_spill] sm:$0xff] %v5924_v37 }
 0x166   :  { %v604_v49 = vmul.f32 %v600_v47, %v5844_v42  ;;  %v5934_v47 = vsub.s32 2, %v5787_v7 }
 0x168   :  { %v593_v54 = vpop.permute.xlu1 %592  ;;  %v576_v55 = vpop.permute.xlu0 %575  ;;  %v637_v56 = vpack.c.bf16 %v604_v49, %v587_v48  ;;  %7793 = vst [vmem:[#allocation66_spill] sm:$0xff] %v5934_v47 }
 0x169   :  { %v597_v58 = vsel %vm596_vm3, %v593_v54, %v595_v45  ;;  %v580_v59 = vsel %vm579_vm2, %v576_v55, %v578_v34 }
 0x16a   :  { %v603_v62 = vmul.f32 %v597_v58, %v5857_v50  ;;  %v586_v63 = vmul.f32 %v580_v59, %v5861_v51  ;;  %713 = vmatprep.subr.bf16.mxu1 %v637_v56 }
 0x16c   :  { %v591_v10 = vpop.permute.xlu1 %590  ;;  %v574_v12 = vpop.permute.xlu0 %573  ;;  %v636_v13 = vpack.c.bf16 %v603_v62, %v586_v63  ;;  %v5948_v63 = vrot.slane %v5831_v33, %v5934_v47 }
 0x16d   :  { %v598_v15 = vsel %vm596_vm3, %v591_v10, %v593_v54  ;;  %v599_v16 = vsel %vm596_vm3, %v589_v46, %v591_v10  ;;  %v581_v17 = vsel %vm579_vm2, %v574_v12, %v576_v55  ;;  %v582_v18 = vsel %vm579_vm2, %v572_v35, %v574_v12 }
 0x16e   :  { %v601_v22 = vmul.f32 %v599_v16, %v5878_v60  ;;  %v602_v23 = vmul.f32 %v598_v15, %v5882_v61  ;;  %v584_v24 = vmul.f32 %v582_v18, %v5888_v5  ;;  %v585_v25 = vmul.f32 %v581_v17, %v5892_v6  ;;  %714 = vmatpush1.bf16.msra.mxu1 %v636_v13 }
 0x16f   :  { %v5916_v35 = vrot.slane %v5864_v52, %v5870_v57  ;;  %7795 = vst [vmem:[#allocation68_spill] sm:$0xff] %v5948_v63  ;;  %v5967_v17 = vrot.slane %v5849_v44, %v5934_v47 }
 0x170   :  { %v561_v26 = vpop.permute.xlu1 %560  ;;  %v555_v28 = vpop.permute.xlu0 %554  ;;  %v635_v29 = vpack.c.bf16 %v602_v23, %v585_v25  ;;  %v634_v30 = vpack.c.bf16 %v601_v22, %v584_v24 }
 0x171   :  { %v566_v31 = vsel %vm562_vm4, %v561_v26, %v555_v28  ;;  %7798 = vst [vmem:[#allocation71_spill] sm:$0xff] %v5967_v17 }
 0x172   :  { %v570_v34 = vmul.f32 %v566_v31, %v5897_v14  ;;  %672 = vmatprep.subr.bf16.mxu0 %v635_v29  ;;  %v5985_v31 = vrot.slane %v5864_v52, %v5934_v47 }
 0x173   :  { %673 = vmatpush1.bf16.msra.mxu0 %v634_v30 }
 0x174   :  { %v557_v38 = vpop.permute.xlu1 %556  ;;  %v559_v40 = vpop.permute.xlu0 %558  ;;  %v633_v41 = vpack.c.bf16 %v570_v34, %v5707_v0  ;;  %v5940_v0 = vsub.s32 3, %v5787_v7  ;;  %v5989_v34 = vrot.slane %v5867_v53, %v5934_v47 }
 0x175   :  { %v565_v43 = vsel %vm562_vm4, %v555_v28, %v557_v38  ;;  %v563_v45 = vsel %vm562_vm4, %v559_v40, %v561_v26  ;;  %v564_v46 = vsel %vm562_vm4, %v557_v38, %v559_v40 }
 0x176   :  { %v567_v48 = vmul.f32 %v565_v43, %v5916_v35  ;;  %v568_v49 = vmul.f32 %v564_v46, %v5920_v36  ;;  %v569_v54 = vmul.f32 %v563_v45, %v5924_v37  ;;  %715 = vmatprep.subr.bf16.mxu1 %v633_v41  ;;  %7794 = vst [vmem:[#allocation67_spill] sm:$0xff] %v5940_v0  ;;  %v5992_v43 = vsub.s32 1, %v5787_v7 }
 0x177   :  { %v5953_v10 = vrot.slane %v5831_v33, %v5940_v0  ;;  %v5963_v16 = vrot.slane %v5849_v44, %v5940_v0  ;;  %v5975_v26 = vrot.slane %v5864_v52, %v5940_v0  ;;  %v5979_v28 = vrot.slane %v5867_v53, %v5940_v0 }
 0x178   :  { %v527_v55 = vpop.permute.xlu1 %526  ;;  %v525_v56 = vpop.permute.xlu0 %524  ;;  %v631_v58 = vpack.c.bf16 %v568_v49, %v5717_v2  ;;  %v632_v59 = vpack.c.bf16 %v569_v54, %v5720_v3  ;;  %v630_v62 = vpack.c.bf16 %v567_v48, %v5710_v1  ;;  %7800 = vst [vmem:[#allocation73_spill] sm:$0xff] %v5992_v43 }
 0x179   :  { %7796 = vst [vmem:[#allocation69_spill] sm:$0xff] %v5953_v10  ;;  %v529_v12 = vsel %vm528_vm5, %v525_v56, %v527_v55  ;;  %7797 = vst [vmem:[#allocation70_spill] sm:$0xff] %v5963_v16 }
 0x17a   :  { %674 = vmatprep.subr.bf16.mxu0 %v631_v58  ;;  %716 = vmatpush1.bf16.msra.mxu1 %v632_v59  ;;  %v536_v13 = vmul.f32 %v529_v12, %v5948_v63  ;;  %7799 = vst [vmem:[#allocation72_spill] sm:$0xff] %v5979_v28 }
 0x17b   :  { %675 = vmatpush1.bf16.msra.mxu0 %v630_v62 }
 0x17c   :  { %v544_v2 = vpop.permute.xlu1 %543  ;;  %v542_v3 = vpop.permute.xlu0 %541 }
 0x17d   :  { %v546_v1 = vsel %vm545_vm6, %v542_v3, %v544_v2 }
 0x17e   :  { %v553_v15 = vmul.f32 %v546_v1, %v5953_v10 }
 0x180   :  { %v540_v18 = vpop.permute.xlu1 %539  ;;  %v523_v22 = vpop.permute.xlu0 %522  ;;  %v629_v23 = vpack.c.bf16 %v553_v15, %v536_v13 }
 0x181   :  { %v547_v24 = vsel %vm545_vm6, %v540_v18, %v542_v3  ;;  %v530_v25 = vsel %vm528_vm5, %v523_v22, %v525_v56  ;;  %v6009_v3 = vrot.slane %v5831_v33, %v5792_v9 }
 0x182   :  { %v552_v29 = vmul.f32 %v547_v24, %v5963_v16  ;;  %v535_v30 = vmul.f32 %v530_v25, %v5967_v17  ;;  %717 = vmatprep.subr.bf16.mxu1 %v629_v23  ;;  %v6024_v24 = vrot.slane %v5849_v44, %v5992_v43 }
 0x183   :  { %7801 = vst [vmem:[#allocation74_spill] sm:$0xff] %v6009_v3 }
 0x184   :  { %v538_v38 = vpop.permute.xlu1 %537  ;;  %v521_v40 = vpop.permute.xlu0 %520  ;;  %v628_v41 = vpack.c.bf16 %v552_v29, %v535_v30  ;;  %7803 = vst [vmem:[#allocation76_spill] sm:$0xff] %v6024_v24 }
 0x185   :  { %v548_v45 = vsel %vm545_vm6, %v538_v38, %v540_v18  ;;  %v549_v46 = vsel %vm545_vm6, %v544_v2, %v538_v38  ;;  %v531_v48 = vsel %vm528_vm5, %v521_v40, %v523_v22  ;;  %v532_v49 = vsel %vm528_vm5, %v527_v55, %v521_v40 }
 0x186   :  { %v550_v54 = vmul.f32 %v549_v46, %v5975_v26  ;;  %v551_v56 = vmul.f32 %v548_v45, %v5979_v28  ;;  %v533_v58 = vmul.f32 %v532_v49, %v5985_v31  ;;  %v534_v7 = vmul.f32 %v531_v48, %v5989_v34  ;;  %718 = vmatpush1.bf16.msra.mxu1 %v628_v41 }
 0x187   :  { %v6014_v55 = vrot.slane %v5831_v33, %v5992_v43  ;;  %v6028_v33 = vrot.slane %v5849_v44, %v5792_v9  ;;  %v6036_v41 = vrot.slane %v5864_v52, %v5992_v43  ;;  %v6040_v45 = vrot.slane %v5867_v53, %v5992_v43 }
 0x188   :  { %v491_v59 = vpop.permute.xlu1 %490  ;;  %v489_v62 = vpop.permute.xlu0 %488  ;;  %v627_v12 = vpack.c.bf16 %v551_v56, %v534_v7  ;;  %v626_v2 = vpack.c.bf16 %v550_v54, %v533_v58  ;;  %v6046_v48 = vrot.slane %v5864_v52, %v5792_v9  ;;  %v6050_v49 = vrot.slane %v5867_v53, %v5792_v9 }
 0x189   :  { %7802 = vst [vmem:[#allocation75_spill] sm:$0xff] %v6014_v55  ;;  %v495_v1 = vsel %vm494_vm7, %v489_v62, %v491_v59  ;;  %7804 = vst [vmem:[#allocation77_spill] sm:$0xff] %v6028_v33 }
 0x18a   :  { %676 = vmatprep.subr.bf16.mxu0 %v627_v12  ;;  %v502_v22 = vmul.f32 %v495_v1, %v6009_v3  ;;  %7805 = vst [vmem:[#allocation78_spill] sm:$0xff] %v6036_v41  ;;  %7806 = vst [vmem:[#allocation79_spill] sm:$0xff] %v6046_v48 }
 0x18b   :  { %677 = vmatpush1.bf16.msra.mxu0 %v626_v2 }
 0x18c   :  { %v510_v13 = vpop.permute.xlu1 %509  ;;  %v508_v15 = vpop.permute.xlu0 %507 }
 0x18d   :  { %v512_v18 = vsel %vm511_vm8, %v508_v15, %v510_v13 }
 0x18e   :  { %v519_v23 = vmul.f32 %v512_v18, %v6014_v55  ;;  %v354_v18 = vld [vmem:[#allocation2] sm:$0xf] }
 0x190   :  { %v506_v25 = vpop.permute.xlu1 %505  ;;  %v487_v29 = vpop.permute.xlu0 %486  ;;  %v625_v30 = vpack.c.bf16 %v519_v23, %v502_v22 }
 0x191   :  { %v513_v38 = vsel %vm511_vm8, %v506_v25, %v508_v15  ;;  %v496_v40 = vsel %vm494_vm7, %v487_v29, %v489_v62 }
 0x192   :  { %v518_v44 = vmul.f32 %v513_v38, %v6024_v24  ;;  %v501_v46 = vmul.f32 %v496_v40, %v6028_v33  ;;  %719 = vmatprep.subr.bf16.mxu1 %v625_v30 }
 0x194   :  { %v504_v54 = vpop.permute.xlu1 %503  ;;  %v485_v56 = vpop.permute.xlu0 %484  ;;  %v624_v58 = vpack.c.bf16 %v518_v44, %v501_v46 }
 0x195   :  { %v514_v7 = vsel %vm511_vm8, %v504_v54, %v506_v25  ;;  %v515_v62 = vsel %vm511_vm8, %v510_v13, %v504_v54  ;;  %v497_v12 = vsel %vm494_vm7, %v485_v56, %v487_v29  ;;  %v498_v52 = vsel %vm494_vm7, %v491_v59, %v485_v56 }
 0x196   :  { %v516_v2 = vmul.f32 %v515_v62, %v6036_v41  ;;  %v517_v53 = vmul.f32 %v514_v7, %v6040_v45  ;;  %v499_v1 = vmul.f32 %v498_v52, %v6046_v48  ;;  %v500_v15 = vmul.f32 %v497_v12, %v6050_v49  ;;  %720 = vmatpush1.bf16.msra.mxu1 %v624_v58 }
 0x198   :  { %v623_v22 = vpack.c.bf16 %v517_v53, %v500_v15  ;;  %v622_v23 = vpack.c.bf16 %v516_v2, %v499_v1  ;;  %v747_v53 = vld [vmem:[%s7807_s4] sm:$0xff]  ;;  %s5446_s4 = smov 23  }
 0x199   :  { %4380 = vmatmul.mubr.msk.bf16.vlgmr.msra.gmra.mxu1 %vm647_vm9, %v354_v18  ;;  %v1003_v1 = vld [vmem:[%s7808_s14] sm:$0xff]  ;;  %s5447_s14 = smov 24  }
 0x19a   :  { %678 = vmatprep.subr.bf16.mxu0 %v623_v22  ;;  %993 = vmatprep.mubr.bf16.mxu1 %v7695_v4 }
 0x19b   :  { %679 = vmatpush1.bf16.msra.mxu0 %v622_v23 }
 0x19e   :  { %4378 = vmatmul.mubr.msk.bf16.vlgmr.msra.gmra.mxu0 %vm647_vm9, %v354_v18 }
 0x19f   :  { %952 = vmatprep.mubr.bf16.mxu0 %v7695_v4 }
 0x1a1   :  { %v645_v59 = vpop.permute.xlu0 %644 }
 0x259   :  { %v739_v13 = vpop.f32.mrf.mxu1 }
 0x25a   :  { %v740_v25 = vadd.f32 %v739_v13, %v645_v59 }
 0x25b   :  { %v741_v29 = vpop.f32.mrf.mxu1 }
 0x25c   :  { %v6068_v30 = vmax.f32 %v740_v25, 0.0  ;;  %v742_v7 = vadd.f32 %v741_v29, %v645_v59 }
 0x25d   :  { %v743_v38 = vpop.f32.mrf.mxu1 }
 0x25e   :  { %852 = vrot.lane.b32.xlu0 %v6068_v30, %s5425_s6  ;;  %v698_v40 = vpop.f32.mrf.mxu0  ;;  %v6082_v12 = vmax.f32 %v742_v7, 0.0 }
 0x25f   :  { %v699_v44 = vadd.f32 %v698_v40, %v645_v59  ;;  %v744_v46 = vpop.f32.mrf.mxu1 }
 0x260   :  { %v700_v54 = vpop.f32.mrf.mxu0 }
 0x261   :  { %v6072_v56 = vmax.f32 %v699_v44, 0.0  ;;  %v701_v52 = vadd.f32 %v700_v54, %v645_v59 }
 0x262   :  { %788 = vrot.lane.b32.xlu0 %v6068_v30, %s5427_s19  ;;  %v702_v58 = vpop.f32.mrf.mxu0 }
 0x263   :  { %864 = vrot.lane.b32.xlu1 %v6072_v56, %s5423_s13  ;;  %v6100_v2 = vmax.f32 %v701_v52, 0.0 }
 0x264   :  { %v703_v62 = vpop.f32.mrf.mxu0 }
 0x266   :  { %804 = vrot.lane.b32.xlu0 %v6068_v30, %s5428_s17 }
 0x267   :  { %868 = vrot.lane.b32.xlu1 %v6068_v30, %s5423_s13 }
 0x26a   :  { %870 = vrot.lane.b32.xlu0 %v6082_v12, %s5423_s13 }
 0x26b   :  { %832 = vrot.lane.b32.xlu1 %v6072_v56, %s5424_s24 }
 0x26e   :  { %838 = vrot.lane.b32.xlu0 %v6082_v12, %s5424_s24 }
 0x26f   :  { %848 = vrot.lane.b32.xlu1 %v6072_v56, %s5425_s6 }
 0x272   :  { %854 = vrot.lane.b32.xlu0 %v6082_v12, %s5425_s6 }
 0x273   :  { %836 = vrot.lane.b32.xlu1 %v6068_v30, %s5424_s24 }
 0x276   :  { %822 = vrot.lane.b32.xlu0 %v6082_v12, %s5426_s5 }
 0x277   :  { %816 = vrot.lane.b32.xlu1 %v6072_v56, %s5426_s5 }
 0x27a   :  { %786 = vrot.lane.b32.xlu0 %v6100_v2, %s5427_s19 }
 0x27b   :  { %820 = vrot.lane.b32.xlu1 %v6068_v30, %s5426_s5 }
 0x27e   :  { %866 = vrot.lane.b32.xlu0 %v6100_v2, %s5423_s13 }
 0x27f   :  { %756 = vrot.lane.b32.xlu1 %v6068_v30, %s5429_s0 }
 0x282   :  { %758 = vrot.lane.b32.xlu0 %v6082_v12, %s5429_s0 }
 0x283   :  { %772 = vrot.lane.b32.xlu1 %v6068_v30, %s5431_s15 }
 0x286   :  { %774 = vrot.lane.b32.xlu0 %v6082_v12, %s5431_s15 }
 0x287   :  { %790 = vrot.lane.b32.xlu1 %v6082_v12, %s5427_s19 }
 0x28a   :  { %770 = vrot.lane.b32.xlu0 %v6100_v2, %s5431_s15 }
 0x28b   :  { %806 = vrot.lane.b32.xlu1 %v6082_v12, %s5428_s17 }
 0x28e   :  { %850 = vrot.lane.b32.xlu0 %v6100_v2, %s5425_s6 }
 0x28f   :  { %802 = vrot.lane.b32.xlu1 %v6100_v2, %s5428_s17 }
 0x292   :  { %784 = vrot.lane.b32.xlu0 %v6072_v56, %s5427_s19 }
 0x293   :  { %754 = vrot.lane.b32.xlu1 %v6100_v2, %s5429_s0 }
 0x296   :  { %752 = vrot.lane.b32.xlu0 %v6072_v56, %s5429_s0 }
 0x297   :  { %834 = vrot.lane.b32.xlu1 %v6100_v2, %s5424_s24 }
 0x29a   :  { %902 = vperm.xlu0 %4869, %v747_v53  }
 0x29b   :  { %818 = vrot.lane.b32.xlu1 %v6100_v2, %s5426_s5 }
 0x29f   :  { %800 = vrot.lane.b32.xlu1 %v6072_v56, %s5428_s17 }
 0x2a3   :  { %768 = vrot.lane.b32.xlu1 %v6072_v56, %s5431_s15 }
 0x2a7   :  { %1010 = vperm.xlu1 %4870, %v1003_v1  }
 0x2d0   :  { %v6142_v15 = vpop.permute.xlu0 %852 }
 0x2d4   :  { %v6144_v18 = vpop.permute.xlu0 %788 }
 0x2d5   :  { %v865_v22 = vpop.permute.xlu1 %864 }
 0x2d8   :  { %v6146_v23 = vpop.permute.xlu0 %804 }
 0x2d9   :  { %v869_v59 = vpop.permute.xlu1 %868 }
 0x2dc   :  { %v871_v13 = vpop.permute.xlu0 %870 }
 0x2dd   :  { %v872_v25 = vsel %vm613_vm0, %v869_v59, %v871_v13  ;;  %v875_v29 = vsel %vm613_vm0, %v871_v13, %v865_v22  ;;  %v6152_v38 = vpop.permute.xlu1 %832 }
 0x2de   :  { %v878_v40 = vmul.f32 %v872_v25, %v5812_v21  ;;  %v879_v44 = vmul.f32 %v875_v29, %v5797_v11 }
 0x2e0   :  { %v898_v46 = vpack.c.bf16 %v878_v40, %v878_v40  ;;  %v899_v54 = vpack.c.bf16 %v879_v44, %v879_v44  ;;  %v839_v58 = vpop.permute.xlu0 %838 }
 0x2e1   :  { %v6156_v7 = vpop.permute.xlu1 %848  ;;  %v843_v52 = vsel %vm579_vm2, %v839_v58, %v6152_v38 }
 0x2e2   :  { %4383 = vmatprep.subr.msk.bf16.mxu1 %vm651_vm1, %v899_v54  ;;  %v915_v62 = vsel %vm651_vm1, %v898_v46, 0  ;;  %v847_v29 = vmul.f32 %v843_v52, %v5837_v39 }
 0x2e3   :  { %968 = vmatpush1.bf16.msra.mxu1 %v915_v62 }
 0x2e4   :  { %v855_v53 = vpop.permute.xlu0 %854 }
 0x2e5   :  { %v856_v1 = vsel %vm596_vm3, %v6142_v15, %v855_v53  ;;  %v859_v13 = vsel %vm596_vm3, %v855_v53, %v6156_v7  ;;  %v6169_v25 = vpop.permute.xlu1 %836 }
 0x2e6   :  { %v862_v40 = vmul.f32 %v856_v1, %v5857_v50  ;;  %v863_v44 = vmul.f32 %v859_v13, %v5844_v42  ;;  %v840_v46 = vsel %vm579_vm2, %v6169_v25, %v839_v58 }
 0x2e7   :  { %v846_v54 = vmul.f32 %v840_v46, %v5861_v51 }
 0x2e8   :  { %v823_v62 = vpop.permute.xlu0 %822  ;;  %v895_v4 = vpack.c.bf16 %v863_v44, %v847_v29 }
 0x2e9   :  { %v894_v47 = vpack.c.bf16 %v862_v40, %v846_v54  ;;  %v6178_v0 = vpop.permute.xlu1 %816 }
 0x2ea   :  { %v827_v53 = vsel %vm562_vm4, %v823_v62, %v6178_v0  ;;  %969 = vmatprep.subr.bf16.mxu1 %v895_v4 }
 0x2eb   :  { %v831_v52 = vmul.f32 %v827_v53, %v5897_v14  ;;  %970 = vmatpush1.bf16.msra.mxu1 %v894_v47 }
 0x2ec   :  { %v6184_v1 = vpop.permute.xlu0 %786 }
 0x2ed   :  { %v6186_v13 = vpop.permute.xlu1 %820  ;;  %v891_v58 = vpack.c.bf16 %v831_v52, %v6082_v12 }
 0x2ee   :  { %v824_v29 = vsel %vm562_vm4, %v6186_v13, %v823_v62 }
 0x2ef   :  { %v830_v40 = vmul.f32 %v824_v29, %v5924_v37  ;;  %971 = vmatprep.subr.bf16.mxu1 %v891_v58 }
 0x2f0   :  { %v867_v44 = vpop.permute.xlu0 %866 }
 0x2f1   :  { %v890_v46 = vpack.c.bf16 %v830_v40, %v6068_v30  ;;  %v873_v4 = vsel %vm613_vm0, %v867_v44, %v869_v59  ;;  %v874_v47 = vsel %vm613_vm0, %v865_v22, %v867_v44  ;;  %v757_v54 = vpop.permute.xlu1 %756 }
 0x2f2   :  { %v876_v53 = vmul.f32 %v874_v47, %v5809_v20  ;;  %v877_v52 = vmul.f32 %v873_v4, %v5806_v19 }
 0x2f3   :  { %972 = vmatpush1.bf16.msra.mxu1 %v890_v46 }
 0x2f4   :  { %v896_v57 = vpack.c.bf16 %v876_v53, %v876_v53  ;;  %v897_v62 = vpack.c.bf16 %v877_v52, %v877_v52  ;;  %v6200_v32 = vpop.permute.xlu0 %758  ;;  %v793_v52 = vsel %vm528_vm5, %v6184_v1, %v6144_v18 }
 0x2f5   :  { %v773_v58 = vpop.permute.xlu1 %772 }
 0x2f6   :  { %4381 = vmatprep.subr.msk.bf16.mxu0 %vm651_vm1, %v897_v62  ;;  %v909_v29 = vsel %vm651_vm1, %v896_v57, 0  ;;  %v760_v62 = vsel %vm494_vm7, %v757_v54, %v6200_v32 }
 0x2f7   :  { %927 = vmatpush1.bf16.msra.mxu0 %v909_v29 }
 0x2f8   :  { %v6204_v59 = vpop.permute.xlu0 %774 }
 0x2f9   :  { %v791_v40 = vpop.permute.xlu1 %790  ;;  %v776_v57 = vsel %vm511_vm8, %v773_v58, %v6204_v59 }
 0x2fa   :  { %v792_v22 = vsel %vm528_vm5, %v6144_v18, %v791_v40  ;;  %v783_v9 = vmul.f32 %v776_v57, %v6014_v55 }
 0x2fb   :  { %v799_v47 = vmul.f32 %v792_v22, %v5948_v63  ;;  %v798_v22 = vmul.f32 %v793_v52, %v5967_v17  ;;  %v767_v63 = vmul.f32 %v760_v62, %v6009_v3 }
 0x2fc   :  { %v6211_v46 = vpop.permute.xlu0 %770 }
 0x2fd   :  { %v6209_v44 = vpop.permute.xlu1 %806  ;;  %v777_v18 = vsel %vm511_vm8, %v6211_v46, %v773_v58 }
 0x2fe   :  { %v808_v4 = vsel %vm545_vm6, %v6146_v23, %v6209_v44 }
 0x2ff   :  { %v815_v53 = vmul.f32 %v808_v4, %v5953_v10 }
 0x300   :  { %v851_v10 = vpop.permute.xlu0 %850 }
 0x301   :  { %v803_v29 = vpop.permute.xlu1 %802  ;;  %v887_v27 = vpack.c.bf16 %v815_v53, %v799_v47  ;;  %v883_v53 = vpack.c.bf16 %v783_v9, %v767_v63  ;;  %v1005_v63 = vpack.c.bf16 %v6100_v2, %v6100_v2 }
 0x302   :  { %v809_v43 = vsel %vm545_vm6, %v803_v29, %v6146_v23  ;;  %v782_v23 = vmul.f32 %v777_v18, %v6024_v24 }
 0x303   :  { %v814_v4 = vmul.f32 %v809_v43, %v5963_v16  ;;  %973 = vmatprep.subr.bf16.mxu1 %v887_v27  ;;  %v857_v27 = vsel %vm596_vm3, %v851_v10, %v6142_v15  ;;  %v858_v43 = vsel %vm596_vm3, %v6156_v7, %v851_v10  ;;  %v1004_v15 = vpack.c.bf16 %v6072_v56, %v6072_v56 }
 0x304   :  { %v860_v10 = vmul.f32 %v858_v43, %v5878_v60  ;;  %v861_v7 = vmul.f32 %v857_v27, %v5882_v61  ;;  %v1007_v27 = vpack.c.bf16 %v6082_v12, %v6082_v12 }
 0x305   :  { %v886_v37 = vpack.c.bf16 %v814_v4, %v798_v22  ;;  %v755_v47 = vpop.permute.xlu1 %754  ;;  %v785_v22 = vpop.permute.xlu0 %784 }
 0x306   :  { %v761_v57 = vsel %vm494_vm7, %v755_v47, %v757_v54  ;;  %v795_v43 = vsel %vm528_vm5, %v791_v40, %v785_v22  ;;  %v7809_v40 = vmov 0  }
 0x307   :  { %v766_v52 = vmul.f32 %v761_v57, %v6028_v33  ;;  %974 = vmatpush1.bf16.msra.mxu1 %v886_v37 }
 0x308   :  { %975 = vmatprep.subr.bf16.mxu1 %v883_v53 }
 0x309   :  { %v882_v58 = vpack.c.bf16 %v782_v23, %v766_v52  ;;  %v835_v62 = vpop.permute.xlu1 %834  ;;  %v1018_v52 = vsel %vm651_vm1, %v1004_v15, 0  ;;  %v796_v15 = vmul.f32 %v795_v43, %v5985_v31 }
 0x30a   :  { %v841_v9 = vsel %vm579_vm2, %v835_v62, %v6169_v25  ;;  %v842_v37 = vsel %vm579_vm2, %v6152_v38, %v835_v62  ;;  %v746_v25 = vld [vmem:[#allocation4] sm:$0xf] }
 0x30b   :  { %v844_v54 = vmul.f32 %v842_v37, %v5888_v5  ;;  %v845_v4 = vmul.f32 %v841_v9, %v5892_v6  ;;  %976 = vmatpush1.bf16.msra.mxu1 %v882_v58 }
 0x30c   :  { %4385 = vmatprep.subr.msk.bf16.mxu1 %vm651_vm1, %v1005_v63  ;;  %v1006_v63 = vpack.c.bf16 %v6068_v30, %v6068_v30 }
 0x30d   :  { %v892_v18 = vpack.c.bf16 %v860_v10, %v844_v54  ;;  %v819_v38 = vpop.permute.xlu1 %818  ;;  %v893_v57 = vpack.c.bf16 %v861_v7, %v845_v4  ;;  %v1002_v7 = vld [vmem:[#allocation6] sm:$0xf] }
 0x30e   :  { %v825_v53 = vsel %vm562_vm4, %v819_v38, %v6186_v13  ;;  %v826_v23 = vsel %vm562_vm4, %v6178_v0, %v819_v38  ;;  %4384 = vmatmul.mubr.msk.bf16.vlgmr.msra.gmra.mxu1 %vm647_vm9, %v746_v25  ;;  %v794_v0 = vsel %vm528_vm5, %v785_v22, %v6184_v1  ;;  %v753_v13 = vpop.permute.xlu0 %752 }
 0x30f   :  { %v828_v58 = vmul.f32 %v826_v23, %v5916_v35  ;;  %v829_v62 = vmul.f32 %v825_v53, %v5920_v36  ;;  %928 = vmatprep.subr.bf16.mxu0 %v893_v57  ;;  %1044 = vmatpush1.bf16.msra.mxu1 %v1018_v52  ;;  %v1024_v57 = vsel %vm651_vm1, %v1006_v63, 0 }
 0x310   :  { %929 = vmatpush1.bf16.msra.mxu0 %v892_v18  ;;  %4387 = vmatprep.subr.msk.bf16.mxu1 %vm651_vm1, %v1007_v27 }
 0x311   :  { %v888_v9 = vpack.c.bf16 %v828_v58, %v6072_v56  ;;  %v801_v12 = vpop.permute.xlu1 %800  ;;  %v889_v37 = vpack.c.bf16 %v829_v62, %v6100_v2  ;;  %1061 = vmatprep.mubr.bf16.mxu1 %v7809_v40  ;;  %v797_v56 = vmul.f32 %v794_v0, %v5989_v34  ;;  %v763_v2 = vsel %vm494_vm7, %v6200_v32, %v753_v13 }
 0x312   :  { %v810_v10 = vsel %vm545_vm6, %v801_v12, %v803_v29  ;;  %v811_v1 = vsel %vm545_vm6, %v6209_v44, %v801_v12  ;;  %v762_v29 = vsel %vm494_vm7, %v753_v13, %v755_v47  ;;  %v764_v18 = vmul.f32 %v763_v2, %v6046_v48 }
 0x313   :  { %v812_v22 = vmul.f32 %v811_v1, %v5975_v26  ;;  %v813_v30 = vmul.f32 %v810_v10, %v5979_v28  ;;  %930 = vmatprep.subr.bf16.mxu0 %v889_v37  ;;  %v765_v47 = vmul.f32 %v762_v29, %v6050_v49 }
 0x314   :  { %931 = vmatpush1.bf16.msra.mxu0 %v888_v9 }
 0x315   :  { %v884_v54 = vpack.c.bf16 %v812_v22, %v796_v15  ;;  %v769_v4 = vpop.permute.xlu1 %768  ;;  %v885_v44 = vpack.c.bf16 %v813_v30, %v797_v56  ;;  %v903_v15 = vpop.permute.xlu0 %902 }
 0x316   :  { %v778_v38 = vsel %vm511_vm8, %v769_v4, %v6211_v46  ;;  %v779_v32 = vsel %vm511_vm8, %v6204_v59, %v769_v4  ;;  %4386 = vmatmul.mubr.msk.bf16.vlgmr.msra.gmra.mxu1 %vm1013_vm10, %v1002_v7 }
 0x317   :  { %v780_v53 = vmul.f32 %v779_v32, %v6036_v41  ;;  %v781_v23 = vmul.f32 %v778_v38, %v6040_v45  ;;  %1085 = vmatpush1.bf16.msra.mxu1 %v1024_v57  ;;  %932 = vmatprep.subr.bf16.mxu0 %v885_v44 }
 0x318   :  { %933 = vmatpush1.bf16.msra.mxu0 %v884_v54  ;;  %1102 = vmatprep.mubr.bf16.mxu1 %v7809_v40 }
 0x319   :  { %v880_v46 = vpack.c.bf16 %v780_v53, %v764_v18  ;;  %v881_v52 = vpack.c.bf16 %v781_v23, %v765_v47 }
 0x31b   :  { %934 = vmatprep.subr.bf16.mxu0 %v881_v52 }
 0x31c   :  { %935 = vmatpush1.bf16.msra.mxu0 %v880_v46 }
 0x31e   :  { %4388 = vmatmul.mubr.msk.bf16.vlgmr.msra.gmra.mxu1 %vm1013_vm10, %v1002_v7 }
 0x31f   :  { %4382 = vmatmul.mubr.msk.bf16.vlgmr.msra.gmra.mxu0 %vm647_vm9, %v746_v25  ;;  %1542 = vmatprep.mubr.bf16.mxu1 %v7809_v40 }
 0x320   :  { %1501 = vmatprep.mubr.bf16.mxu0 %v7809_v40 }
 0x322   :  { %v1011_v9 = vpop.permute.xlu1 %1010 }
 0x3ce   :  { %v995_v59 = vpop.f32.mrf.mxu1 }
 0x3cf   :  { %v6344_v57 = vadd.f32 %v995_v59, %v903_v15 }
 0x3d0   :  { %v997_v27 = vpop.f32.mrf.mxu1 }
 0x3d1   :  { %7812 = vst [vmem:[#allocation82_spill] sm:$0xff] %v6344_v57  ;;  %v6365_v46 = vadd.f32 %v997_v27, %v903_v15 }
 0x3d2   :  { %v999_v43 = vpop.f32.mrf.mxu1 }
 0x3d3   :  { %7813 = vst [vmem:[#allocation83_spill] sm:$0xff] %v6365_v46 }
 0x3d4   :  { %v1000_v58 = vpop.f32.mrf.mxu1 }
 0x3d6   :  { %v1063_v62 = vpop.f32.mrf.mxu1 }
 0x3d7   :  { %v1064_v37 = vadd.f32 %v1063_v62, %v1011_v9 }
 0x3d8   :  { %v1065_v0 = vpop.f32.mrf.mxu1 }
 0x3d9   :  { %v1066_v2 = vadd.f32 %v1065_v0, %v1011_v9 }
 0x3da   :  { %v1067_v13 = vpop.f32.mrf.mxu1 }
 0x3dc   :  { %v1068_v12 = vpop.f32.mrf.mxu1 }
 0x3de   :  { %v1104_v63 = vpop.f32.mrf.mxu1 }
 0x3df   :  { %v954_v10 = vpop.f32.mrf.mxu0  ;;  %v1105_v32 = vadd.f32 %v1104_v63, %v1011_v9 }
 0x3e0   :  { %v6318_v1 = vadd.f32 %v954_v10, %v903_v15  ;;  %v1106_v25 = vpop.f32.mrf.mxu1 }
 0x3e1   :  { %v956_v56 = vpop.f32.mrf.mxu0  ;;  %v1113_v47 = vadd.f32 %v1105_v32, %v6344_v57  ;;  %v1107_v23 = vadd.f32 %v1106_v25, %v1011_v9  ;;  %v1296_v9 = vld [vmem:[%s7814_s16] sm:$0xff]  ;;  %s5448_s16 = smov 26  }
 0x3e2   :  { %7810 = vst [vmem:[#allocation80_spill] sm:$0xff] %v6318_v1  ;;  %v6320_v22 = vadd.f32 %v956_v56, %v903_v15  ;;  %v1111_v30 = vadd.f32 %v1064_v37, %v6318_v1  ;;  %v1108_v7 = vpop.f32.mrf.mxu1 }
 0x3e3   :  { %v958_v29 = vpop.f32.mrf.mxu0  ;;  %v6355_v53 = vmax.f32 %v1113_v47, 0.0  ;;  %v1114_v52 = vadd.f32 %v1107_v23, %v6365_v46 }
 0x3e4   :  { %7811 = vst [vmem:[#allocation81_spill] sm:$0xff] %v6320_v22  ;;  %v6323_v54 = vmax.f32 %v1111_v30, 0.0  ;;  %v1112_v4 = vadd.f32 %v1066_v2, %v6320_v22  ;;  %v1109_v44 = vpop.f32.mrf.mxu1 }
 0x3e5   :  { %v959_v18 = vpop.f32.mrf.mxu0  ;;  %v6376_v59 = vmax.f32 %v1114_v52, 0.0 }
 0x3e6   :  { %1397 = vrot.lane.b32.xlu1 %v6323_v54, %s5425_s6  ;;  %1413 = vrot.lane.b32.xlu0 %v6323_v54, %s5423_s13  ;;  %v6330_v38 = vmax.f32 %v1112_v4, 0.0 }
 0x3ea   :  { %1415 = vrot.lane.b32.xlu1 %v6330_v38, %s5423_s13  ;;  %1381 = vrot.lane.b32.xlu0 %v6323_v54, %s5424_s24 }
 0x3ee   :  { %1335 = vrot.lane.b32.xlu1 %v6330_v38, %s5427_s19  ;;  %1365 = vrot.lane.b32.xlu0 %v6323_v54, %s5426_s5 }
 0x3f2   :  { %1351 = vrot.lane.b32.xlu1 %v6330_v38, %s5428_s17  ;;  %1333 = vrot.lane.b32.xlu0 %v6323_v54, %s5427_s19 }
 0x3f6   :  { %1303 = vrot.lane.b32.xlu1 %v6330_v38, %s5429_s0  ;;  %1349 = vrot.lane.b32.xlu0 %v6323_v54, %s5428_s17 }
 0x3fa   :  { %1319 = vrot.lane.b32.xlu1 %v6330_v38, %s5431_s15  ;;  %1301 = vrot.lane.b32.xlu0 %v6323_v54, %s5429_s0 }
 0x3fe   :  { %1385 = vrot.lane.b32.xlu1 %v6355_v53, %s5424_s24  ;;  %1317 = vrot.lane.b32.xlu0 %v6323_v54, %s5431_s15 }
 0x402   :  { %1401 = vrot.lane.b32.xlu1 %v6355_v53, %s5425_s6  ;;  %1383 = vrot.lane.b32.xlu0 %v6330_v38, %s5424_s24 }
 0x406   :  { %1369 = vrot.lane.b32.xlu1 %v6355_v53, %s5426_s5  ;;  %1399 = vrot.lane.b32.xlu0 %v6330_v38, %s5425_s6 }
 0x40a   :  { %1353 = vrot.lane.b32.xlu1 %v6355_v53, %s5428_s17  ;;  %1367 = vrot.lane.b32.xlu0 %v6330_v38, %s5426_s5 }
 0x40e   :  { %1419 = vrot.lane.b32.xlu1 %v6376_v59, %s5423_s13  ;;  %1417 = vrot.lane.b32.xlu0 %v6355_v53, %s5423_s13 }
 0x412   :  { %1403 = vrot.lane.b32.xlu1 %v6376_v59, %s5425_s6  ;;  %1337 = vrot.lane.b32.xlu0 %v6355_v53, %s5427_s19 }
 0x416   :  { %1371 = vrot.lane.b32.xlu1 %v6376_v59, %s5426_s5  ;;  %1387 = vrot.lane.b32.xlu0 %v6376_v59, %s5424_s24 }
 0x41a   :  { %1355 = vrot.lane.b32.xlu1 %v6376_v59, %s5428_s17  ;;  %1339 = vrot.lane.b32.xlu0 %v6376_v59, %s5427_s19 }
 0x41e   :  { %1323 = vrot.lane.b32.xlu1 %v6376_v59, %s5431_s15  ;;  %1307 = vrot.lane.b32.xlu0 %v6376_v59, %s5429_s0 }
 0x422   :  { %1321 = vrot.lane.b32.xlu1 %v6355_v53, %s5431_s15  ;;  %1305 = vrot.lane.b32.xlu0 %v6355_v53, %s5429_s0 }
 0x426   :  { %1117 = vrot.lane.b32.xlu1 %v6320_v22, %s5429_s0  ;;  %1115 = vrot.lane.b32.xlu0 %v6318_v1, %s5429_s0 }
 0x42a   :  { %1121 = vrot.lane.b32.xlu1 %v6365_v46, %s5429_s0  ;;  %1119 = vrot.lane.b32.xlu0 %v6344_v57, %s5429_s0 }
 0x42e   :  { %1133 = vrot.lane.b32.xlu1 %v6320_v22, %s5431_s15  ;;  %1131 = vrot.lane.b32.xlu0 %v6318_v1, %s5431_s15 }
 0x432   :  { %1137 = vrot.lane.b32.xlu1 %v6365_v46, %s5431_s15  ;;  %1135 = vrot.lane.b32.xlu0 %v6344_v57, %s5431_s15 }
 0x436   :  { %1153 = vrot.lane.b32.xlu1 %v6320_v22, %s5427_s19  ;;  %1151 = vrot.lane.b32.xlu0 %v6318_v1, %s5427_s19 }
 0x43a   :  { %1157 = vrot.lane.b32.xlu1 %v6365_v46, %s5427_s19  ;;  %1155 = vrot.lane.b32.xlu0 %v6344_v57, %s5427_s19 }
 0x43e   :  { %1173 = vrot.lane.b32.xlu1 %v6320_v22, %s5428_s17  ;;  %1171 = vrot.lane.b32.xlu0 %v6318_v1, %s5428_s17 }
 0x442   :  { %1177 = vrot.lane.b32.xlu1 %v6365_v46, %s5428_s17  ;;  %1175 = vrot.lane.b32.xlu0 %v6344_v57, %s5428_s17 }
 0x446   :  { %1197 = vrot.lane.b32.xlu1 %v6320_v22, %s5426_s5  ;;  %1195 = vrot.lane.b32.xlu0 %v6318_v1, %s5426_s5 }
 0x44a   :  { %1201 = vrot.lane.b32.xlu1 %v6365_v46, %s5426_s5  ;;  %1199 = vrot.lane.b32.xlu0 %v6344_v57, %s5426_s5 }
 0x44e   :  { %1217 = vrot.lane.b32.xlu1 %v6320_v22, %s5424_s24  ;;  %1215 = vrot.lane.b32.xlu0 %v6318_v1, %s5424_s24 }
 0x452   :  { %1221 = vrot.lane.b32.xlu1 %v6365_v46, %s5424_s24  ;;  %1219 = vrot.lane.b32.xlu0 %v6344_v57, %s5424_s24 }
 0x456   :  { %1237 = vrot.lane.b32.xlu1 %v6320_v22, %s5425_s6  ;;  %1235 = vrot.lane.b32.xlu0 %v6318_v1, %s5425_s6 }
 0x458   :  { %v6454_v27 = vpop.permute.xlu1 %1397  ;;  %v1414_v43 = vpop.permute.xlu0 %1413 }
 0x45a   :  { %1241 = vrot.lane.b32.xlu1 %v6365_v46, %s5425_s6  ;;  %1239 = vrot.lane.b32.xlu0 %v6344_v57, %s5425_s6 }
 0x45c   :  { %v1416_v58 = vpop.permute.xlu1 %1415  ;;  %v6460_v62 = vpop.permute.xlu0 %1381 }
 0x45d   :  { %v1423_v29 = vsel %vm613_vm0, %v1414_v43, %v1416_v58 }
 0x45e   :  { %1257 = vrot.lane.b32.xlu1 %v6320_v22, %s5423_s13  ;;  %1255 = vrot.lane.b32.xlu0 %v6318_v1, %s5423_s13  ;;  %v1425_v18 = vmul.f32 %v1423_v29, %v5809_v20 }
 0x460   :  { %v6466_v0 = vpop.permute.xlu1 %1335  ;;  %v6468_v13 = vpop.permute.xlu0 %1365  ;;  %v1445_v52 = vpack.c.bf16 %v1425_v18, %v1425_v18 }
 0x462   :  { %1261 = vrot.lane.b32.xlu1 %v6365_v46, %s5423_s13  ;;  %1259 = vrot.lane.b32.xlu0 %v6344_v57, %s5423_s13 }
 0x464   :  { %v6475_v12 = vpop.permute.xlu1 %1351  ;;  %v6477_v37 = vpop.permute.xlu0 %1333 }
 0x465   :  { %v1343_v46 = vsel %vm528_vm5, %v6477_v37, %v6466_v0 }
 0x466   :  { %1451 = vperm.xlu0 %4869, %v1296_v9  }
 0x468   :  { %v6479_v63 = vpop.permute.xlu1 %1303  ;;  %v6481_v15 = vpop.permute.xlu0 %1349 }
 0x469   :  { %v1359_v23 = vsel %vm545_vm6, %v6481_v15, %v6475_v12 }
 0x46a   :  { %v6505_v57 = vmul.f32 %v1359_v23, %v5979_v28 }
 0x46c   :  { %v6483_v10 = vpop.permute.xlu1 %1319  ;;  %v6485_v25 = vpop.permute.xlu0 %1301 }
 0x470   :  { %v1386_v56 = vpop.permute.xlu1 %1385  ;;  %v6487_v2 = vpop.permute.xlu0 %1317 }
 0x474   :  { %v1402_v30 = vpop.permute.xlu1 %1401  ;;  %v1384_v7 = vpop.permute.xlu0 %1383 }
 0x475   :  { %v1390_v29 = vsel %vm579_vm2, %v1384_v7, %v1386_v56  ;;  %v1391_v24 = vsel %vm579_vm2, %v6460_v62, %v1384_v7 }
 0x478   :  { %v1370_v4 = vpop.permute.xlu1 %1369  ;;  %v1400_v44 = vpop.permute.xlu0 %1399 }
 0x479   :  { %v1406_v9 = vsel %vm596_vm3, %v1400_v44, %v1402_v30  ;;  %v1407_v20 = vsel %vm596_vm3, %v6454_v27, %v1400_v44 }
 0x47a   :  { %v1410_v28 = vmul.f32 %v1406_v9, %v5882_v61  ;;  %v1409_v48 = vmul.f32 %v1407_v20, %v5878_v60  ;;  %v1458_v20 = vsel %vm651_vm1, %v1445_v52, 0 }
 0x47c   :  { %v6492_v32 = vpop.permute.xlu1 %1353  ;;  %v1368_v47 = vpop.permute.xlu0 %1367 }
 0x47d   :  { %v1374_v1 = vsel %vm562_vm4, %v1368_v47, %v1370_v4 }
 0x480   :  { %v1420_v22 = vpop.permute.xlu1 %1419  ;;  %v1418_v18 = vpop.permute.xlu0 %1417 }
 0x481   :  { %v1424_v40 = vsel %vm613_vm0, %v1420_v22, %v1414_v43  ;;  %v1421_v3 = vsel %vm613_vm0, %v1418_v18, %v1420_v22  ;;  %v1422_v23 = vsel %vm613_vm0, %v1416_v58, %v1418_v18  ;;  %v1394_v43 = vmul.f32 %v1390_v29, %v5892_v6 }
 0x482   :  { %v1428_v33 = vmul.f32 %v1424_v40, %v5797_v11  ;;  %v1426_v44 = vmul.f32 %v1422_v23, %v5806_v19  ;;  %v1427_v55 = vmul.f32 %v1421_v3, %v5812_v21  ;;  %v1375_v22 = vsel %vm562_vm4, %v6468_v13, %v1368_v47 }
 0x483   :  { %v1378_v58 = vmul.f32 %v1374_v1, %v5920_v36  ;;  %v1346_v3 = vmul.f32 %v1343_v46, %v5989_v34  ;;  %v1393_v29 = vmul.f32 %v1391_v24, %v5888_v5  ;;  %v1327_v24 = vsel %vm511_vm8, %v6487_v2, %v6483_v10 }
 0x484   :  { %v1448_v9 = vpack.c.bf16 %v1428_v33, %v1428_v33  ;;  %v1446_v40 = vpack.c.bf16 %v1426_v44, %v1426_v44  ;;  %v1447_v18 = vpack.c.bf16 %v1427_v55, %v1427_v55  ;;  %v1404_v23 = vpop.permute.xlu1 %1403  ;;  %v1338_v11 = vpop.permute.xlu0 %1337  ;;  %v1442_v33 = vpack.c.bf16 %v1410_v28, %v1394_v43 }
 0x485   :  { %v1405_v7 = vsel %vm596_vm3, %v1402_v30, %v1404_v23  ;;  %v1377_v55 = vmul.f32 %v1375_v22, %v5916_v35  ;;  %v1408_v46 = vsel %vm596_vm3, %v1404_v23, %v6454_v27  ;;  %v1434_v30 = vpack.c.bf16 %v6505_v57, %v1346_v3 }
 0x486   :  { %4389 = vmatprep.subr.msk.bf16.mxu0 %vm651_vm1, %v1446_v40  ;;  %4391 = vmatprep.subr.msk.bf16.mxu1 %vm651_vm1, %v1448_v9  ;;  %v1464_v1 = vsel %vm651_vm1, %v1447_v18, 0  ;;  %v1441_v47 = vpack.c.bf16 %v1409_v48, %v1393_v29  ;;  %v1411_v52 = vmul.f32 %v1405_v7, %v5857_v50  ;;  %v1438_v43 = vpack.c.bf16 %v1378_v58, %v6330_v38  ;;  %v7815_v18 = vld [vmem:[#allocation65_spill] sm:$0xff] }
 0x487   :  { %1476 = vmatpush1.bf16.msra.mxu0 %v1458_v20  ;;  %1517 = vmatpush1.bf16.msra.mxu1 %v1464_v1  ;;  %v1412_v9 = vmul.f32 %v1408_v46, %v5844_v42 }
 0x488   :  { %v1372_v44 = vpop.permute.xlu1 %1371  ;;  %1477 = vmatprep.subr.bf16.mxu0 %v1442_v33  ;;  %v1388_v28 = vpop.permute.xlu0 %1387 }
 0x489   :  { %v1373_v27 = vsel %vm562_vm4, %v1370_v4, %v1372_v44  ;;  %v1376_v57 = vsel %vm562_vm4, %v1372_v44, %v6468_v13  ;;  %v1389_v22 = vsel %vm579_vm2, %v1386_v56, %v1388_v28  ;;  %v1392_v48 = vsel %vm579_vm2, %v1388_v28, %v6460_v62 }
 0x48a   :  { %v1380_v40 = vmul.f32 %v1376_v57, %v5897_v14  ;;  %v1395_v38 = vmul.f32 %v1389_v22, %v5861_v51  ;;  %v1396_v58 = vmul.f32 %v1392_v48, %v5837_v39  ;;  %v1311_v13 = vsel %vm494_vm7, %v6485_v25, %v6479_v63 }
 0x48b   :  { %v1330_v4 = vmul.f32 %v1327_v24, %v6040_v45  ;;  %v1437_v56 = vpack.c.bf16 %v1377_v55, %v6323_v54  ;;  %v1342_v62 = vsel %vm528_vm5, %v6466_v0, %v1338_v11  ;;  %1478 = vmatpush1.bf16.msra.mxu0 %v1441_v47  ;;  %v1379_v23 = vmul.f32 %v1373_v27, %v7815_v18  ;;  %v7816_v24 = vld [vmem:[#allocation69_spill] sm:$0xff] }
 0x48c   :  { %v1443_v3 = vpack.c.bf16 %v1411_v52, %v1395_v38  ;;  %v1356_v7 = vpop.permute.xlu1 %1355  ;;  %1479 = vmatprep.subr.bf16.mxu0 %v1438_v43  ;;  %v1340_v29 = vpop.permute.xlu0 %1339  ;;  %v1444_v20 = vpack.c.bf16 %v1412_v9, %v1396_v58  ;;  %v1440_v1 = vpack.c.bf16 %v1380_v40, %v6376_v59  ;;  %v7817_v52 = vld [vmem:[#allocation68_spill] sm:$0xff]  ;;  %v1314_v28 = vmul.f32 %v1311_v13, %v6050_v49  ;;  %v7818_v40 = vld [vmem:[#allocation79_spill] sm:$0xff] }
 0x48d   :  { %v1357_v33 = vsel %vm545_vm6, %v6492_v32, %v1356_v7  ;;  %v1360_v54 = vsel %vm545_vm6, %v1356_v7, %v6481_v15  ;;  %v1341_v0 = vsel %vm528_vm5, %v1338_v11, %v1340_v29  ;;  %v1344_v55 = vsel %vm528_vm5, %v1340_v29, %v6477_v37  ;;  %v7820_v7 = vld [vmem:[#allocation75_spill] sm:$0xff] }
 0x48e   :  { %v1361_v46 = vmul.f32 %v1360_v54, %v5975_v26  ;;  %v1364_v47 = vmul.f32 %v1357_v33, %v7816_v24  ;;  %v1345_v59 = vmul.f32 %v1344_v55, %v5985_v31  ;;  %v1348_v44 = vmul.f32 %v1341_v0, %v7817_v52  ;;  %1518 = vmatprep.subr.bf16.mxu1 %v1444_v20  ;;  %v7821_v20 = vld [vmem:[#allocation77_spill] sm:$0xff]  ;;  %v7822_v33 = vld [vmem:[#allocation74_spill] sm:$0xff] }
 0x48f   :  { %v1358_v11 = vsel %vm545_vm6, %v6475_v12, %v6492_v32  ;;  %1480 = vmatpush1.bf16.msra.mxu0 %v1437_v56  ;;  %1519 = vmatpush1.bf16.msra.mxu1 %v1443_v3  ;;  %v1347_v37 = vmul.f32 %v1342_v62, %v5967_v17  ;;  %v1439_v57 = vpack.c.bf16 %v1379_v23, %v6355_v53  ;;  %v7819_v23 = vld [vmem:[#allocation76_spill] sm:$0xff]  ;;  %v1295_v0 = vld [vmem:[#allocation7] sm:$0xf] }
 0x490   :  { %v1433_v15 = vpack.c.bf16 %v1361_v46, %v1345_v59  ;;  %v1324_v43 = vpop.permute.xlu1 %1323  ;;  %1481 = vmatprep.subr.bf16.mxu0 %v1434_v30  ;;  %1520 = vmatprep.subr.bf16.mxu1 %v1440_v1  ;;  %v1308_v27 = vpop.permute.xlu0 %1307  ;;  %v1430_v12 = vpack.c.bf16 %v1330_v4, %v1314_v28  ;;  %v1363_v32 = vmul.f32 %v1358_v11, %v5963_v16  ;;  %v7823_v46 = vmov 0  }
 0x491   :  { %v1328_v22 = vsel %vm511_vm8, %v1324_v43, %v6487_v2  ;;  %v1312_v48 = vsel %vm494_vm7, %v1308_v27, %v6485_v25  ;;  %v1436_v30 = vpack.c.bf16 %v1364_v47, %v1348_v44 }
 0x492   :  { %v1329_v9 = vmul.f32 %v1328_v22, %v6036_v41  ;;  %v1313_v38 = vmul.f32 %v1312_v48, %v7818_v40  ;;  %v1435_v58 = vpack.c.bf16 %v1363_v32, %v1347_v37 }
 0x493   :  { %1482 = vmatpush1.bf16.msra.mxu0 %v1433_v15  ;;  %1521 = vmatpush1.bf16.msra.mxu1 %v1439_v57 }
 0x494   :  { %v1429_v53 = vpack.c.bf16 %v1329_v9, %v1313_v38  ;;  %v1322_v13 = vpop.permute.xlu1 %1321  ;;  %1483 = vmatprep.subr.bf16.mxu0 %v1430_v12  ;;  %1522 = vmatprep.subr.bf16.mxu1 %v1436_v30  ;;  %v1306_v2 = vpop.permute.xlu0 %1305 }
 0x495   :  { %v1325_v56 = vsel %vm511_vm8, %v1322_v13, %v1324_v43  ;;  %v1326_v25 = vsel %vm511_vm8, %v6483_v10, %v1322_v13  ;;  %v1309_v4 = vsel %vm494_vm7, %v1306_v2, %v1308_v27  ;;  %v1310_v62 = vsel %vm494_vm7, %v6479_v63, %v1306_v2 }
 0x496   :  { %v1331_v3 = vmul.f32 %v1326_v25, %v7819_v23  ;;  %v1332_v29 = vmul.f32 %v1325_v56, %v7820_v7  ;;  %v1315_v1 = vmul.f32 %v1310_v62, %v7821_v20  ;;  %v1316_v54 = vmul.f32 %v1309_v4, %v7822_v33 }
 0x497   :  { %1484 = vmatpush1.bf16.msra.mxu0 %v1429_v53  ;;  %1523 = vmatpush1.bf16.msra.mxu1 %v1435_v58 }
 0x498   :  { %v1431_v55 = vpack.c.bf16 %v1331_v3, %v1315_v1  ;;  %v1432_v10 = vpack.c.bf16 %v1332_v29, %v1316_v54  ;;  %v1116_v63 = vpop.permute.xlu0 %1115  ;;  %v1118_v47 = vpop.permute.xlu1 %1117 }
 0x49a   :  { %4390 = vmatmul.mubr.msk.bf16.vlgmr.msra.gmra.mxu0 %vm647_vm9, %v1295_v0  ;;  %1524 = vmatprep.subr.bf16.mxu1 %v1432_v10  ;;  %v1125_v10 = vsel %vm494_vm7, %v1116_v63, %v1118_v47 }
 0x49b   :  { %1525 = vmatpush1.bf16.msra.mxu1 %v1431_v55  ;;  %1887 = vmatprep.mubr.bf16.mxu0 %v7823_v46  ;;  %v1128_v52 = vmul.f32 %v1125_v10, %v6050_v49 }
 0x49c   :  { %v6626_v59 = vpop.permute.xlu0 %1119  ;;  %v6628_v44 = vpop.permute.xlu1 %1121 }
 0x49d   :  { %v1126_v3 = vsel %vm494_vm7, %v6628_v44, %v1116_v63 }
 0x49e   :  { %4392 = vmatmul.mubr.msk.bf16.vlgmr.msra.gmra.mxu1 %vm647_vm9, %v1295_v0 }
 0x49f   :  { %1928 = vmatprep.mubr.bf16.mxu1 %v7823_v46  ;;  %v1127_v46 = vmul.f32 %v1126_v3, %v7818_v40  ;;  %v1124_v3 = vsel %vm494_vm7, %v1118_v47, %v6626_v59 }
 0x4a0   :  { %v1132_v28 = vpop.permute.xlu0 %1131  ;;  %v1134_v11 = vpop.permute.xlu1 %1133 }
 0x4a1   :  { %v1141_v0 = vsel %vm511_vm8, %v1132_v28, %v1134_v11 }
 0x4a4   :  { %v6630_v37 = vpop.permute.xlu0 %1135  ;;  %v6632_v15 = vpop.permute.xlu1 %1137 }
 0x4a5   :  { %v1142_v62 = vsel %vm511_vm8, %v6632_v15, %v1132_v28  ;;  %v1140_v28 = vsel %vm511_vm8, %v1134_v11, %v6630_v37 }
 0x4a6   :  { %v1143_v1 = vmul.f32 %v1142_v62, %v6036_v41  ;;  %v1144_v62 = vmul.f32 %v1141_v0, %v6040_v45  ;;  %v1145_v11 = vmul.f32 %v1140_v28, %v7819_v23 }
 0x4a8   :  { %v1152_v43 = vpop.permute.xlu0 %1151  ;;  %v1154_v27 = vpop.permute.xlu1 %1153  ;;  %v1147_v41 = vadd.f32 %v1143_v1, %v1127_v46  ;;  %v1148_v0 = vadd.f32 %v1144_v62, %v1128_v52 }
 0x4a9   :  { %v1161_v14 = vsel %vm528_vm5, %v1152_v43, %v1154_v27 }
 0x4ac   :  { %v6634_v57 = vpop.permute.xlu0 %1155  ;;  %v6636_v22 = vpop.permute.xlu1 %1157 }
 0x4ad   :  { %v1162_v29 = vsel %vm528_vm5, %v6636_v22, %v1152_v43  ;;  %v1164_v43 = vmul.f32 %v1161_v14, %v5989_v34  ;;  %v1160_v46 = vsel %vm528_vm5, %v1154_v27, %v6634_v57 }
 0x4ae   :  { %v1163_v42 = vmul.f32 %v1162_v29, %v5985_v31  ;;  %v1165_v14 = vmul.f32 %v1160_v46, %v5967_v17 }
 0x4af   :  { %v1168_v27 = vadd.f32 %v1164_v43, %v1148_v0 }
 0x4b0   :  { %v1172_v48 = vpop.permute.xlu0 %1171  ;;  %v1174_v12 = vpop.permute.xlu1 %1173  ;;  %v1167_v29 = vadd.f32 %v1163_v42, %v1147_v41  ;;  %v1129_v42 = vmul.f32 %v1124_v3, %v7821_v20 }
 0x4b1   :  { %v1181_v63 = vsel %vm545_vm6, %v1172_v48, %v1174_v12 }
 0x4b2   :  { %v1149_v28 = vadd.f32 %v1145_v11, %v1129_v42 }
 0x4b4   :  { %v6638_v32 = vpop.permute.xlu0 %1175  ;;  %v6640_v9 = vpop.permute.xlu1 %1177  ;;  %v1169_v20 = vadd.f32 %v1165_v14, %v1149_v28 }
 0x4b5   :  { %v1182_v55 = vsel %vm545_vm6, %v6640_v9, %v1172_v48  ;;  %v1180_v48 = vsel %vm545_vm6, %v1174_v12, %v6638_v32 }
 0x4b6   :  { %v1183_v24 = vmul.f32 %v1182_v55, %v5975_v26  ;;  %v7824_v55 = vld [vmem:[#allocation72_spill] sm:$0xff]  ;;  %v1185_v52 = vmul.f32 %v1180_v48, %v5963_v16 }
 0x4b7   :  { %v1184_v10 = vmul.f32 %v1181_v63, %v7824_v55  ;;  %v7825_v63 = vld [vmem:[#allocation80_spill] sm:$0xff] }
 0x4b8   :  { %v6642_v38 = vpop.permute.xlu0 %1195  ;;  %v1198_v30 = vpop.permute.xlu1 %1197  ;;  %v1187_v40 = vadd.f32 %v1183_v24, %v1167_v29  ;;  %v1189_v48 = vadd.f32 %v1185_v52, %v1169_v20 }
 0x4b9   :  { %v1205_v41 = vsel %vm562_vm4, %v6642_v38, %v1198_v30  ;;  %v1188_v62 = vadd.f32 %v1184_v10, %v1168_v27 }
 0x4ba   :  { %v1191_v3 = vadd.f32 %v1187_v40, %v7825_v63  ;;  %v1207_v29 = vmul.f32 %v1205_v41, %v5916_v35  ;;  %v7826_v41 = vld [vmem:[#allocation81_spill] sm:$0xff] }
 0x4bb   :  { %v1192_v27 = vadd.f32 %v1188_v62, %v7826_v41 }
 0x4bc   :  { %v1200_v58 = vpop.permute.xlu0 %1199  ;;  %v6644_v53 = vpop.permute.xlu1 %1201  ;;  %v1211_v14 = vadd.f32 %v1207_v29, %v1191_v3  ;;  %v7827_v3 = vld [vmem:[#allocation58_spill] sm:$0xff] }
 0x4bd   :  { %v1204_v24 = vsel %vm562_vm4, %v1198_v30, %v1200_v58  ;;  %v1203_v30 = vsel %vm562_vm4, %v1200_v58, %v6644_v53 }
 0x4be   :  { %v1208_v0 = vmul.f32 %v1204_v24, %v5920_v36  ;;  %v1209_v24 = vmul.f32 %v1203_v30, %v7815_v18 }
 0x4c0   :  { %v6646_v13 = vpop.permute.xlu0 %1215  ;;  %v1218_v2 = vpop.permute.xlu1 %1217  ;;  %v1212_v52 = vadd.f32 %v1208_v0, %v1192_v27 }
 0x4c1   :  { %v1225_v12 = vsel %vm579_vm2, %v6646_v13, %v1218_v2 }
 0x4c2   :  { %v1227_v10 = vmul.f32 %v1225_v12, %v5888_v5 }
 0x4c4   :  { %v1220_v56 = vpop.permute.xlu0 %1219  ;;  %v6648_v25 = vpop.permute.xlu1 %1221  ;;  %v1231_v12 = vadd.f32 %v1227_v10, %v1211_v14  ;;  %v5086_v10 = vld [vmem:[%s7782_s11 + $0x20] sm:$0x3] }
 0x4c5   :  { %v1224_v43 = vsel %vm579_vm2, %v1218_v2, %v1220_v56  ;;  %v1223_v20 = vsel %vm579_vm2, %v1220_v56, %v6648_v25 }
 0x4c6   :  { %v1228_v28 = vmul.f32 %v1224_v43, %v5892_v6  ;;  %v7828_v43 = vld [vmem:[#allocation82_spill] sm:$0xff]  ;;  %v1229_v56 = vmul.f32 %v1223_v20, %v5861_v51 }
 0x4c8   :  { %v6650_v4 = vpop.permute.xlu0 %1235  ;;  %v1238_v54 = vpop.permute.xlu1 %1237  ;;  %v1232_v41 = vadd.f32 %v1228_v28, %v1212_v52 }
 0x4c9   :  { %v1245_v11 = vsel %vm596_vm3, %v6650_v4, %v1238_v54 }
 0x4ca   :  { %v1247_v58 = vmul.f32 %v1245_v11, %v5878_v60  ;;  %v1193_v11 = vadd.f32 %v1189_v48, %v7828_v43 }
 0x4cc   :  { %v1240_v39 = vpop.permute.xlu0 %1239  ;;  %v6688_v1 = vpop.permute.xlu1 %1241  ;;  %v1251_v23 = vadd.f32 %v1247_v58, %v1231_v12  ;;  %v1213_v48 = vadd.f32 %v1209_v24, %v1193_v11  ;;  %v5087_v58 = vld [vmem:[%s7782_s11 + $0x28] sm:$0x3]  ;;  %v5088_v24 = vld [vmem:[%s7782_s11 + $0x30] sm:$0x3] }
 0x4cd   :  { %v1244_v42 = vsel %vm596_vm3, %v1238_v54, %v1240_v39  ;;  %v1243_v30 = vsel %vm596_vm3, %v1240_v39, %v6688_v1 }
 0x4ce   :  { %v1248_v63 = vmul.f32 %v1244_v42, %v5882_v61  ;;  %v7829_v42 = vld [vmem:[#allocation73_spill] sm:$0xff]  ;;  %v1249_v14 = vmul.f32 %v1243_v30, %v5857_v50  ;;  %v1233_v39 = vadd.f32 %v1229_v56, %v1213_v48 }
 0x4cf   :  { %v1286_v11 = vrot.slane %v5088_v24, %v7829_v42  ;;  %v1206_v24 = vsel %vm562_vm4, %v6644_v53, %v6642_v38  ;;  %v1246_v38 = vsel %vm596_vm3, %v6688_v1, %v6650_v4  ;;  %v7834_v53 = vld [vmem:[#allocation83_spill] sm:$0xff]  ;;  %v7837_v4 = vld [vmem:[#allocation57_spill] sm:$0xff] }
 0x4d0   :  { %v6695_v47 = vpop.permute.xlu0 %1255  ;;  %v1258_v46 = vpop.permute.xlu1 %1257  ;;  %v1252_v27 = vadd.f32 %v1248_v63, %v1232_v41 }
 0x4d1   :  { %v1265_v2 = vsel %vm613_vm0, %v6695_v47, %v1258_v46 }
 0x4d2   :  { %v1267_v62 = vmul.f32 %v1265_v2, %v7827_v3  ;;  %v1278_v2 = vrot.slane %v5086_v10, %v7829_v42 }
 0x4d4   :  { %v1260_v40 = vpop.permute.xlu0 %1259  ;;  %v6736_v29 = vpop.permute.xlu1 %1261  ;;  %v1271_v43 = vadd.f32 %v1267_v62, %v1251_v23 }
 0x4d5   :  { %v1264_v54 = vsel %vm613_vm0, %v1258_v46, %v1260_v40  ;;  %v1263_v0 = vsel %vm613_vm0, %v1260_v40, %v6736_v29  ;;  %v1253_v40 = vadd.f32 %v1249_v14, %v1233_v39 }
 0x4d6   :  { %v1268_v46 = vmul.f32 %v1264_v54, %v5806_v19  ;;  %v1269_v20 = vmul.f32 %v1263_v0, %v5812_v21  ;;  %v1282_v54 = vrot.slane %v5087_v58, %v7829_v42  ;;  %v1291_v16 = vmul.f32 %v1278_v2, %v1271_v43 }
 0x4d7   :  { %v1123_v58 = vsel %vm494_vm7, %v6626_v59, %v6628_v44  ;;  %v7831_v44 = vld [vmem:[#allocation68_spill] sm:$0xff] }
 0x4d8   :  { %v1272_v28 = vadd.f32 %v1268_v46, %v1252_v27  ;;  %v1273_v30 = vadd.f32 %v1269_v20, %v1253_v40  ;;  %v1139_v20 = vsel %vm511_vm8, %v6630_v37, %v6632_v15  ;;  %v1179_v37 = vsel %vm545_vm6, %v6638_v32, %v6640_v9 }
 0x4d9   :  { %v1130_v59 = vmul.f32 %v1123_v58, %v7822_v33  ;;  %v1226_v9 = vsel %vm579_vm2, %v6648_v25, %v6646_v13  ;;  %v1266_v13 = vsel %vm613_vm0, %v6736_v29, %v6695_v47 }
 0x4da   :  { %v1292_v23 = vmul.f32 %v1282_v54, %v1272_v28  ;;  %v1293_v27 = vmul.f32 %v1286_v11, %v1273_v30  ;;  %v1159_v54 = vsel %vm528_vm5, %v6634_v57, %v6636_v22  ;;  %v7833_v11 = vld [vmem:[#allocation64_spill] sm:$0xff]  ;;  %v7835_v30 = vld [vmem:[#allocation61_spill] sm:$0xff]  ;;  %v1270_v1 = vmul.f32 %v1266_v13, %v7837_v4 }
 0x4db   :  { %v1166_v15 = vmul.f32 %v1159_v54, %v7831_v44 }
 0x4e1   :  { %v6753_v52 = vpop.permute.xlu0 %1451 }
 0x55a   :  { %v1503_v12 = vpop.f32.mrf.mxu0 }
 0x55b   :  { %v1504_v10 = vadd.f32 %v1503_v12, %v6753_v52  ;;  %v1146_v12 = vmul.f32 %v1139_v20, %v7820_v7 }
 0x55c   :  { %v1505_v17 = vpop.f32.mrf.mxu0 }
 0x55d   :  { %v6758_v63 = vadd.f32 %v1504_v10, %v1291_v16  ;;  %v1506_v62 = vadd.f32 %v1505_v17, %v6753_v52  ;;  %v1150_v40 = vadd.f32 %v1146_v12, %v1130_v59  ;;  %v7832_v10 = vld [vmem:[#allocation69_spill] sm:$0xff] }
 0x55e   :  { %v1507_v56 = vpop.f32.mrf.mxu0  ;;  %v1544_v41 = vpop.f32.mrf.mxu1  ;;  %v1186_v57 = vmul.f32 %v1179_v37, %v7832_v10 }
 0x55f   :  { %v6762_v46 = vmax.f32 %v6758_v63, 0.0  ;;  %v6764_v0 = vadd.f32 %v1506_v62, %v1292_v23  ;;  %v1545_v2 = vadd.f32 %v1544_v41, %v6753_v52  ;;  %v1170_v22 = vadd.f32 %v1166_v15, %v1150_v40  ;;  %v7836_v41 = vld [vmem:[#allocation62_spill] sm:$0xff] }
 0x560   :  { %v1508_v48 = vpop.f32.mrf.mxu0  ;;  %v1546_v14 = vpop.f32.mrf.mxu1  ;;  %v1210_v23 = vmul.f32 %v1206_v24, %v7833_v11  ;;  %v1230_v56 = vmul.f32 %v1226_v9, %v7835_v30 }
 0x561   :  { %1788 = vrot.lane.b32.xlu0 %v6762_v46, %s5425_s6  ;;  %1804 = vrot.lane.b32.xlu1 %v6762_v46, %s5423_s13  ;;  %v6772_v17 = vmax.f32 %v6764_v0, 0.0  ;;  %v6774_v43 = vadd.f32 %v1545_v2, %v1293_v27  ;;  %v1190_v32 = vadd.f32 %v1186_v57, %v1170_v22  ;;  %v1250_v2 = vmul.f32 %v1246_v38, %v7836_v41 }
 0x562   :  { %v1548_v16 = vpop.f32.mrf.mxu1  ;;  %v1547_v47 = vadd.f32 %v1546_v14, %v6753_v52  ;;  %v1556_v52 = vld [vmem:[%s7839_s18] sm:$0xff]  ;;  %s5449_s18 = smov 27  }
 0x563   :  { %7830 = vst [vmem:[#allocation65_spill] sm:$0xff] %v6774_v43  ;;  %v6785_v28 = vmax.f32 %v6774_v43, 0.0  ;;  %v1194_v62 = vadd.f32 %v1190_v32, %v7834_v53 }
 0x564   :  { %v1549_v39 = vpop.f32.mrf.mxu1 }
 0x565   :  { %1806 = vrot.lane.b32.xlu0 %v6772_v17, %s5423_s13  ;;  %1772 = vrot.lane.b32.xlu1 %v6762_v46, %s5424_s24  ;;  %v1214_v25 = vadd.f32 %v1210_v23, %v1194_v62  ;;  %v5089_v39 = vld [vmem:[%s7782_s11 + $0x38] sm:$0x3]  ;;  %s5443_s11 = smov 31  }
 0x566   :  { %v1290_v20 = vrot.slane %v5089_v39, %v7829_v42 }
 0x567   :  { %v1234_v48 = vadd.f32 %v1230_v56, %v1214_v25 }
 0x569   :  { %1776 = vrot.lane.b32.xlu0 %v6785_v28, %s5424_s24  ;;  %1756 = vrot.lane.b32.xlu1 %v6762_v46, %s5426_s5  ;;  %v1254_v27 = vadd.f32 %v1250_v2, %v1234_v48 }
 0x56b   :  { %v1274_v16 = vadd.f32 %v1270_v1, %v1254_v27 }
 0x56d   :  { %1792 = vrot.lane.b32.xlu0 %v6785_v28, %s5425_s6  ;;  %1724 = vrot.lane.b32.xlu1 %v6762_v46, %s5427_s19  ;;  %v1294_v29 = vmul.f32 %v1290_v20, %v1274_v16 }
 0x56f   :  { %v6855_v58 = vadd.f32 %v1547_v47, %v1294_v29 }
 0x571   :  { %1760 = vrot.lane.b32.xlu0 %v6785_v28, %s5426_s5  ;;  %1740 = vrot.lane.b32.xlu1 %v6762_v46, %s5428_s17  ;;  %7838 = vst [vmem:[#allocation75_spill] sm:$0xff] %v6855_v58  ;;  %v6862_v54 = vmax.f32 %v6855_v58, 0.0 }
 0x575   :  { %1726 = vrot.lane.b32.xlu0 %v6772_v17, %s5427_s19  ;;  %1692 = vrot.lane.b32.xlu1 %v6762_v46, %s5429_s0 }
 0x579   :  { %1742 = vrot.lane.b32.xlu0 %v6772_v17, %s5428_s17  ;;  %1708 = vrot.lane.b32.xlu1 %v6762_v46, %s5431_s15 }
 0x57d   :  { %1744 = vrot.lane.b32.xlu0 %v6785_v28, %s5428_s17  ;;  %1808 = vrot.lane.b32.xlu1 %v6785_v28, %s5423_s13 }
 0x581   :  { %1694 = vrot.lane.b32.xlu0 %v6772_v17, %s5429_s0  ;;  %1774 = vrot.lane.b32.xlu1 %v6772_v17, %s5424_s24 }
 0x585   :  { %1710 = vrot.lane.b32.xlu0 %v6772_v17, %s5431_s15  ;;  %1790 = vrot.lane.b32.xlu1 %v6772_v17, %s5425_s6 }
 0x589   :  { %1810 = vrot.lane.b32.xlu0 %v6862_v54, %s5423_s13  ;;  %1758 = vrot.lane.b32.xlu1 %v6772_v17, %s5426_s5  ;;  %s7861_s13 = sld [smem:[#allocation46_spill]] }
 0x58d   :  { %1794 = vrot.lane.b32.xlu0 %v6862_v54, %s5425_s6  ;;  %1728 = vrot.lane.b32.xlu1 %v6785_v28, %s5427_s19  ;;  %s7863_s6 = sld [smem:[#allocation47_spill]] }
 0x591   :  { %1762 = vrot.lane.b32.xlu0 %v6862_v54, %s5426_s5  ;;  %1778 = vrot.lane.b32.xlu1 %v6862_v54, %s5424_s24  ;;  %s7862_s24 = sld [smem:[#allocation42_spill]] }
 0x595   :  { %1746 = vrot.lane.b32.xlu0 %v6862_v54, %s5428_s17  ;;  %1730 = vrot.lane.b32.xlu1 %v6862_v54, %s5427_s19  ;;  %s7865_s19 = sld [smem:[#allocation31_spill]] }
 0x599   :  { %1714 = vrot.lane.b32.xlu0 %v6862_v54, %s5431_s15  ;;  %1698 = vrot.lane.b32.xlu1 %v6862_v54, %s5429_s0 }
 0x59d   :  { %1712 = vrot.lane.b32.xlu0 %v6785_v28, %s5431_s15  ;;  %1696 = vrot.lane.b32.xlu1 %v6785_v28, %s5429_s0  ;;  %s5441_s0 = smov 3   ;;  %s5445_s15 = smov 28  }
 0x5a1   :  { %1943 = vperm.xlu1 %4870, %v1556_v52  }
 0x5d3   :  { %v6889_v14 = vpop.permute.xlu0 %1788  ;;  %v1805_v12 = vpop.permute.xlu1 %1804 }
 0x5d7   :  { %v1807_v37 = vpop.permute.xlu0 %1806  ;;  %v6891_v59 = vpop.permute.xlu1 %1772 }
 0x5d8   :  { %v1814_v38 = vsel %vm613_vm0, %v1805_v12, %v1807_v37 }
 0x5d9   :  { %v1816_v56 = vmul.f32 %v1814_v38, %v7827_v3 }
 0x5db   :  { %v6893_v15 = vpop.permute.xlu0 %1776  ;;  %v6895_v40 = vpop.permute.xlu1 %1756  ;;  %v1836_v48 = vpack.c.bf16 %v1816_v56, %v1816_v56 }
 0x5dd   :  { %v1844_v20 = vsel %vm651_vm1, %v1836_v48, 0 }
 0x5df   :  { %v1793_v57 = vpop.permute.xlu0 %1792  ;;  %v6897_v22 = vpop.permute.xlu1 %1724 }
 0x5e3   :  { %v6899_v24 = vpop.permute.xlu0 %1760  ;;  %v6901_v32 = vpop.permute.xlu1 %1740 }
 0x5e7   :  { %v6903_v9 = vpop.permute.xlu0 %1726  ;;  %v6905_v23 = vpop.permute.xlu1 %1692 }
 0x5eb   :  { %v6909_v53 = vpop.permute.xlu0 %1742  ;;  %v6911_v62 = vpop.permute.xlu1 %1708 }
 0x5ec   :  { %v1750_v52 = vsel %vm545_vm6, %v6901_v32, %v6909_v53 }
 0x5ef   :  { %v6914_v13 = vpop.permute.xlu0 %1744  ;;  %v1809_v25 = vpop.permute.xlu1 %1808 }
 0x5f0   :  { %v1813_v2 = vsel %vm613_vm0, %v1807_v37, %v1809_v25 }
 0x5f1   :  { %v1817_v1 = vmul.f32 %v1813_v2, %v5806_v19 }
 0x5f3   :  { %v1837_v27 = vpack.c.bf16 %v1817_v1, %v1817_v1  ;;  %v6919_v16 = vpop.permute.xlu0 %1694  ;;  %v1775_v39 = vpop.permute.xlu1 %1774 }
 0x5f4   :  { %v1781_v3 = vsel %vm579_vm2, %v1775_v39, %v6893_v15  ;;  %v1782_v47 = vsel %vm579_vm2, %v6891_v59, %v1775_v39  ;;  %v1753_v39 = vmul.f32 %v1750_v52, %v7824_v55 }
 0x5f5   :  { %4393 = vmatprep.subr.msk.bf16.mxu0 %vm651_vm1, %v1837_v27  ;;  %v1784_v56 = vmul.f32 %v1782_v47, %v5888_v5  ;;  %v1785_v2 = vmul.f32 %v1781_v3, %v5892_v6  ;;  %v1734_v27 = vsel %vm528_vm5, %v6897_v22, %v6903_v9 }
 0x5f6   :  { %1862 = vmatpush1.bf16.msra.mxu0 %v1844_v20 }
 0x5f7   :  { %v6929_v29 = vpop.permute.xlu0 %1710  ;;  %v1791_v19 = vpop.permute.xlu1 %1790 }
 0x5f8   :  { %v1797_v37 = vsel %vm596_vm3, %v1791_v19, %v1793_v57  ;;  %v1798_v38 = vsel %vm596_vm3, %v6889_v14, %v1791_v19 }
 0x5f9   :  { %v1800_v48 = vmul.f32 %v1798_v38, %v5878_v60  ;;  %v1801_v1 = vmul.f32 %v1797_v37, %v5882_v61 }
 0x5fb   :  { %v1832_v20 = vpack.c.bf16 %v1800_v48, %v1784_v56  ;;  %v1811_v43 = vpop.permute.xlu0 %1810  ;;  %v1759_v58 = vpop.permute.xlu1 %1758  ;;  %v1833_v42 = vpack.c.bf16 %v1801_v1, %v1785_v2 }
 0x5fc   :  { %v1812_v5 = vsel %vm613_vm0, %v1809_v25, %v1811_v43  ;;  %v1815_v6 = vsel %vm613_vm0, %v1811_v43, %v1805_v12  ;;  %v1765_v60 = vsel %vm562_vm4, %v1759_v58, %v6899_v24  ;;  %v1766_v61 = vsel %vm562_vm4, %v6895_v40, %v1759_v58 }
 0x5fd   :  { %v1818_v55 = vmul.f32 %v1812_v5, %v5812_v21  ;;  %v1819_v3 = vmul.f32 %v1815_v6, %v7837_v4  ;;  %v1768_v47 = vmul.f32 %v1766_v61, %v5916_v35  ;;  %v1769_v19 = vmul.f32 %v1765_v60, %v5920_v36  ;;  %1863 = vmatprep.subr.bf16.mxu0 %v1833_v42 }
 0x5fe   :  { %v1737_v25 = vmul.f32 %v1734_v27, %v5989_v34  ;;  %1864 = vmatpush1.bf16.msra.mxu0 %v1832_v20  ;;  %v1718_v42 = vsel %vm511_vm8, %v6911_v62, %v6929_v29  ;;  %vm4316_vm0 = vcmask 9216  }
 0x5ff   :  { %v1838_v43 = vpack.c.bf16 %v1818_v55, %v1818_v55  ;;  %v1839_v12 = vpack.c.bf16 %v1819_v3, %v1819_v3  ;;  %v1828_v52 = vpack.c.bf16 %v1768_v47, %v6762_v46  ;;  %v1795_v37 = vpop.permute.xlu0 %1794  ;;  %v1729_v38 = vpop.permute.xlu1 %1728  ;;  %v1829_v58 = vpack.c.bf16 %v1769_v19, %v6772_v17  ;;  %v7840_v55 = vld [vmem:[#allocation71_spill] sm:$0xff]  ;;  %v7843_v19 = vld [vmem:[#allocation78_spill] sm:$0xff] }
 0x600   :  { %v1796_v21 = vsel %vm596_vm3, %v1793_v57, %v1795_v37  ;;  %v1825_v36 = vpack.c.bf16 %v1753_v39, %v1737_v25  ;;  %v1799_v34 = vsel %vm596_vm3, %v1795_v37, %v6889_v14  ;;  %v1721_v27 = vmul.f32 %v1718_v42, %v6040_v45 }
 0x601   :  { %1865 = vmatprep.subr.bf16.mxu0 %v1829_v58  ;;  %4395 = vmatprep.subr.msk.bf16.mxu1 %vm651_vm1, %v1839_v12  ;;  %v1850_v35 = vsel %vm651_vm1, %v1838_v43, 0  ;;  %v1802_v46 = vmul.f32 %v1796_v21, %v5857_v50  ;;  %v1803_v50 = vmul.f32 %v1799_v34, %v7836_v41  ;;  %v7844_v43 = vld [vmem:[#allocation79_spill] sm:$0xff]  ;;  %v7845_v34 = vld [vmem:[#allocation76_spill] sm:$0xff] }
 0x602   :  { %1866 = vmatpush1.bf16.msra.mxu0 %v1828_v52  ;;  %1903 = vmatpush1.bf16.msra.mxu1 %v1850_v35 }
 0x603   :  { %v1763_v17 = vpop.permute.xlu0 %1762  ;;  %1867 = vmatprep.subr.bf16.mxu0 %v1825_v36  ;;  %v1779_v4 = vpop.permute.xlu1 %1778 }
 0x604   :  { %v1764_v57 = vsel %vm562_vm4, %v6899_v24, %v1763_v17  ;;  %v1767_v14 = vsel %vm562_vm4, %v1763_v17, %v6895_v40  ;;  %v1780_v56 = vsel %vm579_vm2, %v6893_v15, %v1779_v4  ;;  %v1783_v2 = vsel %vm579_vm2, %v1779_v4, %v6891_v59  ;;  %v7846_v17 = vld [vmem:[#allocation77_spill] sm:$0xff] }
 0x605   :  { %v1771_v48 = vmul.f32 %v1767_v14, %v7833_v11  ;;  %v1786_v1 = vmul.f32 %v1780_v56, %v5861_v51  ;;  %v1787_v24 = vmul.f32 %v1783_v2, %v7835_v30  ;;  %v1702_v40 = vsel %vm494_vm7, %v6905_v23, %v6919_v16  ;;  %v4992_v14 = vld [vmem:[%s7841_s22 + $0x38] sm:$0xff]   ;;  %v4993_v56 = vld [vmem:[%s7841_s22 + $0x70] sm:$0xff]  }
 0x606   :  { %v1733_v15 = vsel %vm528_vm5, %v6903_v9, %v1729_v38  ;;  %v1770_v59 = vmul.f32 %v1764_v57, %v7815_v18  ;;  %v1705_v61 = vmul.f32 %v1702_v40, %v6050_v49  ;;  %v7842_v49 = vld [vmem:[#allocation70_spill] sm:$0xff]  ;;  %v4994_v2 = vld [vmem:[%s7841_s22 + $0xf8] sm:$0xff]   ;;  %v5001_v40 = vld [vmem:[%s7841_s22 + $0x60] sm:$0xff]  }
 0x607   :  { %v1834_v41 = vpack.c.bf16 %v1802_v46, %v1786_v1  ;;  %v1747_v39 = vpop.permute.xlu0 %1746  ;;  %v1731_v11 = vpop.permute.xlu1 %1730  ;;  %v1835_v20 = vpack.c.bf16 %v1803_v50, %v1787_v24  ;;  %v1831_v51 = vpack.c.bf16 %v1771_v48, %v6862_v54  ;;  %v1738_v3 = vmul.f32 %v1733_v15, %v7840_v55  ;;  %v4997_v50 = vld [vmem:[%s7841_s22 + $0x68] sm:$0xff]   ;;  %v4998_v48 = vld [vmem:[%s7841_s22 + $0xf0] sm:$0xff]   ;;  %v5003_v15 = vld [vmem:[%s7841_s22 + $0x20] sm:$0xff]  }
 0x608   :  { %v1748_v30 = vsel %vm545_vm6, %v6914_v13, %v1747_v39  ;;  %v1751_v45 = vsel %vm545_vm6, %v1747_v39, %v6901_v32  ;;  %v1732_v5 = vsel %vm528_vm5, %v1729_v38, %v1731_v11  ;;  %v1735_v18 = vsel %vm528_vm5, %v1731_v11, %v6897_v22  ;;  %v4999_v1 = vld [vmem:[%s7841_s22 + $0x28] sm:$0xff]   ;;  %v5000_v24 = vld [vmem:[%s7841_s22 + $0xb0] sm:$0xff]   ;;  %v5006_v39 = vld [vmem:[%s7841_s22 + $0xe0] sm:$0xff]  }
 0x609   :  { %v1752_v9 = vmul.f32 %v1751_v45, %v5975_v26  ;;  %v1755_v6 = vmul.f32 %v1748_v30, %v7832_v10  ;;  %v1736_v54 = vmul.f32 %v1735_v18, %v5985_v31  ;;  %v1739_v60 = vmul.f32 %v1732_v5, %v7831_v44  ;;  %1904 = vmatprep.subr.bf16.mxu1 %v1835_v20  ;;  %v5007_v11 = vld [vmem:[%s7841_s22 + $0x18] sm:$0xff]   ;;  %v5008_v20 = vld [vmem:[%s7841_s22 + $0xa0] sm:$0xff]   ;;  %v5011_v45 = vld [vmem:[%s7841_s22 + $0x10] sm:$0xff]  }
 0x60a   :  { %v1749_v32 = vsel %vm545_vm6, %v6909_v53, %v6914_v13  ;;  %1905 = vmatpush1.bf16.msra.mxu1 %v1834_v41  ;;  %v1830_v31 = vpack.c.bf16 %v1770_v59, %v6785_v28  ;;  %v1821_v13 = vpack.c.bf16 %v1721_v27, %v1705_v61  ;;  %v4991_v28 = vld [vmem:[%s7841_s22 + $0x78] sm:$0xff]   ;;  %v5002_v27 = vld [vmem:[%s7841_s22 + $0xe8] sm:$0xff]   ;;  %v5019_v61 = vld [vmem:[%s7841_s22] sm:$0xff]  }
 0x60b   :  { %v1824_v22 = vpack.c.bf16 %v1752_v9, %v1736_v54  ;;  %v1715_v26 = vpop.permute.xlu0 %1714  ;;  %1906 = vmatprep.subr.bf16.mxu1 %v1831_v51  ;;  %v1699_v10 = vpop.permute.xlu1 %1698  ;;  %v1754_v47 = vmul.f32 %v1749_v32, %v7842_v49  ;;  %v1827_v52 = vpack.c.bf16 %v1755_v6, %v1739_v60  ;;  %v5004_v59 = vld [vmem:[%s7841_s22 + $0xa8] sm:$0xff]   ;;  %v5005_v41 = vld [vmem:[%s7841_s22 + $0x58] sm:$0xff]   ;;  %v5009_v51 = vld [vmem:[%s7841_s22 + $0x50] sm:$0xff]  }
 0x60c   :  { %v1719_v44 = vsel %vm511_vm8, %v1715_v26, %v6911_v62  ;;  %v1703_v53 = vsel %vm494_vm7, %v1699_v10, %v6905_v23  ;;  %v5010_v30 = vld [vmem:[%s7841_s22 + $0xd8] sm:$0xff]   ;;  %v5013_v18 = vld [vmem:[%s7841_s22 + $0x48] sm:$0xff]   ;;  %v5014_v9 = vld [vmem:[%s7841_s22 + $0xd0] sm:$0xff]  }
 0x60d   :  { %v1720_v25 = vmul.f32 %v1719_v44, %v7843_v19  ;;  %v1704_v12 = vmul.f32 %v1703_v53, %v7844_v43  ;;  %1868 = vmatpush1.bf16.msra.mxu0 %v1824_v22  ;;  %v1826_v37 = vpack.c.bf16 %v1754_v47, %v1738_v3  ;;  %v5012_v5 = vld [vmem:[%s7841_s22 + $0x98] sm:$0xff]   ;;  %v5015_v6 = vld [vmem:[%s7841_s22 + $0x8] sm:$0xff]   ;;  %v5016_v54 = vld [vmem:[%s7841_s22 + $0x90] sm:$0xff]  }
 0x60e   :  { %1869 = vmatprep.subr.bf16.mxu0 %v1821_v13  ;;  %1907 = vmatpush1.bf16.msra.mxu1 %v1830_v31  ;;  %v5017_v60 = vld [vmem:[%s7841_s22 + $0x40] sm:$0xff]   ;;  %v5018_v32 = vld [vmem:[%s7841_s22 + $0xc8] sm:$0xff]   ;;  %v5024_v43 = vld [vmem:[#allocation13 + $0x38] sm:$0xff]  }
 0x60f   :  { %v1820_v38 = vpack.c.bf16 %v1720_v25, %v1704_v12  ;;  %v1713_v62 = vpop.permute.xlu0 %1712  ;;  %1908 = vmatprep.subr.bf16.mxu1 %v1827_v52  ;;  %v1697_v58 = vpop.permute.xlu1 %1696  ;;  %v5020_v55 = vld [vmem:[%s7841_s22 + $0x88] sm:$0xff]   ;;  %v5021_v3 = vld [vmem:[%s7841_s22 + $0xc0] sm:$0xff]  }
 0x610   :  { %v1716_v23 = vsel %vm511_vm8, %v1713_v62, %v1715_v26  ;;  %v1717_v21 = vsel %vm511_vm8, %v6929_v29, %v1713_v62  ;;  %v1700_v35 = vsel %vm494_vm7, %v1697_v58, %v1699_v10  ;;  %v1701_v36 = vsel %vm494_vm7, %v6919_v16, %v1697_v58  ;;  %v1555_v29 = vld [vmem:[#allocation9] sm:$0xf]  ;;  %v5022_v22 = vld [vmem:[%s7841_s22 + $0x80] sm:$0xff]   ;;  %v5023_v26 = vld [vmem:[#allocation13 + $0x78] sm:$0xff]  }
 0x611   :  { %v1722_v42 = vmul.f32 %v1717_v21, %v7845_v34  ;;  %v1723_v46 = vmul.f32 %v1716_v23, %v7820_v7  ;;  %v1706_v4 = vmul.f32 %v1701_v36, %v7846_v17  ;;  %v1707_v57 = vmul.f32 %v1700_v35, %v7822_v33  ;;  %1870 = vmatpush1.bf16.msra.mxu0 %v1820_v38  ;;  %v4995_v7 = vld [vmem:[%s7841_s22 + $0x30] sm:$0xff]   ;;  %v4996_v33 = vld [vmem:[%s7841_s22 + $0xb8] sm:$0xff]   ;;  %v5027_v58 = vld [vmem:[#allocation13 + $0x68] sm:$0xff]   ;;  %s5450_s22 = smov 124  }
 0x612   :  { %1909 = vmatpush1.bf16.msra.mxu1 %v1826_v37  ;;  %4502 = vmatprep.subr.bf16.mxu0 %v4991_v28  ;;  %v5025_v28 = vld [vmem:[#allocation13 + $0x70] sm:$0xff]   ;;  %v2332_v37 = vpack.c.bf16 %v6764_v0, %v6764_v0  ;;  %v5028_v23 = vld [vmem:[#allocation13 + $0x28] sm:$0xff]   ;;  %v5029_v21 = vld [vmem:[#allocation13 + $0x60] sm:$0xff]  }
 0x613   :  { %v1822_v8 = vpack.c.bf16 %v1722_v42, %v1706_v4  ;;  %v1823_v16 = vpack.c.bf16 %v1723_v46, %v1707_v57  ;;  %v5026_v62 = vld [vmem:[#allocation13 + $0x30] sm:$0xff]   ;;  %v5030_v35 = vld [vmem:[#allocation13 + $0x20] sm:$0xff]   ;;  %v5031_v36 = vld [vmem:[#allocation13 + $0x58] sm:$0xff]  }
 0x614   :  { %4394 = vmatmul.mubr.msk.bf16.vlgmr.msra.gmra.mxu0 %vm647_vm9, %v1555_v29  ;;  %v5032_v34 = vld [vmem:[#allocation13 + $0x18] sm:$0xff]   ;;  %v5033_v42 = vld [vmem:[#allocation13 + $0x50] sm:$0xff]   ;;  %v5035_v46 = vld [vmem:[#allocation13 + $0x48] sm:$0xff]  }
 0x615   :  { %1910 = vmatprep.subr.bf16.mxu1 %v1823_v16  ;;  %4503 = vmatpush3.bf16.msra.mxu0 %v4992_v14  ;;  %v5034_v0 = vld [vmem:[#allocation13 + $0x10] sm:$0xff]   ;;  %v5036_v17 = vld [vmem:[#allocation13 + $0x8] sm:$0xff]   ;;  %v5037_v4 = vld [vmem:[#allocation13 + $0x40] sm:$0xff]  }
 0x616   :  { %1911 = vmatpush1.bf16.msra.mxu1 %v1822_v8  ;;  %4504 = vmatprep.subr.bf16.mxu0 %v4993_v56  ;;  %v5038_v57 = vld [vmem:[#allocation13] sm:$0xff]  }
 0x617   :  { %4524 = vmatprep.subr.bf16.mxu1 %v4994_v2 }
 0x619   :  { %4396 = vmatmul.mubr.msk.bf16.vlgmr.msra.gmra.mxu1 %vm647_vm9, %v1555_v29  ;;  %4505 = vmatpush3.bf16.msra.mxu0 %v4995_v7  ;;  %v2331_v29 = vpack.c.bf16 %v6758_v63, %v6758_v63 }
 0x61a   :  { %4525 = vmatpush3.bf16.msra.mxu1 %v4996_v33  ;;  %4506 = vmatprep.subr.bf16.mxu0 %v4997_v50  ;;  %v5432_v33 = vmov 0.0  }
 0x61b   :  { %4526 = vmatprep.subr.bf16.mxu1 %v4998_v48 }
 0x61c   :  { %v1944_v50 = vpop.permute.xlu1 %1943 }
 0x61d   :  { %4507 = vmatpush3.bf16.msra.mxu0 %v4999_v1 }
 0x61e   :  { %4527 = vmatpush3.bf16.msra.mxu1 %v5000_v24  ;;  %4508 = vmatprep.subr.bf16.mxu0 %v5001_v40 }
 0x61f   :  { %4528 = vmatprep.subr.bf16.mxu1 %v5002_v27 }
 0x621   :  { %4509 = vmatpush3.bf16.msra.mxu0 %v5003_v15 }
 0x622   :  { %4529 = vmatpush3.bf16.msra.mxu1 %v5004_v59  ;;  %4510 = vmatprep.subr.bf16.mxu0 %v5005_v41  ;;  %v1558_v59 = vld [vmem:[%s7847_s21] sm:$0xff]  ;;  %s5452_s21 = smov 22  }
 0x623   :  { %4530 = vmatprep.subr.bf16.mxu1 %v5006_v39 }
 0x625   :  { %4511 = vmatpush3.bf16.msra.mxu0 %v5007_v11 }
 0x626   :  { %4531 = vmatpush3.bf16.msra.mxu1 %v5008_v20  ;;  %4512 = vmatprep.subr.bf16.mxu0 %v5009_v51 }
 0x627   :  { %4532 = vmatprep.subr.bf16.mxu1 %v5010_v30  ;;  %v7105_v30 = vld [vmem:[%s7848_s1 + $0x8] sm:$0x3] }
 0x629   :  { %4513 = vmatpush3.bf16.msra.mxu0 %v5011_v45  ;;  %v7849_v45 = vld [vmem:[#allocation56_spill] sm:$0xff] }
 0x62a   :  { %4533 = vmatpush3.bf16.msra.mxu1 %v5012_v5  ;;  %4514 = vmatprep.subr.bf16.mxu0 %v5013_v18  ;;  %v7109_v5 = vrot.slane %v7105_v30, %v7849_v45  ;;  %v346_v18 = vld [vmem:[%s7848_s1] sm:$0xff]  ;;  %s7868_s1 = sld [smem:[#allocation45_spill]] }
 0x62b   :  { %4534 = vmatprep.subr.bf16.mxu1 %v5014_v9 }
 0x62d   :  { %4515 = vmatpush3.bf16.msra.mxu0 %v5015_v6 }
 0x62e   :  { %4535 = vmatpush3.bf16.msra.mxu1 %v5016_v54  ;;  %4516 = vmatprep.subr.bf16.mxu0 %v5017_v60  ;;  %v7850_v54 = vld [vmem:[#allocation59_spill] sm:$0xff] }
 0x62f   :  { %4536 = vmatprep.subr.bf16.mxu1 %v5018_v32  ;;  %v7113_v60 = vrot.slane %v346_v18, %v7850_v54 }
 0x631   :  { %4517 = vmatpush3.bf16.msra.mxu0 %v5019_v61  ;;  %v7851_v61 = vld [vmem:[#allocation60_spill] sm:$0xff] }
 0x632   :  { %4537 = vmatpush3.bf16.msra.mxu1 %v5020_v55  ;;  %4645 = vmatprep.subr.bf16.mxu0 %v5432_v33  ;;  %v7117_v55 = vrot.slane %v346_v18, %v7851_v61 }
 0x633   :  { %4538 = vmatprep.subr.bf16.mxu1 %v5021_v3 }
 0x636   :  { %4539 = vmatpush3.bf16.msra.mxu1 %v5022_v22  ;;  %v7852_v22 = vld [vmem:[#allocation63_spill] sm:$0xff] }
 0x637   :  { %4552 = vmatprep.subr.bf16.mxu1 %v5023_v26  ;;  %v7120_v26 = vrot.slane %v346_v18, %v7852_v22 }
 0x6d4   :  { %v1889_v10 = vpop.f32.mrf.mxu0 }
 0x6d5   :  { %v1937_v31 = vpack.c.bf16 %v1889_v10, %v1889_v10 }
 0x6d6   :  { %v1891_v44 = vpop.f32.mrf.mxu0 }
 0x6d7   :  { %v1938_v53 = vpack.c.bf16 %v1891_v44, %v1891_v44 }
 0x6d8   :  { %v1893_v13 = vpop.f32.mrf.mxu0 }
 0x6d9   :  { %v1930_v49 = vpop.f32.mrf.mxu1  ;;  %2170 = vmatprep.mubr.bf16.mxu0 %v1938_v53 }
 0x6da   :  { %v1894_v47 = vpop.f32.mrf.mxu0  ;;  %2171 = vmatmul.mubr.bf16.vlgmr.msra.gmra.mxu0 %v1937_v31  ;;  %v1939_v12 = vpack.c.bf16 %v1930_v49, %v1930_v49 }
 0x6db   :  { %v1932_v19 = vpop.f32.mrf.mxu1  ;;  %4655 = vmatprep.mubr.msk.bf16.mxu0 %vm5437_vm11, %v5432_v33 }
 0x6dc   :  { %v1940_v25 = vpack.c.bf16 %v1932_v19, %v1932_v19  ;;  %v7853_v19 = vld [vmem:[#allocation67_spill] sm:$0xff] }
 0x6dd   :  { %v1934_v52 = vpop.f32.mrf.mxu1 }
 0x6de   :  { %2210 = vmatprep.mubr.bf16.mxu1 %v1940_v25  ;;  %v7128_v25 = vrot.slane %v346_v18, %v7853_v19 }
 0x6df   :  { %v1935_v38 = vpop.f32.mrf.mxu1  ;;  %2211 = vmatmul.mubr.bf16.vlgmr.msra.gmra.mxu1 %v1939_v12  ;;  %v7854_v12 = vld [vmem:[#allocation66_spill] sm:$0xff] }
 0x6e0   :  { %4553 = vmatpush3.bf16.msra.mxu1 %v5024_v43  ;;  %2559 = vmatprep.mubr.bf16.mxu1 %v2332_v37  ;;  %v7131_v52 = vrot.slane %v346_v18, %v7854_v12  ;;  %v7855_v37 = vld [vmem:[#allocation73_spill] sm:$0xff] }
 0x6e1   :  { %4554 = vmatprep.subr.bf16.mxu1 %v5025_v28  ;;  %v7134_v38 = vrot.slane %v346_v18, %v7855_v37 }
 0x6e4   :  { %4555 = vmatpush3.bf16.msra.mxu1 %v5026_v62 }
 0x6e5   :  { %4556 = vmatprep.subr.bf16.mxu1 %v5027_v58 }
 0x6e8   :  { %4557 = vmatpush3.bf16.msra.mxu1 %v5028_v23 }
 0x6e9   :  { %4558 = vmatprep.subr.bf16.mxu1 %v5029_v21  ;;  %v7140_v21 = vrot.slane %v346_v18, %v7849_v45 }
 0x6ec   :  { %4559 = vmatpush3.bf16.msra.mxu1 %v5030_v35 }
 0x6ed   :  { %4560 = vmatprep.subr.bf16.mxu1 %v5031_v36 }
 0x6f0   :  { %4561 = vmatpush3.bf16.msra.mxu1 %v5032_v34 }
 0x6f1   :  { %4562 = vmatprep.subr.bf16.mxu1 %v5033_v42 }
 0x6f4   :  { %4563 = vmatpush3.bf16.msra.mxu1 %v5034_v0 }
 0x6f5   :  { %4564 = vmatprep.subr.bf16.mxu1 %v5035_v46  ;;  %v5039_v46 = vld [vmem:[#allocation13 + $0xf8] sm:$0xff]  }
 0x6f8   :  { %4565 = vmatpush3.bf16.msra.mxu1 %v5036_v17 }
 0x6f9   :  { %4566 = vmatprep.subr.bf16.mxu1 %v5037_v4  ;;  %v1557_v4 = vld [vmem:[#allocation10] sm:$0xf] }
 0x6fc   :  { %4567 = vmatpush3.bf16.msra.mxu1 %v5038_v57  ;;  %v5040_v57 = vld [vmem:[#allocation13 + $0xb8] sm:$0xff]  }
 0x6fd   :  { %4659 = vmatprep.subr.bf16.mxu1 %v5432_v33 }
 0x6ff   :  { %2560 = vmatmul.mubr.bf16.vlgmr.msra.gmra.mxu1 %v2331_v29  ;;  %v5041_v29 = vld [vmem:[#allocation13 + $0xf0] sm:$0xff]  }
 0x700   :  { %4661 = vmatprep.mubr.msk.bf16.mxu1 %vm5437_vm11, %v5432_v33 }
 0x79a   :  { %v4518_v14 = vpop.f32.mrf.mxu0 }
 0x79c   :  { %v4519_v56 = vpop.f32.mrf.mxu0 }
 0x79d   :  { %v4520_v8 = vadd.f32 %v4519_v56, %v4518_v14  ;;  %v7856_v14 = vld [vmem:[#allocation75_spill] sm:$0xff] }
 0x79e   :  { %v4521_v16 = vpop.f32.mrf.mxu0  ;;  %v2334_v56 = vpack.c.bf16 %v7856_v14, %v7856_v14 }
 0x79f   :  { %v4540_v2 = vpop.f32.mrf.mxu1  ;;  %v2173_v1 = vadd.f32 %v4520_v8, %v1944_v50  ;;  %v5042_v8 = vld [vmem:[#allocation13 + $0xb0] sm:$0xff]   ;;  %v5043_v16 = vld [vmem:[#allocation13 + $0xe8] sm:$0xff]   ;;  %v5046_v50 = vld [vmem:[#allocation13 + $0xa0] sm:$0xff]  }
 0x7a0   :  { %v4522_v7 = vpop.f32.mrf.mxu0 }
 0x7a1   :  { %v4541_v48 = vpop.f32.mrf.mxu1  ;;  %v5045_v7 = vld [vmem:[#allocation13 + $0xe0] sm:$0xff]  }
 0x7a2   :  { %v4542_v24 = vadd.f32 %v4541_v48, %v4540_v2  ;;  %v5044_v2 = vld [vmem:[#allocation13 + $0xa8] sm:$0xff]   ;;  %v5047_v48 = vld [vmem:[#allocation13 + $0xd8] sm:$0xff]  }
 0x7a3   :  { %v4543_v40 = vpop.f32.mrf.mxu1 }
 0x7a4   :  { %v2213_v27 = vadd.f32 %v4542_v24, %v2173_v1  ;;  %v5048_v1 = vld [vmem:[#allocation13 + $0x98] sm:$0xff]   ;;  %v5049_v24 = vld [vmem:[#allocation13 + $0xd0] sm:$0xff]  }
 0x7a5   :  { %v4544_v15 = vpop.f32.mrf.mxu1  ;;  %v5050_v40 = vld [vmem:[#allocation13 + $0x90] sm:$0xff]  }
 0x7a6   :  { %v2218_v63 = vmax.f32 %v2213_v27, 0.0  ;;  %v5051_v27 = vld [vmem:[#allocation13 + $0xc8] sm:$0xff]  }
 0x7a7   :  { %v5052_v15 = vld [vmem:[#allocation13 + $0x88] sm:$0xff]  }
 0x7a8   :  { %2266 = vrot.lane.b32.xlu1 %v2218_v63, %s5433_s29  ;;  %2272 = vrot.lane.b32.xlu0 %v2218_v63, %s5434_s8 }
 0x7ac   :  { %2263 = vrot.lane.b32.xlu1 %v2218_v63, %s5426_s5  ;;  %2269 = vrot.lane.b32.xlu0 %v2218_v63, %s5435_s26 }
 0x7b0   :  { %2260 = vrot.lane.b32.xlu1 %v2218_v63, %s5428_s17  ;;  %2257 = vrot.lane.b32.xlu0 %v2218_v63, %s5436_s28 }
 0x7b4   :  { %2254 = vrot.lane.b32.xlu1 %v2218_v63, %s5438_s2  ;;  %2251 = vrot.lane.b32.xlu0 %v2218_v63, %s5439_s30 }
 0x7b8   :  { %2282 = vperm.xlu0 %4869, %v1558_v59   ;;  %v5054_v59 = vld [vmem:[#allocation13 + $0x80] sm:$0xff]  }
 0x7bf   :  { %v4568_v41 = vpop.f32.mrf.mxu1 }
 0x7c1   :  { %v4569_v39 = vpop.f32.mrf.mxu1 }
 0x7c2   :  { %v7102_v11 = vadd.f32 %v4569_v39, %v4568_v41  ;;  %v7857_v41 = vld [vmem:[#allocation65_spill] sm:$0xff] }
 0x7c3   :  { %v4571_v20 = vpop.f32.mrf.mxu1  ;;  %v2333_v39 = vpack.c.bf16 %v7857_v41, %v7857_v41 }
 0x7c5   :  { %v4572_v51 = vpop.f32.mrf.mxu1 }
 0x81a   :  { %v2267_v9 = vpop.permute.xlu1 %2266  ;;  %v2273_v6 = vpop.permute.xlu0 %2272 }
 0x81b   :  { %v2274_v32 = vmul.f32 %v2273_v6, %v7109_v5  ;;  %v2268_v44 = vmul.f32 %v2267_v9, %v7113_v60 }
 0x81d   :  { %v2279_v3 = vpack.c.bf16 %v2274_v32, %v2274_v32 }
 0x81e   :  { %v2264_v10 = vpop.permute.xlu1 %2263  ;;  %v2270_v31 = vpop.permute.xlu0 %2269 }
 0x81f   :  { %v2271_v53 = vmul.f32 %v2270_v31, %v7117_v55  ;;  %v2289_v13 = vsel %vm651_vm1, %v2279_v3, 0  ;;  %v2265_v47 = vmul.f32 %v2264_v10, %v7120_v26 }
 0x820   :  { %4646 = vmatpush3.bf16.msra.mxu0 %v2289_v13 }
 0x821   :  { %v2278_v49 = vpack.c.bf16 %v2271_v53, %v2268_v44  ;;  %4647 = vmatprep.subr.bf16.mxu0 %v5432_v33  ;;  %v2277_v62 = vpack.c.bf16 %v2265_v47, %v2218_v63  ;;  %v5053_v63 = vld [vmem:[#allocation13 + $0xc0] sm:$0xff]  }
 0x822   :  { %v2261_v43 = vpop.permute.xlu1 %2260  ;;  %v2258_v28 = vpop.permute.xlu0 %2257 }
 0x823   :  { %v2262_v58 = vmul.f32 %v2261_v43, %v7128_v25  ;;  %v2259_v23 = vmul.f32 %v2258_v28, %v7131_v52 }
 0x824   :  { %4648 = vmatpush3.bf16.msra.mxu0 %v2278_v49  ;;  %v1559_v49 = vld [vmem:[#allocation12] sm:$0xf] }
 0x825   :  { %4649 = vmatprep.subr.bf16.mxu0 %v5432_v33  ;;  %v2276_v34 = vpack.c.bf16 %v2262_v58, %v2259_v23 }
 0x826   :  { %v2255_v35 = vpop.permute.xlu1 %2254  ;;  %v2252_v36 = vpop.permute.xlu0 %2251 }
 0x827   :  { %v2256_v42 = vmul.f32 %v2255_v35, %v7134_v38  ;;  %v2253_v0 = vmul.f32 %v2252_v36, %v7140_v21 }
 0x828   :  { %4650 = vmatpush3.bf16.msra.mxu0 %v2277_v62 }
 0x829   :  { %4651 = vmatprep.subr.bf16.mxu0 %v5432_v33  ;;  %v2275_v17 = vpack.c.bf16 %v2256_v42, %v2253_v0  ;;  %v2737_v42 = vld [vmem:[#allocation16] sm:$0xf] }
 0x82a   :  { %v2738_v0 = vld [vmem:[%s7858_s27] sm:$0xff]  ;;  %s7871_s27 = sld [smem:[#allocation48_spill]] }
 0x82c   :  { %4652 = vmatpush3.bf16.msra.mxu0 %v2276_v34 }
 0x82d   :  { %4653 = vmatprep.subr.bf16.mxu0 %v5432_v33 }
 0x830   :  { %4654 = vmatpush3.bf16.msra.mxu0 %v2275_v17 }
 0x831   :  { %4574 = vmatprep.subr.bf16.mxu0 %v5039_v46  ;;  %v2655_v46 = vld [vmem:[%s7859_s12] sm:$0xff]  ;;  %s7872_s12 = sld [smem:[#allocation51_spill]] }
 0x833   :  { %4656 = vmatmul.mubr.msk.bf16.vlgmr.msra.gmra.mxu0 %vm647_vm9, %v1557_v4  ;;  %v2283_v47 = vpop.permute.xlu0 %2282 }
 0x834   :  { %4575 = vmatpush3.bf16.msra.mxu0 %v5040_v57  ;;  %2599 = vmatprep.mubr.bf16.mxu0 %v2334_v56 }
 0x835   :  { %4576 = vmatprep.subr.bf16.mxu0 %v5041_v29 }
 0x838   :  { %4577 = vmatpush3.bf16.msra.mxu0 %v5042_v8 }
 0x839   :  { %4578 = vmatprep.subr.bf16.mxu0 %v5043_v16 }
 0x83c   :  { %4579 = vmatpush3.bf16.msra.mxu0 %v5044_v2 }
 0x83d   :  { %4580 = vmatprep.subr.bf16.mxu0 %v5045_v7 }
 0x840   :  { %4581 = vmatpush3.bf16.msra.mxu0 %v5046_v50 }
 0x841   :  { %4582 = vmatprep.subr.bf16.mxu0 %v5047_v48 }
 0x844   :  { %4583 = vmatpush3.bf16.msra.mxu0 %v5048_v1 }
 0x845   :  { %4584 = vmatprep.subr.bf16.mxu0 %v5049_v24 }
 0x848   :  { %4585 = vmatpush3.bf16.msra.mxu0 %v5050_v40 }
 0x849   :  { %4586 = vmatprep.subr.bf16.mxu0 %v5051_v27 }
 0x84c   :  { %4587 = vmatpush3.bf16.msra.mxu0 %v5052_v15 }
 0x84d   :  { %4588 = vmatprep.subr.bf16.mxu0 %v5053_v63 }
 0x850   :  { %4589 = vmatpush3.bf16.msra.mxu0 %v5054_v59 }
 0x851   :  { %4679 = vmatprep.subr.bf16.mxu0 %v5432_v33 }
 0x853   :  { %2600 = vmatmul.mubr.bf16.vlgmr.msra.gmra.mxu0 %v2333_v39 }
 0x854   :  { %4681 = vmatprep.mubr.msk.bf16.mxu0 %vm5437_vm11, %v5432_v33 }
 0x8f3   :  { %v2325_v20 = vpop.f32.mrf.mxu0 }
 0x8f4   :  { %v2326_v43 = vadd.f32 %v2325_v20, %v2283_v47 }
 0x8f5   :  { %v4657_v51 = vpop.f32.mrf.mxu0 }
 0x8f6   :  { %v2654_v51 = vld [vmem:[#allocation15] sm:$0xf] }
 0x8f7   :  { %v2328_v18 = vpop.f32.mrf.mxu0 }
 0x8f9   :  { %v4658_v9 = vpop.f32.mrf.mxu0 }
 0x913   :  { %v4590_v6 = vpop.f32.mrf.mxu0 }
 0x915   :  { %v4591_v32 = vpop.f32.mrf.mxu0 }
 0x916   :  { %v4592_v3 = vadd.f32 %v4591_v32, %v4590_v6 }
 0x917   :  { %v4593_v10 = vpop.f32.mrf.mxu0 }
 0x918   :  { %v2602_v31 = vadd.f32 %v4592_v3, %v7102_v11 }
 0x919   :  { %v4594_v44 = vpop.f32.mrf.mxu0 }
 0x91a   :  { %v2607_v53 = vpack.c.bf16 %v2602_v31, %v2602_v31 }
 0x91c   :  { %v2612_v13 = vsel %vm651_vm1, %v2607_v53, 0 }
 0x91d   :  { %4660 = vmatpush3.bf16.msra.mxu1 %v2612_v13 }
 0x91e   :  { %4665 = vmatprep.subr.bf16.mxu1 %v5432_v33 }
 0x920   :  { %4662 = vmatmul.mubr.msk.bf16.vlgmr.msra.gmra.mxu1 %vm1013_vm10, %v1559_v49 }
 0x921   :  { %4675 = vmatprep.mubr.msk.bf16.mxu1 %vm5437_vm11, %v5432_v33 }
 0x9e0   :  { %v2648_v28 = vpop.f32.mrf.mxu1 }
 0x9e1   :  { %v2649_v62 = vadd.f32 %v2648_v28, %v2326_v43 }
 0x9e2   :  { %v4663_v58 = vpop.f32.mrf.mxu1 }
 0x9e3   :  { %v2656_v23 = vmax.f32 %v2649_v62, 0.0  ;;  %v2830_v62 = vld [vmem:[%s7860_s7] sm:$0xff]  ;;  %s7873_s7 = sld [smem:[#allocation52_spill]] }
 0x9e4   :  { %v2651_v11 = vpop.f32.mrf.mxu1 }
 0x9e5   :  { %2672 = vrot.lane.b32.xlu0 %v2656_v23, %s5433_s29  ;;  %2678 = vrot.lane.b32.xlu1 %v2656_v23, %s5434_s8  ;;  %v2739_v35 = vpack.c.bf16 %v2656_v23, %v2656_v23 }
 0x9e6   :  { %v4664_v36 = vpop.f32.mrf.mxu1 }
 0x9e7   :  { %v2749_v34 = vsel %vm651_vm1, %v2739_v35, 0 }
 0x9e8   :  { %4680 = vmatpush3.bf16.msra.mxu0 %v2749_v34 }
 0x9e9   :  { %2669 = vrot.lane.b32.xlu0 %v2656_v23, %s5426_s5  ;;  %2675 = vrot.lane.b32.xlu1 %v2656_v23, %s5435_s26 }
 0x9ea   :  { %4685 = vmatprep.subr.bf16.mxu0 %v5432_v33 }
 0x9eb   :  { %4682 = vmatmul.mubr.msk.bf16.vlgmr.msra.gmra.mxu0 %vm1013_vm10, %v2737_v42 }
 0x9ec   :  { %4695 = vmatprep.mubr.msk.bf16.mxu0 %vm5437_vm11, %v5432_v33 }
 0x9ed   :  { %2666 = vrot.lane.b32.xlu0 %v2656_v23, %s5428_s17  ;;  %2663 = vrot.lane.b32.xlu1 %v2656_v23, %s5436_s28 }
 0x9f1   :  { %2660 = vrot.lane.b32.xlu0 %v2656_v23, %s5438_s2  ;;  %2657 = vrot.lane.b32.xlu1 %v2656_v23, %s5439_s30 }
 0x9f5   :  { %2742 = vperm.xlu0 %4869, %v2738_v0   ;;  %2688 = vperm.xlu1 %4870, %v2655_v46  }
 0xa57   :  { %v2673_v17 = vpop.permute.xlu0 %2672  ;;  %v2679_v4 = vpop.permute.xlu1 %2678 }
 0xa58   :  { %v2680_v57 = vmul.f32 %v2679_v4, %v7109_v5  ;;  %v2674_v8 = vmul.f32 %v2673_v17, %v7113_v60 }
 0xa5a   :  { %v2685_v29 = vpack.c.bf16 %v2680_v57, %v2680_v57 }
 0xa5b   :  { %v2670_v14 = vpop.permute.xlu0 %2669  ;;  %v2676_v56 = vpop.permute.xlu1 %2675 }
 0xa5c   :  { %v2677_v16 = vmul.f32 %v2676_v56, %v7117_v55  ;;  %v2695_v2 = vsel %vm651_vm1, %v2685_v29, 0  ;;  %v2671_v50 = vmul.f32 %v2670_v14, %v7120_v26 }
 0xa5d   :  { %4666 = vmatpush3.bf16.msra.mxu1 %v2695_v2 }
 0xa5e   :  { %v2684_v7 = vpack.c.bf16 %v2677_v16, %v2674_v8  ;;  %4667 = vmatprep.subr.bf16.mxu1 %v5432_v33  ;;  %v2683_v24 = vpack.c.bf16 %v2671_v50, %v2656_v23 }
 0xa5f   :  { %v2667_v48 = vpop.permute.xlu0 %2666  ;;  %v2664_v1 = vpop.permute.xlu1 %2663 }
 0xa60   :  { %v2668_v40 = vmul.f32 %v2667_v48, %v7128_v25  ;;  %v2665_v27 = vmul.f32 %v2664_v1, %v7131_v52 }
 0xa61   :  { %4668 = vmatpush3.bf16.msra.mxu1 %v2684_v7 }
 0xa62   :  { %4669 = vmatprep.subr.bf16.mxu1 %v5432_v33  ;;  %v2682_v59 = vpack.c.bf16 %v2668_v40, %v2665_v27 }
 0xa63   :  { %v2661_v15 = vpop.permute.xlu0 %2660  ;;  %v2658_v63 = vpop.permute.xlu1 %2657 }
 0xa64   :  { %v2662_v41 = vmul.f32 %v2661_v15, %v7134_v38  ;;  %v2659_v39 = vmul.f32 %v2658_v63, %v7140_v21 }
 0xa65   :  { %4670 = vmatpush3.bf16.msra.mxu1 %v2683_v24  ;;  %v2829_v24 = vld [vmem:[#allocation18] sm:$0xf] }
 0xa66   :  { %4671 = vmatprep.subr.bf16.mxu1 %v5432_v33  ;;  %v2681_v20 = vpack.c.bf16 %v2662_v41, %v2659_v39 }
 0xa69   :  { %4672 = vmatpush3.bf16.msra.mxu1 %v2682_v59 }
 0xa6a   :  { %4673 = vmatprep.subr.bf16.mxu1 %v5432_v33 }
 0xa6d   :  { %4674 = vmatpush3.bf16.msra.mxu1 %v2681_v20 }
 0xa6e   :  { %4699 = vmatprep.subr.bf16.mxu1 %v5432_v33 }
 0xa70   :  { %4676 = vmatmul.mubr.msk.bf16.vlgmr.msra.gmra.mxu1 %vm647_vm9, %v2654_v51  ;;  %v2743_v3 = vpop.permute.xlu0 %2742  ;;  %v2689_v10 = vpop.permute.xlu1 %2688 }
 0xa71   :  { %4709 = vmatprep.mubr.msk.bf16.mxu1 %vm5437_vm11, %v5432_v33 }
 0xaab   :  { %v2785_v18 = vpop.f32.mrf.mxu0 }
 0xaac   :  { %v2786_v44 = vadd.f32 %v2785_v18, %v2743_v3 }
 0xaad   :  { %v4683_v9 = vpop.f32.mrf.mxu0 }
 0xaaf   :  { %v2788_v6 = vpop.f32.mrf.mxu0 }
 0xab1   :  { %v4684_v32 = vpop.f32.mrf.mxu0 }
 0xb30   :  { %v2731_v31 = vpop.f32.mrf.mxu1 }
 0xb31   :  { %v7192_v53 = vadd.f32 %v2731_v31, %v2689_v10 }
 0xb32   :  { %v4677_v13 = vpop.f32.mrf.mxu1 }
 0xb33   :  { %v2791_v49 = vadd.f32 %v2786_v44, %v7192_v53 }
 0xb34   :  { %v2734_v47 = vpop.f32.mrf.mxu1 }
 0xb35   :  { %v2831_v43 = vmax.f32 %v2791_v49, 0.0 }
 0xb36   :  { %v4678_v28 = vpop.f32.mrf.mxu1 }
 0xb37   :  { %2847 = vrot.lane.b32.xlu0 %v2831_v43, %s5433_s29  ;;  %2853 = vrot.lane.b32.xlu1 %v2831_v43, %s5434_s8 }
 0xb3b   :  { %2844 = vrot.lane.b32.xlu0 %v2831_v43, %s5426_s5  ;;  %2850 = vrot.lane.b32.xlu1 %v2831_v43, %s5435_s26 }
 0xb3f   :  { %2841 = vrot.lane.b32.xlu0 %v2831_v43, %s5428_s17  ;;  %2838 = vrot.lane.b32.xlu1 %v2831_v43, %s5436_s28 }
 0xb43   :  { %2835 = vrot.lane.b32.xlu0 %v2831_v43, %s5438_s2  ;;  %2832 = vrot.lane.b32.xlu1 %v2831_v43, %s5439_s30 }
 0xb47   :  { %2795 = vrot.lane.b32.xlu0 %v7192_v53, %s5438_s2  ;;  %2792 = vrot.lane.b32.xlu1 %v7192_v53, %s5439_s30 }
 0xb4b   :  { %2803 = vrot.lane.b32.xlu0 %v7192_v53, %s5428_s17  ;;  %2799 = vrot.lane.b32.xlu1 %v7192_v53, %s5436_s28 }
 0xb4f   :  { %2812 = vrot.lane.b32.xlu0 %v7192_v53, %s5433_s29  ;;  %2808 = vrot.lane.b32.xlu1 %v7192_v53, %s5426_s5 }
 0xb53   :  { %2863 = vperm.xlu0 %4869, %v2830_v62   ;;  %2816 = vrot.lane.b32.xlu1 %v7192_v53, %s5435_s26 }
 0xb57   :  { %2820 = vrot.lane.b32.xlu1 %v7192_v53, %s5434_s8 }
 0xba9   :  { %v2848_v58 = vpop.permute.xlu0 %2847  ;;  %v2854_v23 = vpop.permute.xlu1 %2853 }
 0xbaa   :  { %v2855_v11 = vmul.f32 %v2854_v23, %v7109_v5  ;;  %v2849_v42 = vmul.f32 %v2848_v58, %v7113_v60  ;;  %v2827_v23 = vrot.slane %v7105_v30, %v7855_v37  ;;  %v5056_v30 = vld [vmem:[%s7861_s13 + $0x38] sm:$0xff]  }
 0xbac   :  { %v2860_v35 = vpack.c.bf16 %v2855_v11, %v2855_v11 }
 0xbad   :  { %v2845_v36 = vpop.permute.xlu0 %2844  ;;  %v2851_v34 = vpop.permute.xlu1 %2850 }
 0xbae   :  { %v2852_v0 = vmul.f32 %v2851_v34, %v7117_v55  ;;  %v2870_v46 = vsel %vm651_vm1, %v2860_v35, 0  ;;  %v2846_v4 = vmul.f32 %v2845_v36, %v7120_v26 }
 0xbaf   :  { %4686 = vmatpush3.bf16.msra.mxu0 %v2870_v46 }
 0xbb0   :  { %v2859_v17 = vpack.c.bf16 %v2852_v0, %v2849_v42  ;;  %4687 = vmatprep.subr.bf16.mxu0 %v5432_v33  ;;  %v2858_v14 = vpack.c.bf16 %v2846_v4, %v2831_v43  ;;  %v2916_v4 = vld [vmem:[%s7862_s24 + $0x8] sm:$0xff] }
 0xbb1   :  { %v2842_v57 = vpop.permute.xlu0 %2841  ;;  %v2839_v29 = vpop.permute.xlu1 %2838 }
 0xbb2   :  { %v2843_v56 = vmul.f32 %v2842_v57, %v7128_v25  ;;  %v2840_v8 = vmul.f32 %v2839_v29, %v7131_v52  ;;  %v2915_v57 = vld [vmem:[%s7862_s24] sm:$0xff]  ;;  %v5057_v29 = vld [vmem:[%s7861_s13 + $0x30] sm:$0xff]   ;;  %s7876_s24 = sld [smem:[#allocation55_spill]] }
 0xbb3   :  { %4688 = vmatpush3.bf16.msra.mxu0 %v2859_v17 }
 0xbb4   :  { %4689 = vmatprep.subr.bf16.mxu0 %v5432_v33  ;;  %v2857_v7 = vpack.c.bf16 %v2843_v56, %v2840_v8  ;;  %v5059_v56 = vld [vmem:[%s7861_s13 + $0x20] sm:$0xff]   ;;  %v5060_v8 = vld [vmem:[%s7861_s13 + $0x18] sm:$0xff]  }
 0xbb5   :  { %v2836_v16 = vpop.permute.xlu0 %2835  ;;  %v2833_v2 = vpop.permute.xlu1 %2832 }
 0xbb6   :  { %v2837_v50 = vmul.f32 %v2836_v16, %v7134_v38  ;;  %v2834_v48 = vmul.f32 %v2833_v2, %v7140_v21  ;;  %v5061_v16 = vld [vmem:[%s7861_s13 + $0x10] sm:$0xff]   ;;  %v5062_v2 = vld [vmem:[%s7861_s13 + $0x8] sm:$0xff]  }
 0xbb7   :  { %4690 = vmatpush3.bf16.msra.mxu0 %v2858_v14  ;;  %v5058_v14 = vld [vmem:[%s7861_s13 + $0x28] sm:$0xff]  }
 0xbb8   :  { %4691 = vmatprep.subr.bf16.mxu0 %v5432_v33  ;;  %v2856_v1 = vpack.c.bf16 %v2837_v50, %v2834_v48 }
 0xbb9   :  { %v2793_v40 = vpop.permute.xlu1 %2792  ;;  %v2796_v27 = vpop.permute.xlu0 %2795 }
 0xbba   :  { %v2797_v63 = vmul.f32 %v2796_v27, %v7134_v38  ;;  %v2794_v59 = vmul.f32 %v2793_v40, %v7140_v21 }
 0xbbb   :  { %4692 = vmatpush3.bf16.msra.mxu0 %v2857_v7 }
 0xbbc   :  { %4693 = vmatprep.subr.bf16.mxu0 %v5432_v33  ;;  %v2798_v39 = vadd.f32 %v2797_v63, %v2794_v59 }
 0xbbd   :  { %v2800_v15 = vpop.permute.xlu1 %2799  ;;  %v2804_v20 = vpop.permute.xlu0 %2803 }
 0xbbe   :  { %v2801_v41 = vmul.f32 %v2800_v15, %v7131_v52  ;;  %v2805_v18 = vmul.f32 %v2804_v20, %v7128_v25 }
 0xbbf   :  { %4694 = vmatpush3.bf16.msra.mxu0 %v2856_v1 }
 0xbc0   :  { %4713 = vmatprep.subr.bf16.mxu0 %v5432_v33  ;;  %v2802_v51 = vadd.f32 %v2801_v41, %v2798_v39 }
 0xbc1   :  { %v2809_v6 = vpop.permute.xlu1 %2808  ;;  %v2813_v10 = vpop.permute.xlu0 %2812 }
 0xbc2   :  { %4696 = vmatmul.mubr.msk.bf16.vlgmr.msra.gmra.mxu0 %vm647_vm9, %v2829_v24  ;;  %v2806_v9 = vadd.f32 %v2805_v18, %v2802_v51  ;;  %v2810_v3 = vmul.f32 %v2809_v6, %v7120_v26  ;;  %v2814_v13 = vmul.f32 %v2813_v10, %v7113_v60 }
 0xbc3   :  { %4729 = vmatprep.mubr.msk.bf16.mxu0 %vm5437_vm11, %v5432_v33  ;;  %4714 = vmatpush3.bf16.msra.mxu0 %v5056_v30 }
 0xbc4   :  { %v2807_v32 = vadd.f32 %v2806_v9, %v7192_v53  ;;  %4715 = vmatprep.subr.bf16.mxu0 %v5432_v33 }
 0xbc5   :  { %v2817_v31 = vpop.permute.xlu1 %2816 }
 0xbc6   :  { %v2811_v44 = vadd.f32 %v2810_v3, %v2807_v32  ;;  %v2818_v43 = vmul.f32 %v2817_v31, %v7117_v55  ;;  %v7864_v3 = vmov 0   ;;  %v5064_v31 = vld [vmem:[%s7863_s6 + $0x38] sm:$0xff]  }
 0xbc7   :  { %4716 = vmatpush3.bf16.msra.mxu0 %v5057_v29 }
 0xbc8   :  { %v2815_v49 = vadd.f32 %v2814_v13, %v2811_v44  ;;  %4717 = vmatprep.subr.bf16.mxu0 %v5432_v33 }
 0xbc9   :  { %v2821_v47 = vpop.permute.xlu1 %2820 }
 0xbca   :  { %v2819_v28 = vadd.f32 %v2818_v43, %v2815_v49  ;;  %v2822_v62 = vmul.f32 %v2821_v47, %v7109_v5  ;;  %v5065_v49 = vld [vmem:[%s7863_s6 + $0x30] sm:$0xff]   ;;  %v5066_v47 = vld [vmem:[%s7863_s6 + $0x28] sm:$0xff]   ;;  %v5067_v43 = vld [vmem:[%s7863_s6 + $0x20] sm:$0xff]  }
 0xbcb   :  { %4718 = vmatpush3.bf16.msra.mxu0 %v5058_v14 }
 0xbcc   :  { %v2823_v58 = vadd.f32 %v2822_v62, %v2819_v28  ;;  %4719 = vmatprep.subr.bf16.mxu0 %v5432_v33  ;;  %v5068_v28 = vld [vmem:[%s7863_s6 + $0x18] sm:$0xff]   ;;  %v5069_v62 = vld [vmem:[%s7863_s6 + $0x10] sm:$0xff]  }
 0xbce   :  { %v2864_v53 = vpop.permute.xlu0 %2863  ;;  %v2828_v35 = vmul.f32 %v2827_v23, %v2823_v58  ;;  %v5070_v58 = vld [vmem:[%s7863_s6 + $0x8] sm:$0xff]   ;;  %v5071_v23 = vld [vmem:[%s7863_s6] sm:$0xff]  }
 0xbcf   :  { %4720 = vmatpush3.bf16.msra.mxu0 %v5059_v56 }
 0xbd0   :  { %4721 = vmatprep.subr.bf16.mxu0 %v5432_v33 }
 0xbd3   :  { %4722 = vmatpush3.bf16.msra.mxu0 %v5060_v8  ;;  %v7325_v8 = vld [vmem:[%s7865_s19] sm:$0xff] }
 0xbd4   :  { %4723 = vmatprep.subr.bf16.mxu0 %v5432_v33 }
 0xbd7   :  { %4724 = vmatpush3.bf16.msra.mxu0 %v5061_v16 }
 0xbd8   :  { %4725 = vmatprep.subr.bf16.mxu0 %v5432_v33 }
 0xbdb   :  { %4726 = vmatpush3.bf16.msra.mxu0 %v5062_v2 }
 0xbdc   :  { %4727 = vmatprep.subr.bf16.mxu0 %v5432_v33 }
 0xc82   :  { %v2906_v11 = vpop.f32.mrf.mxu0 }
 0xc83   :  { %v2907_v36 = vadd.f32 %v2906_v11, %v2864_v53 }
 0xc84   :  { %v4697_v34 = vpop.f32.mrf.mxu0 }
 0xc85   :  { %v7248_v42 = vadd.f32 %v2907_v36, %v2828_v35 }
 0xc86   :  { %v2909_v0 = vpop.f32.mrf.mxu0 }
 0xc87   :  { %v2955_v46 = vmax.f32 %v7248_v42, 0.0  ;;  %v3405_v53 = vpack.c.bf16 %v7248_v42, %v7248_v42 }
 0xc88   :  { %v4698_v17 = vpop.f32.mrf.mxu0 }
 0xc89   :  { %2971 = vrot.lane.b32.xlu1 %v2955_v46, %s5433_s29  ;;  %2977 = vrot.lane.b32.xlu0 %v2955_v46, %s5434_s8  ;;  %s5451_s29 = smov 126   ;;  %s5453_s8 = smov 101  }
 0xc8d   :  { %2968 = vrot.lane.b32.xlu1 %v2955_v46, %s5426_s5  ;;  %2974 = vrot.lane.b32.xlu0 %v2955_v46, %s5435_s26  ;;  %s7866_s26 = sld [smem:[#allocation44_spill]] }
 0xc91   :  { %2965 = vrot.lane.b32.xlu1 %v2955_v46, %s5428_s17  ;;  %2962 = vrot.lane.b32.xlu0 %v2955_v46, %s5436_s28  ;;  %s7867_s28 = sld [smem:[#allocation43_spill]] }
 0xc95   :  { %2959 = vrot.lane.b32.xlu1 %v2955_v46, %s5438_s2  ;;  %2956 = vrot.lane.b32.xlu0 %v2955_v46, %s5439_s30  ;;  %s7869_s2 = sld [smem:[#allocation49_spill]] }
 0xc96   :  { %s7870_s30 = sld [smem:[#allocation50_spill]] }
 0xc99   :  { %3045 = vperm.xlu1 %4870, %v2916_v4   ;;  %3040 = vperm.xlu0 %4869, %v2915_v57  }
 0xcfb   :  { %v2972_v7 = vpop.permute.xlu1 %2971  ;;  %v2978_v50 = vpop.permute.xlu0 %2977 }
 0xcfc   :  { %v2979_v48 = vmul.f32 %v2978_v50, %v7109_v5  ;;  %v2973_v27 = vmul.f32 %v2972_v7, %v7113_v60  ;;  %v3166_v7 = vrot.slane %v7325_v8, %v7851_v61  ;;  %v3150_v61 = vrot.slane %v7325_v8, %v7854_v12 }
 0xcfe   :  { %v2984_v1 = vpack.c.bf16 %v2979_v48, %v2979_v48 }
 0xcff   :  { %v2969_v24 = vpop.permute.xlu1 %2968  ;;  %v2975_v40 = vpop.permute.xlu0 %2974 }
 0xd00   :  { %v2976_v15 = vmul.f32 %v2975_v40, %v7117_v55  ;;  %v2994_v63 = vsel %vm651_vm1, %v2984_v1, 0  ;;  %v2970_v41 = vmul.f32 %v2969_v24, %v7120_v26  ;;  %v3158_v1 = vrot.slane %v7325_v8, %v7852_v22 }
 0xd01   :  { %4700 = vmatpush3.bf16.msra.mxu1 %v2994_v63  ;;  %v3162_v24 = vrot.slane %v7325_v8, %v7850_v54  ;;  %v3154_v40 = vrot.slane %v7325_v8, %v7853_v19  ;;  %v3146_v54 = vrot.slane %v7325_v8, %v7855_v37 }
 0xd02   :  { %v2983_v59 = vpack.c.bf16 %v2976_v15, %v2973_v27  ;;  %4701 = vmatprep.subr.bf16.mxu1 %v5432_v33  ;;  %v2982_v5 = vpack.c.bf16 %v2970_v41, %v2955_v46  ;;  %v7346_v27 = vld [vmem:[%s7865_s19 + $0x8] sm:$0x3] }
 0xd03   :  { %v2966_v39 = vpop.permute.xlu1 %2965  ;;  %v2963_v20 = vpop.permute.xlu0 %2962  ;;  %v3170_v22 = vrot.slane %v7346_v27, %v7849_v45 }
 0xd04   :  { %v2967_v51 = vmul.f32 %v2966_v39, %v7128_v25  ;;  %v2964_v60 = vmul.f32 %v2963_v20, %v7131_v52  ;;  %v5055_v25 = vld [vmem:[#allocation19] sm:$0xff]   ;;  %v5063_v52 = vld [vmem:[%s7861_s13] sm:$0xff]   ;;  %s7875_s13 = sld [smem:[#allocation54_spill]] }
 0xd05   :  { %4702 = vmatpush3.bf16.msra.mxu1 %v2983_v59  ;;  %4728 = vmatpush3.bf16.msra.mxu0 %v5063_v52 }
 0xd06   :  { %4703 = vmatprep.subr.bf16.mxu1 %v5432_v33  ;;  %v2981_v9 = vpack.c.bf16 %v2967_v51, %v2964_v60  ;;  %4733 = vmatprep.subr.bf16.mxu0 %v5432_v33 }
 0xd07   :  { %v2960_v55 = vpop.permute.xlu1 %2959  ;;  %v2957_v18 = vpop.permute.xlu0 %2956 }
 0xd08   :  { %v2961_v26 = vmul.f32 %v2960_v55, %v7134_v38  ;;  %v2958_v6 = vmul.f32 %v2957_v18, %v7140_v21 }
 0xd09   :  { %4704 = vmatpush3.bf16.msra.mxu1 %v2982_v5 }
 0xd0a   :  { %4705 = vmatprep.subr.bf16.mxu1 %v5432_v33  ;;  %v2980_v32 = vpack.c.bf16 %v2961_v26, %v2958_v6 }
 0xd0d   :  { %4706 = vmatpush3.bf16.msra.mxu1 %v2981_v9 }
 0xd0e   :  { %4707 = vmatprep.subr.bf16.mxu1 %v5432_v33 }
 0xd11   :  { %4708 = vmatpush3.bf16.msra.mxu1 %v2980_v32 }
 0xd12   :  { %3364 = vmatprep.subr.bf16.mxu1 %v7864_v3 }
 0xd14   :  { %4710 = vmatmul.mubr.msk.bf16.vlgmr.msra.gmra.mxu1 %vm647_vm9, %v5055_v25  ;;  %v3041_v11 = vpop.permute.xlu0 %3040  ;;  %v3046_v46 = vpop.permute.xlu1 %3045 }
 0xdd4   :  { %v3030_v38 = vpop.f32.mrf.mxu1 }
 0xdd6   :  { %v4711_v10 = vpop.f32.mrf.mxu1 }
 0xdd8   :  { %v3033_v21 = vpop.f32.mrf.mxu1 }
 0xdd9   :  { %v3037_v44 = vpack.c.bf16 %v3033_v21, %v3030_v38 }
 0xdda   :  { %v4712_v13 = vpop.f32.mrf.mxu1 }
 0xddb   :  { %4730 = vmatmul.mubr.bf16.vlgmr.msra.gmra.mxu0 %v3037_v44 }
 0xddc   :  { %4734 = vmatpush3.bf16.msra.mxu0 %v5064_v31  ;;  %4749 = vmatprep.mubr.msk.bf16.mxu0 %vm5437_vm11, %v5432_v33 }
 0xddd   :  { %4735 = vmatprep.subr.bf16.mxu0 %v5432_v33 }
 0xde0   :  { %4736 = vmatpush3.bf16.msra.mxu0 %v5065_v49 }
 0xde1   :  { %4737 = vmatprep.subr.bf16.mxu0 %v5432_v33 }
 0xde4   :  { %4738 = vmatpush3.bf16.msra.mxu0 %v5066_v47 }
 0xde5   :  { %4739 = vmatprep.subr.bf16.mxu0 %v5432_v33 }
 0xde8   :  { %4740 = vmatpush3.bf16.msra.mxu0 %v5067_v43 }
 0xde9   :  { %4741 = vmatprep.subr.bf16.mxu0 %v5432_v33 }
 0xdec   :  { %4742 = vmatpush3.bf16.msra.mxu0 %v5068_v28 }
 0xded   :  { %4743 = vmatprep.subr.bf16.mxu0 %v5432_v33 }
 0xdf0   :  { %4744 = vmatpush3.bf16.msra.mxu0 %v5069_v62 }
 0xdf1   :  { %4745 = vmatprep.subr.bf16.mxu0 %v5432_v33 }
 0xdf4   :  { %4746 = vmatpush3.bf16.msra.mxu0 %v5070_v58 }
 0xdf5   :  { %4747 = vmatprep.subr.bf16.mxu0 %v5432_v33 }
 0xdf8   :  { %4748 = vmatpush3.bf16.msra.mxu0 %v5071_v23 }
 0xdf9   :  { %4759 = vmatprep.subr.bf16.mxu0 %v5432_v33 }
 0xdfb   :  { %4750 = vmatmul.mubr.bf16.vlgmr.msra.gmra.mxu0 %v3405_v53  ;;  %v3142_v53 = vrot.slane %v7325_v8, %v7849_v45 }
 0xdfc   :  { %4761 = vmatprep.mubr.msk.bf16.mxu0 %vm5437_vm11, %v5432_v33 }
 0xe9b   :  { %v3130_v35 = vpop.f32.mrf.mxu0 }
 0xe9c   :  { %v3131_v36 = vadd.f32 %v3130_v35, %v3041_v11 }
 0xe9d   :  { %v4731_v34 = vpop.f32.mrf.mxu0 }
 0xe9e   :  { %v7314_v0 = vmax.f32 %v3131_v36, 0.0 }
 0xe9f   :  { %v3133_v17 = vpop.f32.mrf.mxu0 }
 0xea0   :  { %v3134_v30 = vadd.f32 %v3133_v17, %v3046_v46  ;;  %3172 = vrot.lane.b32.xlu0 %v7314_v0, %s5440_s10 }
 0xea1   :  { %v4732_v42 = vpop.f32.mrf.mxu0 }
 0xea2   :  { %v7318_v4 = vmax.f32 %v3134_v30, 0.0 }
 0xea4   :  { %3175 = vrot.lane.b32.xlu1 %v7318_v4, %s5440_s10  ;;  %v4886_v10 = vpack.i.bf16 %v7318_v4, %v7314_v0 }
 0xebb   :  { %v7322_v57 = vpop.f32.mrf.mxu0 }
 0xebd   :  { %v4751_v29 = vpop.f32.mrf.mxu0 }
 0xebf   :  { %v3491_v14 = vpop.f32.mrf.mxu0 }
 0xec1   :  { %v4752_v56 = vpop.f32.mrf.mxu0 }
 0xf12   :  { %v3173_v16 = vpop.permute.xlu0 %3172 }
 0xf13   :  { %v3174_v2 = vsel %vm3171_vm12, %v3173_v16, %v7314_v0 }
 0xf14   :  { %3178 = vrot.lane.b32.xlu0 %v3174_v2, %s5440_s10 }
 0xf16   :  { %v3176_v50 = vpop.permute.xlu1 %3175 }
 0xf17   :  { %v3177_v48 = vsel %vm3171_vm12, %v3176_v50, %v7318_v4 }
 0xf18   :  { %3221 = vrot.lane.b32.xlu0 %v3166_v7, %s5413_s23  ;;  %3180 = vrot.lane.b32.xlu1 %v3177_v48, %s5440_s10  ;;  %s5442_s23 = smov 29  }
 0xf1c   :  { %3209 = vrot.lane.b32.xlu0 %v3158_v1, %s5428_s17  ;;  %3215 = vrot.lane.b32.xlu1 %v3162_v24, %s5441_s0  ;;  %s5444_s17 = smov 5  }
 0xf20   :  { %3197 = vrot.lane.b32.xlu0 %v3150_v61, %s5442_s23  ;;  %3203 = vrot.lane.b32.xlu1 %v3154_v40, %s5443_s11 }
 0xf24   :  { %3227 = vrot.lane.b32.xlu0 %v3170_v22, %s5444_s17  ;;  %3191 = vrot.lane.b32.xlu1 %v3146_v54, %s5445_s15 }
 0xf86   :  { %v3179_v12 = vpop.permute.xlu0 %3178 }
 0xf87   :  { %v7354_v19 = vsel %vm3171_vm12, %v3179_v12, %v7314_v0 }
 0xf8a   :  { %v7356_v15 = vpop.permute.xlu0 %3221  ;;  %v3181_v63 = vpop.permute.xlu1 %3180 }
 0xf8b   :  { %v7360_v59 = vsel %vm3171_vm12, %v3181_v63, %v7318_v4  ;;  %v3224_v41 = vmul.f32 %v7356_v15, %v7354_v19 }
 0xf8c   :  { %v3225_v39 = vmul.f32 %v7356_v15, %v7360_v59 }
 0xf8e   :  { %v7366_v20 = vpop.permute.xlu0 %3209  ;;  %v7368_v5 = vpop.permute.xlu1 %3215  ;;  %v4871_v51 = vpack.i.bf16 %v3225_v39, %v3224_v41 }
 0xf8f   :  { %v3218_v60 = vmul.f32 %v7368_v5, %v7354_v19  ;;  %v3219_v55 = vmul.f32 %v7368_v5, %v7360_v59  ;;  %v3212_v18 = vmul.f32 %v7366_v20, %v7354_v19  ;;  %v3213_v9 = vmul.f32 %v7366_v20, %v7360_v59 }
 0xf90   :  { %4872 = vrot.lane.b32.xlu1 %v4871_v51, %s5446_s4 }
 0xf91   :  { %v4876_v26 = vpack.i.bf16 %v3219_v55, %v3218_v60  ;;  %v4881_v6 = vpack.i.bf16 %v3213_v9, %v3212_v18 }
 0xf92   :  { %v7379_v32 = vpop.permute.xlu0 %3197  ;;  %v7381_v25 = vpop.permute.xlu1 %3203 }
 0xf93   :  { %4877 = vrot.lane.b32.xlu0 %v4876_v26, %s5447_s14  ;;  %v3206_v52 = vmul.f32 %v7381_v25, %v7354_v19  ;;  %v3207_v38 = vmul.f32 %v7381_v25, %v7360_v59  ;;  %v3200_v31 = vmul.f32 %v7379_v32, %v7354_v19  ;;  %v3201_v44 = vmul.f32 %v7379_v32, %v7360_v59 }
 0xf94   :  { %4882 = vrot.lane.b32.xlu1 %v4881_v6, %s5448_s16 }
 0xf95   :  { %v4891_v21 = vpack.i.bf16 %v3207_v38, %v3206_v52  ;;  %v4896_v28 = vpack.i.bf16 %v3201_v44, %v3200_v31  ;;  %v2919_v52 = vld [vmem:[%s7866_s26] sm:$0xff]  ;;  %v2920_v38 = vld [vmem:[%s7866_s26 + $0x8] sm:$0xff] }
 0xf96   :  { %v7395_v13 = vpop.permute.xlu1 %3191  ;;  %v7397_v49 = vpop.permute.xlu0 %3227 }
 0xf97   :  { %4887 = vrot.lane.b32.xlu0 %v4886_v10, %s5449_s18  ;;  %v3194_v47 = vmul.f32 %v7395_v13, %v7354_v19  ;;  %v3195_v43 = vmul.f32 %v7395_v13, %v7360_v59  ;;  %v3230_v58 = vmul.f32 %v7397_v49, %v7354_v19  ;;  %v3231_v23 = vmul.f32 %v7397_v49, %v7360_v59  ;;  %v5072_v10 = vld [vmem:[%s7867_s28 + $0x4] ss:$8 sps:$4 sm:$0xff]  }
 0xf98   :  { %4892 = vrot.lane.b32.xlu1 %v4891_v21, %s5450_s22  ;;  %4478 = vmatprep.mubr.msk.bf16.mxu1 %vm3360_vm13, %v5072_v10 }
 0xf99   :  { %v4901_v62 = vpack.i.bf16 %v3195_v43, %v3194_v47  ;;  %v4906_v11 = vpack.i.bf16 %v3231_v23, %v3230_v58  ;;  %v5074_v23 = vld [vmem:[%s7867_s28] ss:$8 sps:$4 sm:$0xff]  }
 0xf9b   :  { %4897 = vrot.lane.b32.xlu0 %v4896_v28, %s5451_s29 }
 0xf9c   :  { %4902 = vrot.lane.b32.xlu1 %v4901_v62, %s5426_s5  ;;  %v3494_v62 = vpack.c.bf16 %v7322_v57, %v7322_v57 }
 0xf9f   :  { %3185 = vrot.lane.b32.xlu0 %v3142_v53, %s5449_s18  ;;  %v3504_v53 = vsel %vm651_vm1, %v3494_v62, 0 }
 0xfa0   :  { %4907 = vrot.lane.b32.xlu1 %v4906_v11, %s5452_s21  ;;  %v5075_v11 = vld [vmem:[%s7868_s1] sm:$0xff]  }
0x1002   :  { %v4873_v35 = vpop.permute.xlu1 %4872 }
0x1003   :  { %v4875_v36 = vunpack.i.h.bf16 %v4873_v35  ;;  %v4874_v34 = vunpack.i.l.bf16 %v4873_v35 }
0x1005   :  { %v3303_v0 = vpack.c.bf16 %v4875_v36, %v4874_v34  ;;  %v4878_v46 = vpop.permute.xlu0 %4877 }
0x1006   :  { %v4880_v17 = vunpack.i.h.bf16 %v4878_v46  ;;  %v4879_v30 = vunpack.i.l.bf16 %v4878_v46  ;;  %v4883_v42 = vpop.permute.xlu1 %4882 }
0x1007   :  { %v4885_v4 = vunpack.i.h.bf16 %v4883_v42  ;;  %v4884_v29 = vunpack.i.l.bf16 %v4883_v42  ;;  %3347 = vrot.lane.b32.xlu0 %v3303_v0, %s5453_s8 }
0x1008   :  { %v3302_v45 = vpack.c.bf16 %v4880_v17, %v4879_v30 }
0x1009   :  { %v3301_v14 = vpack.c.bf16 %v4885_v4, %v4884_v29  ;;  %v4888_v56 = vpop.permute.xlu0 %4887 }
0x100a   :  { %v4890_v8 = vunpack.i.h.bf16 %v4888_v56  ;;  %v4889_v16 = vunpack.i.l.bf16 %v4888_v56  ;;  %3345 = vrot.lane.b32.xlu1 %v3302_v45, %s5453_s8  ;;  %v4893_v2 = vpop.permute.xlu1 %4892 }
0x100b   :  { %v4895_v7 = vunpack.i.h.bf16 %v4893_v2  ;;  %v4894_v50 = vunpack.i.l.bf16 %v4893_v2  ;;  %3343 = vrot.lane.b32.xlu0 %v3301_v14, %s5453_s8 }
0x100c   :  { %v3300_v48 = vpack.c.bf16 %v4890_v8, %v4889_v16 }
0x100d   :  { %v3299_v1 = vpack.c.bf16 %v4895_v7, %v4894_v50  ;;  %v4898_v24 = vpop.permute.xlu0 %4897 }
0x100e   :  { %v4900_v61 = vunpack.i.h.bf16 %v4898_v24  ;;  %v4899_v40 = vunpack.i.l.bf16 %v4898_v24  ;;  %3341 = vrot.lane.b32.xlu1 %v3300_v48, %s5453_s8  ;;  %v4903_v22 = vpop.permute.xlu1 %4902  ;;  %v5076_v24 = vld [vmem:[#allocation21] sm:$0xff]  }
0x100f   :  { %v4905_v54 = vunpack.i.h.bf16 %v4903_v22  ;;  %v4904_v12 = vunpack.i.l.bf16 %v4903_v22  ;;  %3339 = vrot.lane.b32.xlu0 %v3299_v1, %s5453_s8 }
0x1010   :  { %v3298_v63 = vpack.c.bf16 %v4900_v61, %v4899_v40 }
0x1011   :  { %v3297_v41 = vpack.c.bf16 %v4905_v54, %v4904_v12  ;;  %v7420_v39 = vpop.permute.xlu0 %3185 }
0x1012   :  { %3337 = vrot.lane.b32.xlu1 %v3298_v63, %s5453_s8  ;;  %v4908_v51 = vpop.permute.xlu1 %4907  ;;  %v3188_v60 = vmul.f32 %v7420_v39, %v7354_v19  ;;  %v3189_v55 = vmul.f32 %v7420_v39, %v7360_v59 }
0x1013   :  { %v4910_v18 = vunpack.i.h.bf16 %v4908_v51  ;;  %v4909_v9 = vunpack.i.l.bf16 %v4908_v51  ;;  %3335 = vrot.lane.b32.xlu0 %v3297_v41, %s5453_s8 }
0x1014   :  { %v3296_v26 = vpack.c.bf16 %v3189_v55, %v3188_v60 }
0x1015   :  { %v3304_v6 = vpack.c.bf16 %v4910_v18, %v4909_v9 }
0x1016   :  { %3333 = vrot.lane.b32.xlu1 %v3296_v26, %s5453_s8 }
0x1017   :  { %3349 = vrot.lane.b32.xlu0 %v3304_v6, %s5453_s8 }
0x101a   :  { %3307 = vperm.xlu1 %4870, %v2919_v52  }
0x101b   :  { %3312 = vperm.xlu0 %4869, %v2920_v38  }
0x1079   :  { %v3348_v19 = vpop.permute.xlu0 %3347 }
0x107a   :  { %3365 = vmatpush1.bf16.msra.mxu1 %v3348_v19 }
0x107b   :  { %3366 = vmatprep.subr.bf16.mxu1 %v7864_v3 }
0x107c   :  { %v3346_v59 = vpop.permute.xlu1 %3345 }
0x107d   :  { %v3344_v21 = vpop.permute.xlu0 %3343 }
0x107e   :  { %3367 = vmatpush1.bf16.msra.mxu1 %v3346_v59 }
0x107f   :  { %3368 = vmatprep.subr.bf16.mxu1 %v7864_v3 }
0x1080   :  { %v3342_v31 = vpop.permute.xlu1 %3341 }
0x1081   :  { %v3340_v44 = vpop.permute.xlu0 %3339 }
0x1082   :  { %3369 = vmatpush1.bf16.msra.mxu1 %v3344_v21 }
0x1083   :  { %3370 = vmatprep.subr.bf16.mxu1 %v7864_v3 }
0x1084   :  { %v3338_v47 = vpop.permute.xlu1 %3337 }
0x1085   :  { %v3336_v43 = vpop.permute.xlu0 %3335 }
0x1086   :  { %3371 = vmatpush1.bf16.msra.mxu1 %v3342_v31 }
0x1087   :  { %3372 = vmatprep.subr.bf16.mxu1 %v7864_v3 }
0x1088   :  { %v3334_v28 = vpop.permute.xlu1 %3333 }
0x1089   :  { %v3350_v58 = vpop.permute.xlu0 %3349 }
0x108a   :  { %3373 = vmatpush1.bf16.msra.mxu1 %v3340_v44 }
0x108b   :  { %3374 = vmatprep.subr.bf16.mxu1 %v7864_v3 }
0x108e   :  { %3375 = vmatpush1.bf16.msra.mxu1 %v3338_v47 }
0x108f   :  { %3376 = vmatprep.subr.bf16.mxu1 %v7864_v3 }
0x1092   :  { %3377 = vmatpush1.bf16.msra.mxu1 %v3336_v43 }
0x1093   :  { %3378 = vmatprep.subr.bf16.mxu1 %v7864_v3 }
0x1095   :  { %v3308_v34 = vpop.permute.xlu1 %3307 }
0x1096   :  { %3379 = vmatpush1.bf16.msra.mxu1 %v3334_v28  ;;  %v3313_v42 = vpop.permute.xlu0 %3312 }
0x1097   :  { %3394 = vmatprep.subr.bf16.mxu1 %v7864_v3 }
0x109a   :  { %3395 = vmatpush2.bf16.msra.mxu1 %v3350_v58 }
0x109b   :  { %4753 = vmatprep.subr.bf16.mxu1 %v5432_v33 }
0x109d   :  { %3397 = vmatmul.mubr.bf16.vlgmr.msra.gmra.mxu1 %v5074_v23 }
0x109e   :  { %4754 = vmatpush3.bf16.msra.mxu1 %v3504_v53  ;;  %4755 = vmatprep.mubr.msk.bf16.mxu1 %vm5437_vm11, %v5432_v33 }
0x109f   :  { %3712 = vmatprep.subr.bf16.mxu1 %v7864_v3 }
0x10a5   :  { %4756 = vmatmul.mubr.msk.bf16.vlgmr.msra.gmra.mxu1 %vm1013_vm10, %v5075_v11 }
0x115d   :  { %v3398_v35 = vpop.f32.mrf.mxu1 }
0x115e   :  { %v3399_v46 = vadd.f32 %v3398_v35, %v3308_v34 }
0x115f   :  { %v3400_v36 = vpop.f32.mrf.mxu1 }
0x1161   :  { %v3401_v57 = vpop.f32.mrf.mxu1 }
0x1162   :  { %v3402_v29 = vadd.f32 %v3401_v57, %v3313_v42 }
0x1163   :  { %v3403_v0 = vpop.f32.mrf.mxu1 }
0x1165   :  { %v3540_v17 = vpop.f32.mrf.mxu1 }
0x1166   :  { %v3541_v30 = vadd.f32 %v3540_v17, %v3399_v46 }
0x1167   :  { %v4757_v4 = vpop.f32.mrf.mxu1 }
0x1168   :  { %v3551_v45 = vmax.f32 %v3541_v30, 0.0 }
0x1169   :  { %v3543_v14 = vpop.f32.mrf.mxu1 }
0x116a   :  { %v3544_v56 = vadd.f32 %v3543_v14, %v3402_v29  ;;  %3553 = vrot.lane.b32.xlu1 %v3551_v45, %s5440_s10 }
0x116b   :  { %v4758_v8 = vpop.f32.mrf.mxu1 }
0x116c   :  { %v3552_v16 = vmax.f32 %v3544_v56, 0.0 }
0x116e   :  { %3556 = vrot.lane.b32.xlu0 %v3552_v16, %s5440_s10  ;;  %v3757_v2 = vpack.c.bf16 %v3552_v16, %v3551_v45  ;;  %v4926_v38 = vpack.i.bf16 %v3552_v16, %v3551_v45 }
0x1170   :  { %4760 = vmatpush3.bf16.msra.mxu0 %v3757_v2 }
0x1171   :  { %4102 = vmatprep.subr.bf16.mxu0 %v7864_v3 }
0x1173   :  { %4762 = vmatmul.mubr.msk.bf16.vlgmr.msra.gmra.mxu0 %vm3360_vm13, %v5076_v24 }
0x11dc   :  { %v3554_v7 = vpop.permute.xlu1 %3553 }
0x11dd   :  { %v3555_v50 = vsel %vm3171_vm12, %v3554_v7, %v3551_v45 }
0x11de   :  { %3559 = vrot.lane.b32.xlu1 %v3555_v50, %s5440_s10 }
0x11e0   :  { %v3557_v48 = vpop.permute.xlu0 %3556 }
0x11e1   :  { %v3558_v1 = vsel %vm3171_vm12, %v3557_v48, %v3552_v16 }
0x11e2   :  { %3561 = vrot.lane.b32.xlu0 %v3558_v1, %s5440_s10 }
0x1250   :  { %v3560_v61 = vpop.permute.xlu1 %3559 }
0x1251   :  { %v3563_v40 = vsel %vm3171_vm12, %v3560_v61, %v3551_v45 }
0x1252   :  { %v3577_v12 = vmul.f32 %v3563_v40, %v7356_v15  ;;  %v3575_v41 = vmul.f32 %v3563_v40, %v7368_v5  ;;  %v7467_v60 = vmul.f32 %v3563_v40, %v7420_v39  ;;  %v3573_v52 = vmul.f32 %v3563_v40, %v7366_v20 }
0x1253   :  { %v3571_v21 = vmul.f32 %v3563_v40, %v7381_v25  ;;  %v3569_v31 = vmul.f32 %v3563_v40, %v7379_v32  ;;  %v3579_v62 = vmul.f32 %v3563_v40, %v7397_v49  ;;  %v3567_v58 = vmul.f32 %v3563_v40, %v7395_v13 }
0x1254   :  { %v3562_v22 = vpop.permute.xlu0 %3561 }
0x1255   :  { %v3564_v54 = vsel %vm3171_vm12, %v3562_v22, %v3552_v16 }
0x1256   :  { %v3578_v63 = vmul.f32 %v3564_v54, %v7356_v15  ;;  %v3576_v51 = vmul.f32 %v3564_v54, %v7368_v5  ;;  %v7470_v55 = vmul.f32 %v3564_v54, %v7420_v39  ;;  %v3574_v26 = vmul.f32 %v3564_v54, %v7366_v20 }
0x1257   :  { %v3572_v19 = vmul.f32 %v3564_v54, %v7381_v25  ;;  %v3570_v59 = vmul.f32 %v3564_v54, %v7379_v32  ;;  %v3580_v43 = vmul.f32 %v3564_v54, %v7397_v49  ;;  %v3568_v28 = vmul.f32 %v3564_v54, %v7395_v13 }
0x1258   :  { %v4911_v18 = vpack.i.bf16 %v3578_v63, %v3577_v12  ;;  %v4916_v9 = vpack.i.bf16 %v3576_v51, %v3575_v41  ;;  %v3645_v6 = vpack.c.bf16 %v7470_v55, %v7467_v60  ;;  %v4921_v10 = vpack.i.bf16 %v3574_v26, %v3573_v52  ;;  %v3549_v60 = vld [vmem:[%s7869_s2] sm:$0xff] }
0x1259   :  { %v4931_v44 = vpack.i.bf16 %v3572_v19, %v3571_v21  ;;  %v4936_v47 = vpack.i.bf16 %v3570_v59, %v3569_v31  ;;  %v4946_v23 = vpack.i.bf16 %v3580_v43, %v3579_v62  ;;  %v4941_v53 = vpack.i.bf16 %v3568_v28, %v3567_v58  ;;  %v3755_v26 = vld [vmem:[%s7870_s30] sm:$0xff]  ;;  %v3756_v19 = vld [vmem:[%s7870_s30 + $0x8] sm:$0xff] }
0x125a   :  { %4912 = vrot.lane.b32.xlu1 %v4911_v18, %s5446_s4  ;;  %4917 = vrot.lane.b32.xlu0 %v4916_v9, %s5447_s14  ;;  %v3810_v18 = vpop.f32.mrf.mxu0  ;;  %v3550_v9 = vld [vmem:[%s7869_s2 + $0x8] sm:$0xff] }
0x125c   :  { %v4763_v52 = vpop.f32.mrf.mxu0 }
0x125e   :  { %4927 = vrot.lane.b32.xlu0 %v4926_v38, %s5449_s18  ;;  %4922 = vrot.lane.b32.xlu1 %v4921_v10, %s5448_s16  ;;  %v3813_v38 = vpop.f32.mrf.mxu0  ;;  %v5077_v10 = vld [vmem:[%s7871_s27 + $0x4] ss:$8 sps:$4 sm:$0xff]  }
0x125f   :  { %4491 = vmatprep.mubr.msk.bf16.mxu1 %vm3360_vm13, %v5077_v10 }
0x1260   :  { %v4764_v59 = vpop.f32.mrf.mxu0 }
0x1262   :  { %4932 = vrot.lane.b32.xlu1 %v4931_v44, %s5450_s22  ;;  %4937 = vrot.lane.b32.xlu0 %v4936_v47, %s5451_s29 }
0x1266   :  { %4947 = vrot.lane.b32.xlu0 %v4946_v23, %s5452_s21  ;;  %4942 = vrot.lane.b32.xlu1 %v4941_v53, %s5426_s5  ;;  %v5079_v23 = vld [vmem:[%s7871_s27] ss:$8 sps:$4 sm:$0xff]  }
0x12cc   :  { %v4913_v11 = vpop.permute.xlu1 %4912  ;;  %v4918_v35 = vpop.permute.xlu0 %4917 }
0x12cd   :  { %v4915_v36 = vunpack.i.h.bf16 %v4913_v11  ;;  %v4914_v57 = vunpack.i.l.bf16 %v4913_v11  ;;  %v4920_v34 = vunpack.i.h.bf16 %v4918_v35  ;;  %v4919_v0 = vunpack.i.l.bf16 %v4918_v35 }
0x12cf   :  { %v3652_v46 = vpack.c.bf16 %v4915_v36, %v4914_v57  ;;  %v3651_v17 = vpack.c.bf16 %v4920_v34, %v4919_v0 }
0x12d0   :  { %v4928_v30 = vpop.permute.xlu0 %4927  ;;  %v4923_v42 = vpop.permute.xlu1 %4922 }
0x12d1   :  { %v4930_v4 = vunpack.i.h.bf16 %v4928_v30  ;;  %v4929_v29 = vunpack.i.l.bf16 %v4928_v30  ;;  %v4925_v45 = vunpack.i.h.bf16 %v4923_v42  ;;  %v4924_v14 = vunpack.i.l.bf16 %v4923_v42  ;;  %3694 = vrot.lane.b32.xlu0 %v3651_v17, %s5453_s8  ;;  %3696 = vrot.lane.b32.xlu1 %v3652_v46, %s5453_s8 }
0x12d3   :  { %v3649_v56 = vpack.c.bf16 %v4930_v4, %v4929_v29  ;;  %v3650_v8 = vpack.c.bf16 %v4925_v45, %v4924_v14 }
0x12d4   :  { %v4933_v16 = vpop.permute.xlu1 %4932  ;;  %v4938_v2 = vpop.permute.xlu0 %4937 }
0x12d5   :  { %v4935_v7 = vunpack.i.h.bf16 %v4933_v16  ;;  %v4934_v50 = vunpack.i.l.bf16 %v4933_v16  ;;  %v4940_v48 = vunpack.i.h.bf16 %v4938_v2  ;;  %v4939_v1 = vunpack.i.l.bf16 %v4938_v2  ;;  %3690 = vrot.lane.b32.xlu0 %v3649_v56, %s5453_s8  ;;  %3692 = vrot.lane.b32.xlu1 %v3650_v8, %s5453_s8 }
0x12d7   :  { %v3648_v24 = vpack.c.bf16 %v4935_v7, %v4934_v50  ;;  %v3647_v61 = vpack.c.bf16 %v4940_v48, %v4939_v1 }
0x12d8   :  { %v4948_v40 = vpop.permute.xlu0 %4947  ;;  %v4943_v22 = vpop.permute.xlu1 %4942 }
0x12d9   :  { %v4945_v54 = vunpack.i.h.bf16 %v4943_v22  ;;  %v4944_v12 = vunpack.i.l.bf16 %v4943_v22  ;;  %3686 = vrot.lane.b32.xlu0 %v3647_v61, %s5453_s8  ;;  %3688 = vrot.lane.b32.xlu1 %v3648_v24, %s5453_s8  ;;  %v4950_v63 = vunpack.i.h.bf16 %v4948_v40  ;;  %v4949_v41 = vunpack.i.l.bf16 %v4948_v40 }
0x12db   :  { %v3646_v51 = vpack.c.bf16 %v4945_v54, %v4944_v12  ;;  %v3653_v55 = vpack.c.bf16 %v4950_v63, %v4949_v41 }
0x12dd   :  { %3684 = vrot.lane.b32.xlu1 %v3646_v51, %s5453_s8  ;;  %3682 = vrot.lane.b32.xlu0 %v3645_v6, %s5453_s8 }
0x12e1   :  { %3698 = vrot.lane.b32.xlu1 %v3653_v55, %s5453_s8  ;;  %3656 = vperm.xlu0 %4869, %v3549_v60  }
0x12e5   :  { %3661 = vperm.xlu1 %4870, %v3550_v9   ;;  %3760 = vperm.xlu0 %4869, %v3755_v26  }
0x12e9   :  { %3765 = vperm.xlu1 %4870, %v3756_v19  }
0x1343   :  { %v3697_v21 = vpop.permute.xlu1 %3696  ;;  %v3695_v6 = vpop.permute.xlu0 %3694 }
0x1344   :  { %3713 = vmatpush1.bf16.msra.mxu1 %v3697_v21 }
0x1345   :  { %3714 = vmatprep.subr.bf16.mxu1 %v7864_v3 }
0x1347   :  { %v3693_v31 = vpop.permute.xlu1 %3692  ;;  %v3691_v44 = vpop.permute.xlu0 %3690 }
0x1348   :  { %3715 = vmatpush1.bf16.msra.mxu1 %v3695_v6 }
0x1349   :  { %3716 = vmatprep.subr.bf16.mxu1 %v7864_v3 }
0x134b   :  { %v3689_v47 = vpop.permute.xlu1 %3688  ;;  %v3687_v43 = vpop.permute.xlu0 %3686 }
0x134c   :  { %3717 = vmatpush1.bf16.msra.mxu1 %v3693_v31 }
0x134d   :  { %3718 = vmatprep.subr.bf16.mxu1 %v7864_v3 }
0x134f   :  { %v3685_v28 = vpop.permute.xlu1 %3684  ;;  %v3683_v62 = vpop.permute.xlu0 %3682 }
0x1350   :  { %3719 = vmatpush1.bf16.msra.mxu1 %v3691_v44 }
0x1351   :  { %3720 = vmatprep.subr.bf16.mxu1 %v7864_v3 }
0x1353   :  { %v3699_v58 = vpop.permute.xlu1 %3698 }
0x1354   :  { %3721 = vmatpush1.bf16.msra.mxu1 %v3689_v47 }
0x1355   :  { %3722 = vmatprep.subr.bf16.mxu1 %v7864_v3 }
0x1358   :  { %3723 = vmatpush1.bf16.msra.mxu1 %v3687_v43 }
0x1359   :  { %3724 = vmatprep.subr.bf16.mxu1 %v7864_v3 }
0x135c   :  { %3725 = vmatpush1.bf16.msra.mxu1 %v3685_v28  ;;  %v3657_v53 = vpop.permute.xlu0 %3656 }
0x135d   :  { %3726 = vmatprep.subr.bf16.mxu1 %v7864_v3 }
0x1360   :  { %3727 = vmatpush1.bf16.msra.mxu1 %v3683_v62  ;;  %v3662_v11 = vpop.permute.xlu1 %3661  ;;  %v3761_v35 = vpop.permute.xlu0 %3760 }
0x1361   :  { %3742 = vmatprep.subr.bf16.mxu1 %v7864_v3  ;;  %v3811_v57 = vadd.f32 %v3810_v18, %v3761_v35 }
0x1364   :  { %3743 = vmatpush2.bf16.msra.mxu1 %v3699_v58  ;;  %v3766_v0 = vpop.permute.xlu1 %3765 }
0x1365   :  { %4765 = vmatprep.subr.bf16.mxu1 %v5432_v33  ;;  %v3814_v42 = vadd.f32 %v3813_v38, %v3766_v0 }
0x1367   :  { %3745 = vmatmul.mubr.bf16.vlgmr.msra.gmra.mxu1 %v5079_v23 }
0x1368   :  { %4769 = vmatprep.mubr.msk.bf16.mxu1 %vm5437_vm11, %v5432_v33 }
0x1427   :  { %v3746_v36 = vpop.f32.mrf.mxu1 }
0x1428   :  { %v7519_v34 = vadd.f32 %v3746_v36, %v3657_v53 }
0x1429   :  { %v3748_v46 = vpop.f32.mrf.mxu1 }
0x142a   :  { %v3817_v17 = vadd.f32 %v3811_v57, %v7519_v34 }
0x142b   :  { %v3749_v30 = vpop.f32.mrf.mxu1 }
0x142c   :  { %v7522_v4 = vadd.f32 %v3749_v30, %v3662_v11  ;;  %v3941_v29 = vmax.f32 %v3817_v17, 0.0 }
0x142d   :  { %v3751_v45 = vpop.f32.mrf.mxu1 }
0x142e   :  { %3943 = vrot.lane.b32.xlu0 %v3941_v29, %s5440_s10  ;;  %v3818_v14 = vadd.f32 %v3814_v42, %v7522_v4 }
0x1430   :  { %v3942_v56 = vmax.f32 %v3818_v14, 0.0 }
0x1432   :  { %3946 = vrot.lane.b32.xlu1 %v3942_v56, %s5440_s10  ;;  %v4966_v9 = vpack.i.bf16 %v3942_v56, %v3941_v29 }
0x14a0   :  { %v3944_v8 = vpop.permute.xlu0 %3943 }
0x14a1   :  { %v3945_v16 = vsel %vm3171_vm12, %v3944_v8, %v3941_v29 }
0x14a2   :  { %3949 = vrot.lane.b32.xlu0 %v3945_v16, %s5440_s10 }
0x14a4   :  { %v3947_v2 = vpop.permute.xlu1 %3946 }
0x14a5   :  { %v3948_v7 = vsel %vm3171_vm12, %v3947_v2, %v3942_v56 }
0x14a6   :  { %3951 = vrot.lane.b32.xlu1 %v3948_v7, %s5440_s10 }
0x1514   :  { %v3950_v50 = vpop.permute.xlu0 %3949 }
0x1515   :  { %v3953_v48 = vsel %vm3171_vm12, %v3950_v50, %v3941_v29 }
0x1516   :  { %v3967_v61 = vmul.f32 %v3953_v48, %v7356_v15  ;;  %v3965_v22 = vmul.f32 %v3953_v48, %v7368_v5  ;;  %v7538_v12 = vmul.f32 %v3953_v48, %v7420_v39  ;;  %v3963_v18 = vmul.f32 %v3953_v48, %v7366_v20 }
0x1517   :  { %v3961_v10 = vmul.f32 %v3953_v48, %v7381_v25  ;;  %v3959_v19 = vmul.f32 %v3953_v48, %v7379_v32  ;;  %v3969_v44 = vmul.f32 %v3953_v48, %v7397_v49  ;;  %v3957_v47 = vmul.f32 %v3953_v48, %v7395_v13 }
0x1518   :  { %v3952_v1 = vpop.permute.xlu1 %3951 }
0x1519   :  { %v3954_v24 = vsel %vm3171_vm12, %v3952_v1, %v3942_v56 }
0x151a   :  { %v3968_v40 = vmul.f32 %v3954_v24, %v7356_v15  ;;  %v3966_v54 = vmul.f32 %v3954_v24, %v7368_v5  ;;  %v7541_v63 = vmul.f32 %v3954_v24, %v7420_v39  ;;  %v3964_v60 = vmul.f32 %v3954_v24, %v7366_v20 }
0x151b   :  { %v3962_v52 = vmul.f32 %v3954_v24, %v7381_v25  ;;  %v3960_v38 = vmul.f32 %v3954_v24, %v7379_v32  ;;  %v3970_v6 = vmul.f32 %v3954_v24, %v7397_v49  ;;  %v3958_v31 = vmul.f32 %v3954_v24, %v7395_v13 }
0x151c   :  { %v4951_v41 = vpack.i.bf16 %v3968_v40, %v3967_v61  ;;  %v4956_v51 = vpack.i.bf16 %v3966_v54, %v3965_v22  ;;  %v4035_v55 = vpack.c.bf16 %v7541_v63, %v7538_v12  ;;  %v4961_v26 = vpack.i.bf16 %v3964_v60, %v3963_v18 }
0x151d   :  { %v4971_v59 = vpack.i.bf16 %v3962_v52, %v3961_v10  ;;  %v4976_v21 = vpack.i.bf16 %v3960_v38, %v3959_v19  ;;  %v4986_v43 = vpack.i.bf16 %v3970_v6, %v3969_v44  ;;  %v4981_v28 = vpack.i.bf16 %v3958_v31, %v3957_v47  ;;  %v3939_v6 = vld [vmem:[%s7873_s7] sm:$0xff]  ;;  %v3940_v47 = vld [vmem:[%s7873_s7 + $0x8] sm:$0xff] }
0x151e   :  { %4952 = vrot.lane.b32.xlu0 %v4951_v41, %s5446_s4  ;;  %4957 = vrot.lane.b32.xlu1 %v4956_v51, %s5447_s14  ;;  %v5080_v51 = vld [vmem:[%s7872_s12 + $0x4] ss:$8 sps:$4 sm:$0xff]  }
0x151f   :  { %4496 = vmatprep.mubr.msk.bf16.mxu0 %vm3360_vm13, %v5080_v51 }
0x1522   :  { %4967 = vrot.lane.b32.xlu1 %v4966_v9, %s5449_s18  ;;  %4962 = vrot.lane.b32.xlu0 %v4961_v26, %s5448_s16 }
0x1526   :  { %4972 = vrot.lane.b32.xlu0 %v4971_v59, %s5450_s22  ;;  %4977 = vrot.lane.b32.xlu1 %v4976_v21, %s5451_s29 }
0x152a   :  { %4987 = vrot.lane.b32.xlu1 %v4986_v43, %s5452_s21  ;;  %4982 = vrot.lane.b32.xlu0 %v4981_v28, %s5426_s5  ;;  %v5082_v43 = vld [vmem:[%s7872_s12] ss:$8 sps:$4 sm:$0xff]  }
0x1590   :  { %v4953_v62 = vpop.permute.xlu0 %4952  ;;  %v4958_v58 = vpop.permute.xlu1 %4957 }
0x1591   :  { %v4955_v23 = vunpack.i.h.bf16 %v4953_v62  ;;  %v4954_v53 = vunpack.i.l.bf16 %v4953_v62  ;;  %v4960_v11 = vunpack.i.h.bf16 %v4958_v58  ;;  %v4959_v35 = vunpack.i.l.bf16 %v4958_v58 }
0x1593   :  { %v4042_v36 = vpack.c.bf16 %v4955_v23, %v4954_v53  ;;  %v4041_v57 = vpack.c.bf16 %v4960_v11, %v4959_v35 }
0x1594   :  { %v4968_v0 = vpop.permute.xlu1 %4967  ;;  %v4963_v46 = vpop.permute.xlu0 %4962 }
0x1595   :  { %v4970_v17 = vunpack.i.h.bf16 %v4968_v0  ;;  %v4969_v30 = vunpack.i.l.bf16 %v4968_v0  ;;  %v4965_v42 = vunpack.i.h.bf16 %v4963_v46  ;;  %v4964_v29 = vunpack.i.l.bf16 %v4963_v46  ;;  %4084 = vrot.lane.b32.xlu1 %v4041_v57, %s5453_s8  ;;  %4086 = vrot.lane.b32.xlu0 %v4042_v36, %s5453_s8 }
0x1597   :  { %v4039_v45 = vpack.c.bf16 %v4970_v17, %v4969_v30  ;;  %v4040_v14 = vpack.c.bf16 %v4965_v42, %v4964_v29  ;;  %v3930_v17 = vrot.slane %v7346_v27, %v7855_v37  ;;  %v4156_v42 = vld [vmem:[%s7875_s13 + $0x8] sm:$0xff] }
0x1598   :  { %v4973_v56 = vpop.permute.xlu0 %4972  ;;  %v4978_v8 = vpop.permute.xlu1 %4977 }
0x1599   :  { %v4975_v16 = vunpack.i.h.bf16 %v4973_v56  ;;  %v4974_v2 = vunpack.i.l.bf16 %v4973_v56  ;;  %v4980_v7 = vunpack.i.h.bf16 %v4978_v8  ;;  %v4979_v50 = vunpack.i.l.bf16 %v4978_v8  ;;  %4080 = vrot.lane.b32.xlu1 %v4039_v45, %s5453_s8  ;;  %4082 = vrot.lane.b32.xlu0 %v4040_v14, %s5453_s8 }
0x159b   :  { %v4038_v48 = vpack.c.bf16 %v4975_v16, %v4974_v2  ;;  %v4037_v1 = vpack.c.bf16 %v4980_v7, %v4979_v50  ;;  %v4163_v16 = vld [vmem:[%s5672_s25] sm:$0xff]  ;;  %v5083_v2 = vld [vmem:[%s7876_s24 + $0x8] sm:$0xff]  }
0x159c   :  { %v4988_v24 = vpop.permute.xlu1 %4987  ;;  %v4983_v61 = vpop.permute.xlu0 %4982  ;;  %4766 = vmatpush3.bf16.msra.mxu1 %v5083_v2  ;;  %v5084_v7 = vld [vmem:[%s7876_s24] sm:$0xff]  }
0x159d   :  { %v4985_v40 = vunpack.i.h.bf16 %v4983_v61  ;;  %v4984_v22 = vunpack.i.l.bf16 %v4983_v61  ;;  %4076 = vrot.lane.b32.xlu1 %v4037_v1, %s5453_s8  ;;  %4078 = vrot.lane.b32.xlu0 %v4038_v48, %s5453_s8  ;;  %v4990_v54 = vunpack.i.h.bf16 %v4988_v24  ;;  %v4989_v12 = vunpack.i.l.bf16 %v4988_v24 }
0x159e   :  { %4767 = vmatprep.subr.bf16.mxu1 %v5432_v33 }
0x159f   :  { %v4036_v63 = vpack.c.bf16 %v4985_v40, %v4984_v22  ;;  %v4043_v41 = vpack.c.bf16 %v4990_v54, %v4989_v12 }
0x15a0   :  { %4768 = vmatpush3.bf16.msra.mxu1 %v5084_v7 }
0x15a1   :  { %4074 = vrot.lane.b32.xlu0 %v4036_v63, %s5453_s8  ;;  %4072 = vrot.lane.b32.xlu1 %v4035_v55, %s5453_s8 }
0x15a2   :  { %4773 = vmatprep.subr.bf16.mxu1 %v5432_v33 }
0x15a5   :  { %4088 = vrot.lane.b32.xlu0 %v4043_v41, %s5453_s8  ;;  %3819 = vrot.lane.b32.xlu1 %v7519_v34, %s5440_s10 }
0x15a9   :  { %3822 = vrot.lane.b32.xlu0 %v7522_v4, %s5440_s10 }
0x1607   :  { %v4085_v60 = vpop.permute.xlu1 %4084  ;;  %v4087_v18 = vpop.permute.xlu0 %4086 }
0x1608   :  { %4103 = vmatpush1.bf16.msra.mxu0 %v4087_v18 }
0x1609   :  { %4104 = vmatprep.subr.bf16.mxu0 %v7864_v3 }
0x160b   :  { %v4081_v9 = vpop.permute.xlu1 %4080  ;;  %v4083_v26 = vpop.permute.xlu0 %4082 }
0x160c   :  { %4105 = vmatpush1.bf16.msra.mxu0 %v4085_v60 }
0x160d   :  { %4106 = vmatprep.subr.bf16.mxu0 %v7864_v3 }
0x160f   :  { %v4077_v55 = vpop.permute.xlu1 %4076  ;;  %v4079_v52 = vpop.permute.xlu0 %4078 }
0x1610   :  { %4107 = vmatpush1.bf16.msra.mxu0 %v4083_v26 }
0x1611   :  { %4108 = vmatprep.subr.bf16.mxu0 %v7864_v3 }
0x1613   :  { %v4075_v38 = vpop.permute.xlu0 %4074  ;;  %v4073_v10 = vpop.permute.xlu1 %4072 }
0x1614   :  { %4109 = vmatpush1.bf16.msra.mxu0 %v4081_v9 }
0x1615   :  { %4110 = vmatprep.subr.bf16.mxu0 %v7864_v3 }
0x1617   :  { %v4089_v19 = vpop.permute.xlu0 %4088  ;;  %v3820_v59 = vpop.permute.xlu1 %3819 }
0x1618   :  { %v3821_v21 = vsel %vm3171_vm12, %v3820_v59, %v7519_v34  ;;  %4111 = vmatpush1.bf16.msra.mxu0 %v4079_v52 }
0x1619   :  { %3825 = vrot.lane.b32.xlu1 %v3821_v21, %s5440_s10  ;;  %4112 = vmatprep.subr.bf16.mxu0 %v7864_v3 }
0x161b   :  { %v3823_v31 = vpop.permute.xlu0 %3822 }
0x161c   :  { %v3824_v44 = vsel %vm3171_vm12, %v3823_v31, %v7522_v4  ;;  %4113 = vmatpush1.bf16.msra.mxu0 %v4077_v55 }
0x161d   :  { %3827 = vrot.lane.b32.xlu0 %v3824_v44, %s5440_s10  ;;  %4046 = vperm.xlu1 %4870, %v3939_v6  }
0x161e   :  { %4114 = vmatprep.subr.bf16.mxu0 %v7864_v3 }
0x1620   :  { %4115 = vmatpush1.bf16.msra.mxu0 %v4075_v38 }
0x1621   :  { %4051 = vperm.xlu0 %4869, %v3940_v47   ;;  %4116 = vmatprep.subr.bf16.mxu0 %v7864_v3 }
0x1624   :  { %4117 = vmatpush1.bf16.msra.mxu0 %v4073_v10 }
0x1625   :  { %4132 = vmatprep.subr.bf16.mxu0 %v7864_v3 }
0x1628   :  { %4133 = vmatpush2.bf16.msra.mxu0 %v4089_v19 }
0x162b   :  { %4135 = vmatmul.mubr.bf16.vlgmr.msra.gmra.mxu0 %v5082_v43 }
0x168b   :  { %v3826_v28 = vpop.permute.xlu1 %3825 }
0x168c   :  { %v7597_v62 = vsel %vm3171_vm12, %v3826_v28, %v7519_v34 }
0x168d   :  { %v3833_v58 = vmul.f32 %v7597_v62, %v7395_v13  ;;  %v3845_v11 = vmul.f32 %v7597_v62, %v7379_v32  ;;  %v3857_v36 = vmul.f32 %v7597_v62, %v7381_v25  ;;  %v3879_v57 = vmul.f32 %v7597_v62, %v7366_v20 }
0x168e   :  { %v3915_v0 = vmul.f32 %v7597_v62, %v7397_v49  ;;  %v3831_v9 = vmul.f32 %v7597_v62, %v7420_v39 }
0x168f   :  { %v3828_v23 = vpop.permute.xlu0 %3827  ;;  %3837 = vrot.lane.b32.xlu1 %v3833_v58, %s5426_s5 }
0x1690   :  { %v7604_v53 = vsel %vm3171_vm12, %v3828_v23, %v7522_v4 }
0x1691   :  { %v3834_v3 = vmul.f32 %v7604_v53, %v7395_v13  ;;  %v3846_v35 = vmul.f32 %v7604_v53, %v7379_v32  ;;  %v3858_v13 = vmul.f32 %v7604_v53, %v7381_v25  ;;  %v3880_v32 = vmul.f32 %v7604_v53, %v7366_v20 }
0x1692   :  { %v3891_v25 = vmul.f32 %v7597_v62, %v7368_v5  ;;  %v3904_v20 = vmul.f32 %v7604_v53, %v7356_v15  ;;  %v3916_v46 = vmul.f32 %v7604_v53, %v7397_v49  ;;  %v3832_v52 = vmul.f32 %v7604_v53, %v7420_v39 }
0x1693   :  { %3839 = vrot.lane.b32.xlu0 %v3834_v3, %s5426_s5  ;;  %3849 = vrot.lane.b32.xlu1 %v3845_v11, %s5451_s29  ;;  %s7874_s5 = sld [smem:[#allocation53_spill]] }
0x1697   :  { %3851 = vrot.lane.b32.xlu0 %v3846_v35, %s5451_s29  ;;  %3861 = vrot.lane.b32.xlu1 %v3857_v36, %s5450_s22 }
0x1698   :  { %v4047_v29 = vpop.permute.xlu1 %4046 }
0x1699   :  { %v4154_v30 = vld [vmem:[%s7874_s5 + $0x8] sm:$0xff] }
0x169b   :  { %3863 = vrot.lane.b32.xlu0 %v3858_v13, %s5450_s22  ;;  %3871 = vrot.lane.b32.xlu1 %v7519_v34, %s5449_s18  ;;  %v3892_v34 = vmul.f32 %v7604_v53, %v7368_v5  ;;  %v4153_v5 = vld [vmem:[%s7874_s5] sm:$0xff] }
0x169c   :  { %v4052_v56 = vpop.permute.xlu0 %4051 }
0x169f   :  { %3873 = vrot.lane.b32.xlu0 %v7522_v4, %s5449_s18  ;;  %3883 = vrot.lane.b32.xlu1 %v3879_v57, %s5448_s16  ;;  %v3903_v4 = vmul.f32 %v7597_v62, %v7356_v15  ;;  %v4155_v15 = vld [vmem:[%s7875_s13] sm:$0xff] }
0x16a3   :  { %3885 = vrot.lane.b32.xlu0 %v3880_v32, %s5448_s16  ;;  %3895 = vrot.lane.b32.xlu1 %v3891_v25, %s5447_s14 }
0x16a7   :  { %3897 = vrot.lane.b32.xlu0 %v3892_v34, %s5447_s14  ;;  %3907 = vrot.lane.b32.xlu1 %v3903_v4, %s5446_s4 }
0x16ab   :  { %3909 = vrot.lane.b32.xlu0 %v3904_v20, %s5446_s4  ;;  %3919 = vrot.lane.b32.xlu1 %v3915_v0, %s5452_s21 }
0x16af   :  { %3921 = vrot.lane.b32.xlu0 %v3916_v46, %s5452_s21  ;;  %4167 = vperm.xlu1 %4870, %v4153_v5  }
0x16b3   :  { %4172 = vperm.xlu0 %4869, %v4154_v30   ;;  %3932 = vrot.lane.b32.xlu1 %v3930_v17, %s5449_s18 }
0x16b7   :  { %4179 = vperm.xlu0 %4869, %v4155_v15   ;;  %4184 = vperm.xlu1 %4870, %v4156_v42  }
0x16eb   :  { %v4136_v45 = vpop.f32.mrf.mxu0 }
0x16ec   :  { %v4137_v49 = vadd.f32 %v4136_v45, %v4047_v29  ;;  %v4164_v29 = vld [vmem:[%s5672_s25 + $0x8] sm:$0x3] }
0x16ed   :  { %v4138_v14 = vpop.f32.mrf.mxu0 }
0x16ee   :  { %4145 = vrot.lane.b32.xlu0 %v4137_v49, %s5449_s18 }
0x16ef   :  { %v4139_v8 = vpop.f32.mrf.mxu0 }
0x16f0   :  { %v4140_v37 = vadd.f32 %v4139_v8, %v4052_v56 }
0x16f1   :  { %v4141_v27 = vpop.f32.mrf.mxu0 }
0x16f2   :  { %4147 = vrot.lane.b32.xlu1 %v4140_v37, %s5449_s18  ;;  %v5085_v27 = vld [vmem:[%s5667_s9] sm:$0x1f]  }
0x16f6   :  { %4258 = vperm.xlu1 %4870, %v4163_v16  }
0x1701   :  { %v3838_v50 = vpop.permute.xlu1 %3837 }
0x1702   :  { %v3843_v26 = vadd.f32 %v3838_v50, %v3831_v9 }
0x1705   :  { %v3840_v48 = vpop.permute.xlu0 %3839  ;;  %v3850_v1 = vpop.permute.xlu1 %3849 }
0x1706   :  { %v3855_v38 = vadd.f32 %v3850_v1, %v3843_v26  ;;  %v3844_v19 = vadd.f32 %v3840_v48, %v3832_v52 }
0x1709   :  { %v3852_v24 = vpop.permute.xlu0 %3851  ;;  %v3862_v61 = vpop.permute.xlu1 %3861 }
0x170a   :  { %v3867_v59 = vadd.f32 %v3862_v61, %v3855_v38  ;;  %v3856_v6 = vadd.f32 %v3852_v24, %v3844_v19 }
0x170d   :  { %v3864_v40 = vpop.permute.xlu0 %3863  ;;  %v3872_v22 = vpop.permute.xlu1 %3871 }
0x170e   :  { %v3877_v31 = vadd.f32 %v3872_v22, %v3867_v59  ;;  %v3868_v47 = vadd.f32 %v3864_v40, %v3856_v6 }
0x1711   :  { %v3874_v54 = vpop.permute.xlu0 %3873  ;;  %v3884_v12 = vpop.permute.xlu1 %3883 }
0x1712   :  { %v3889_v43 = vadd.f32 %v3884_v12, %v3877_v31  ;;  %v3878_v28 = vadd.f32 %v3874_v54, %v3868_v47 }
0x1715   :  { %v3886_v63 = vpop.permute.xlu0 %3885  ;;  %v3896_v41 = vpop.permute.xlu1 %3895 }
0x1716   :  { %v3901_v58 = vadd.f32 %v3896_v41, %v3889_v43  ;;  %v3890_v3 = vadd.f32 %v3886_v63, %v3878_v28 }
0x1719   :  { %v3898_v51 = vpop.permute.xlu0 %3897  ;;  %v3908_v60 = vpop.permute.xlu1 %3907 }
0x171a   :  { %v3913_v62 = vadd.f32 %v3908_v60, %v3901_v58  ;;  %v3902_v35 = vadd.f32 %v3898_v51, %v3890_v3 }
0x171d   :  { %v3910_v18 = vpop.permute.xlu0 %3909  ;;  %v3920_v55 = vpop.permute.xlu1 %3919 }
0x171e   :  { %v3925_v36 = vadd.f32 %v3920_v55, %v3913_v62  ;;  %v3914_v13 = vadd.f32 %v3910_v18, %v3902_v35 }
0x1721   :  { %v3922_v10 = vpop.permute.xlu0 %3921 }
0x1722   :  { %v3926_v32 = vadd.f32 %v3922_v10, %v3914_v13 }
0x172a   :  { %v4168_v21 = vpop.permute.xlu1 %4167 }
0x172e   :  { %v4173_v44 = vpop.permute.xlu0 %4172  ;;  %v3933_v23 = vpop.permute.xlu1 %3932 }
0x172f   :  { %v3935_v39 = vmul.f32 %v3933_v23, %v3925_v36  ;;  %v3936_v34 = vmul.f32 %v3933_v23, %v3926_v32 }
0x1732   :  { %v4180_v11 = vpop.permute.xlu0 %4179  ;;  %v4185_v53 = vpop.permute.xlu1 %4184 }
0x1760   :  { %v4146_v57 = vpop.permute.xlu0 %4145 }
0x1761   :  { %v4151_v25 = vadd.f32 %v4146_v57, %v3935_v39 }
0x1763   :  { %v4175_v4 = vmul.f32 %v4168_v21, %v4151_v25 }
0x1764   :  { %v4148_v20 = vpop.permute.xlu1 %4147 }
0x1765   :  { %v4152_v0 = vadd.f32 %v4148_v20, %v3936_v34  ;;  %v4187_v5 = vadd.f32 %v4180_v11, %v4175_v4 }
0x1767   :  { %v4176_v46 = vmul.f32 %v4173_v44, %v4152_v0  ;;  %v4189_v30 = vmax.f32 %v4187_v5, 0.0 }
0x1769   :  { %v4188_v17 = vadd.f32 %v4185_v53, %v4176_v46 }
0x176b   :  { %v4190_v15 = vmax.f32 %v4188_v17, 0.0 }
0x176d   :  { %v4191_v42 = vpack.c.bf16 %v4190_v15, %v4189_v30 }
0x176f   :  { %4193 = vrot.lane.b32.xlu0 %v4191_v42, %s5453_s8 }
0x1771   :  { %v4259_v16 = vpop.permute.xlu1 %4258 }
0x1773   :  { %4263 = vperm.xlu0 %4869, %v4164_v29  }
0x17e1   :  { %v4194_v45 = vpop.permute.xlu0 %4193 }
0x17e2   :  { %4770 = vmatmul.mubr.msk.bf16.vlgmr.msra.gmra.mxu1 %vm4207_vm14, %v4194_v45 }
0x17e3   :  { %4775 = vmatprep.mubr.msk.bf16.mxu1 %vm5437_vm11, %v5432_v33 }
0x17ee   :  { %v4264_v33 = vpop.permute.xlu0 %4263 }
0x18a2   :  { %v4245_v49 = vpop.f32.mrf.mxu1 }
0x18a3   :  { %4253 = vst.msk [vmem:[%s5677_s3] sm:$0xff] %vm4252_vm15, %v4245_v49 }
0x18a4   :  { %v4771_v14 = vpop.f32.mrf.mxu1 }
0x18a6   :  { %v4248_v56 = vpop.f32.mrf.mxu1 }
0x18a7   :  { %4254 = vst.msk [vmem:[%s5677_s3 + $0x8] sm:$0xff] %vm4252_vm15, %v4248_v56  ;;  %v4255_v8 = vpack.c.bf16 %v4248_v56, %v4245_v49 }
0x18a8   :  { %v4772_v37 = vpop.f32.mrf.mxu1 }
0x18a9   :  { %4774 = vmatpush3.bf16.msra.mxu1 %v4255_v8 }
0x18ac   :  { %4776 = vmatmul.mubr.msk.bf16.vlgmr.msra.gmra.mxu1 %vm3360_vm13, %v5085_v27 }
0x196c   :  { %v4308_v2 = vpop.f32.mrf.mxu1 }
0x196d   :  { %v4309_v7 = vadd.f32 %v4308_v2, %v4259_v16 }
0x196e   :  { %v4777_v50 = vpop.f32.mrf.mxu1 }
0x196f   :  { %4315 = vst.msk [vmem:[%s5682_s20] sm:$0xff] %vm4252_vm15, %v4309_v7 }
0x1970   :  { %v4311_v48 = vpop.f32.mrf.mxu1 }
0x1971   :  { %v4312_v1 = vadd.f32 %v4311_v48, %v4264_v33 }
0x1972   :  { %v4778_v24 = vpop.f32.mrf.mxu1 }
0x1973   :  { %4317 = vst.msk [vmem:[%s5682_s20 + $0x8] sm:$0x3] %vm4316_vm0, %v4312_v1 }
0x1974   :  { %4326 = vsyncpa [#allocation3], 1 }
0x1975   :  { %4327 = vsyncpa [#allocation5], 1 }
0x1976   :  { %4328 = vsyncpa [#allocation8], 1 }
0x1977   :  { %4329 = vsyncpa [#allocation11], 1 }
0x1978   :  { %4330 = vsyncpa [#allocation14], 1 }
0x1979   :  { %4331 = vsyncpa [#allocation17], 1 }
0x197a   :  { %4332 = vsyncpa [#allocation20], 1 }

</bundles_post_ra>
